<compile_context>
chip_gen: v6e
topology: v6e:2x2x1
jax: 0.10.0
libtpu: 0.0.40
codegen_flags: <defaults>
</compile_context>

<pallas_src>
import math
from functools import partial

import numpy as np
import jax
import jax.numpy as jnp
from jax.experimental import pallas as pl
from jax.experimental.pallas import tpu as pltpu

C_FEAT = 56       # feature_extract / expand output channels
C_MID = 12        # shrink / mapping channels
K1 = 5            # feature_extract kernel size
KM = 3            # mapping conv kernel size
N_MAP = 4         # number of mapping convs
HALO = K1 // 2 + N_MAP * (KM // 2)    # 6 rows of receptive-field halo per side


def _round_up(x, m):
    return (x + m - 1) // m * m


def _fsrcnn_kernel(alpha_ref, x_ref, cm1_ref, cm2_ref,
                   w1_ref, b1_ref, w2_ref, b2_ref, wm_ref, bm_ref,
                   w7_ref, b7_ref, o_ref, canvas_ref, patch_ref,
                   *, W, img_h, ext_rows, out_rows, lg_in, lg_c):
    """Fully fused FSRCNN forward for one (batch, row-tile) grid step.

    alpha_ref : (1, 8)        f32   PReLU slopes [feat, shrink, map0..3, expand, 0]
    x_ref     : (1, 1, S_in)  f32   flat 1-channel input rows (+halo, zero guards)
    cm1_ref   : (4, S_in)     f32   column-wrap masks for the 5x5 conv (dw=-2,-1,+1,+2)
    cm2_ref   : (2, S_c)      f32   column-wrap masks for the 3x3 convs (dw=-1,+1)
    w1_ref    : (56, 25) bf16       feature_extract weights, tap-major columns
    w2_ref    : (12, 56) bf16       shrink (1x1)
    wm_ref    : (4, 12, 108) bf16   mapping convs, columns = (kh, kw, ci)
    w7_ref    : (56, 12) bf16       expand (1x1)
    b*_ref    : (Cout, 1)    f32    biases (broadcast along lanes)
    o_ref     : (1, 56, out_rows*W) output block (lane-dense)
    canvas_ref: (12, S_c)    f32    zero-guarded flat canvas for the 3x3 convs
    patch_ref : (108, ext_rows*W) f32  im2col patch scratch (reused by conv1)
    """
    q_e = ext_rows * W            # every layer is computed over the haloed extent
    tw = out_rows * W

    def prelu(z, idx):
        a = alpha_ref[:, idx:idx + 1]              # (1, 1) slope, broadcasts
        return jnp.where(z >= 0, z, a * z)

    def mm(w, p):                                  # (Cout, K) @ (K, Q) on the MXU
        return jnp.dot(w, p.astype(jnp.bfloat16),
                       preferred_element_type=jnp.float32)

    # ---- feature_extract: 5x5 conv (Cin=1) as one (56,25)@(25,Qe) matmul.
    #      Taps are lane-shifted windows of the flat image; masked copies of the
    #      (1, S_in) row supply the zero-padding at the left/right image border.
    x0 = x_ref[0]                                  # (1, S_in) f32
    xv = {-2: x0 * cm1_ref[0:1], -1: x0 * cm1_ref[1:2], 0: x0,
          1: x0 * cm1_ref[2:3], 2: x0 * cm1_ref[3:4]}
    i = 0
    for dh in range(-2, 3):
        for dw in range(-2, 3):
            off = lg_in + dh * W + dw
            patch_ref[i:i + 1, :] = xv[dw][:, off:off + q_e]
            i += 1
    h = prelu(mm(w1_ref[...], patch_ref[0:K1 * K1, :]) + b1_ref[...], 0)   # (56,Qe)

    # ---- shrink: 1x1 conv.
    h = prelu(mm(w2_ref[...], h) + b2_ref[...], 1)                         # (12,Qe)

    # Row-validity mask for this tile: intermediate feature maps must be ZERO
    # on rows outside the real image (per-layer zero padding semantics).
    t = pl.program_id(1)
    row0 = t * out_rows - HALO                     # image row of extent row 0
    lo = jnp.maximum(0, -row0) * W
    hi = jnp.minimum(ext_rows, img_h - row0) * W
    pos = jax.lax.broadcasted_iota(jnp.int32, (1, q_e), 1)
    in_img = (pos >= lo) & (pos < hi)              # (1, Qe)

    # ---- nonlinear mapping: 4 x (3x3 conv), each as one K=108 matmul over an
    #      im2col patch assembled from lane-shifted windows of the canvas.
    canvas_ref[...] = jnp.zeros_like(canvas_ref)   # zero guards once per step
    for l in range(N_MAP):
        canvas_ref[:, lg_c:lg_c + q_e] = jnp.where(in_img, h, 0.0)  # aligned store
        c0 = canvas_ref[...]                                        # (12, S_c)
        src = {-1: c0 * cm2_ref[0:1], 0: c0, 1: c0 * cm2_ref[1:2]}
        i = 0
        for dh in (-1, 0, 1):
            for dw in (-1, 0, 1):
                off = lg_c + dh * W + dw
                patch_ref[i * C_MID:(i + 1) * C_MID, :] = src[dw][:, off:off + q_e]
                i += 1
        h = prelu(mm(wm_ref[l], patch_ref[...]) + bm_ref[l], 2 + l)        # (12,Qe)

    # ---- expand: 1x1 conv, computed only on this tile's own rows (halo dropped).
    hc = h[:, HALO * W: HALO * W + tw]                                     # (12,TW)
    o_ref[0] = prelu(mm(w7_ref[...], hc) + b7_ref[...], 6).astype(o_ref.dtype)


@partial(jax.jit, static_argnames=("tile_h", "out_dtype"))
def fsrcnn_forward(x_nchw, kparams, tile_h=None, out_dtype=jnp.float32):
    """FSRCNN forward. Input NCHW (1 channel), output NCHW (56 channels)."""
    w1, b1, w2, b2, wm, bm, w7, b7, alphas = kparams
    N, cin, H, W = x_nchw.shape
    assert cin == 1 and W >= K1 and H >= 1

    # --- row-tile selection (keeps the per-step working set v7x-friendly and
    #     gives >=2 parallel grid steps for the 2-TensorCore chips).
    if tile_h is None or tile_h >= H:
        tile_h = H
    if tile_h < H and (tile_h * W) % 128 != 0:
        tile_h = H                      # tiled output blocks must be lane-aligned
    n_tiles = -(-H // tile_h)
    hp = n_tiles * tile_h
    ext = tile_h + 2 * HALO             # haloed row extent processed per tile
    q_e = ext * W
    tw = tile_h * W

    # Flat-canvas geometry: row stride = W, zero guards on both ends; the
    # interior of the intermediate canvas starts at a 128-aligned offset.
    lg_in = _round_up(2 * W + 2, 128)
    s_in = _round_up(lg_in + q_e + 2 * W + 2, 128)
    lg_c = _round_up(W + 1, 128)
    s_c = _round_up(lg_c + q_e + W + 1, 128)

    # --- per-tile inputs: raw rows + 6-row halo, flattened, zero guards.
    ximg = x_nchw[:, 0].astype(jnp.float32)
    xpad = jnp.pad(ximg, ((0, 0), (HALO, HALO + hp - H), (0, 0)))
    xt = jnp.stack([xpad[:, t * tile_h: t * tile_h + ext, :]
                    for t in range(n_tiles)], axis=1)        # (N, n_tiles, ext, W)
    xt = xt.reshape(N * n_tiles, 1, q_e)
    x_in = jnp.pad(xt, ((0, 0), (0, 0), (lg_in, s_in - lg_in - q_e)))

    # --- column-wrap masks (constants): zero the columns whose lane-shifted
    #     read would wrap into the adjacent image row.
    def col_masks(cols_list, lg, total):
        m = np.ones((len(cols_list), total), np.float32)
        row_starts = lg + np.arange(ext) * W
        for i, cols in enumerate(cols_list):
            for c in cols:
                m[i, row_starts + c] = 0.0
        return jnp.asarray(m)

    cm1 = col_masks([[W - 2, W - 1], [W - 1], [0], [0, 1]], lg_in, s_in)
    cm2 = col_masks([[W - 1], [0]], lg_c, s_c)

    kernel = partial(_fsrcnn_kernel, W=W, img_h=H, ext_rows=ext,
                     out_rows=tile_h, lg_in=lg_in, lg_c=lg_c)

    flops = 2 * N * n_tiles * (
        q_e * (K1 * K1 * C_FEAT + C_FEAT * C_MID + N_MAP * KM * KM * C_MID * C_MID)
        + tw * C_MID * C_FEAT)
    bytes_accessed = int(
        x_in.size * 4 + cm1.size * 4 + cm2.size * 4
        + (w1.size + w2.size + wm.size + w7.size) * 2
        + (b1.size + b2.size + bm.size + b7.size + alphas.size) * 4
        + N * C_FEAT * hp * W * jnp.dtype(out_dtype).itemsize)

    out = pl.pallas_call(
        kernel,
        out_shape=jax.ShapeDtypeStruct((N, C_FEAT, hp * W), out_dtype),
        grid_spec=pltpu.PrefetchScalarGridSpec(
            num_scalar_prefetch=0,
            grid=(N, n_tiles),
            in_specs=[
                pl.BlockSpec((1, 8), lambda n, t: (0, 0)),                 # alphas
                pl.BlockSpec((1, 1, s_in),
                             lambda n, t: (n * n_tiles + t, 0, 0)),        # image tile
                pl.BlockSpec((4, s_in), lambda n, t: (0, 0)),              # cm1
                pl.BlockSpec((2, s_c), lambda n, t: (0, 0)),               # cm2
                pl.BlockSpec((C_FEAT, K1 * K1), lambda n, t: (0, 0)),      # w1
                pl.BlockSpec((C_FEAT, 1), lambda n, t: (0, 0)),            # b1
                pl.BlockSpec((C_MID, C_FEAT), lambda n, t: (0, 0)),        # w2
                pl.BlockSpec((C_MID, 1), lambda n, t: (0, 0)),             # b2
                pl.BlockSpec((N_MAP, C_MID, KM * KM * C_MID),
                             lambda n, t: (0, 0, 0)),                      # wm
                pl.BlockSpec((N_MAP, C_MID, 1), lambda n, t: (0, 0, 0)),   # bm
                pl.BlockSpec((C_FEAT, C_MID), lambda n, t: (0, 0)),        # w7
                pl.BlockSpec((C_FEAT, 1), lambda n, t: (0, 0)),            # b7
            ],
            out_specs=pl.BlockSpec((1, C_FEAT, tw), lambda n, t: (n, 0, t)),
            scratch_shapes=[
                pltpu.VMEM((C_MID, s_c), jnp.float32),                 # 3x3 canvas
                pltpu.VMEM((KM * KM * C_MID, q_e), jnp.float32),       # im2col patch
            ],
        ),
        compiler_params=pltpu.CompilerParams(
            dimension_semantics=("parallel", "parallel"),
            vmem_limit_bytes=48 * 1024 * 1024),   # v7x-safe (64 MiB physical VMEM)
        cost_estimate=pl.CostEstimate(flops=int(flops), transcendentals=0,
                                      bytes_accessed=bytes_accessed),
    )(alphas, x_in, cm1, cm2, w1, b1, w2, b2, wm, bm, w7, b7)

    out = out.reshape(N, C_FEAT, hp, W)          # free reshape, no transpose
    if hp != H:
        out = out[:, :, :H, :]
    return out


def init_fsrcnn_params(key):
    """Raw FSRCNN params: list of (weight OIHW f32, bias f32, prelu_alpha f32)."""
    specs = ([(1, C_FEAT, K1), (C_FEAT, C_MID, 1)]
             + [(C_MID, C_MID, KM)] * N_MAP
             + [(C_MID, C_FEAT, 1)])
    keys = jax.random.split(key, 2 * len(specs))
    params = []
    for i, (cin, cout, k) in enumerate(specs):
        fan_in = cin * k * k
        bound = 1.0 / math.sqrt(fan_in)
        w = jax.random.uniform(keys[2 * i], (cout, cin, k, k), jnp.float32,
                               -bound, bound)
        b = jax.random.uniform(keys[2 * i + 1], (cout,), jnp.float32,
                               -bound, bound)
        a = jnp.asarray(0.25, jnp.float32)        # PyTorch nn.PReLU() default
        params.append((w, b, a))
    return params


def prepare_kernel_params(raw):
    """Convert raw OIHW/f32 params to the kernel's channel-major bf16 layouts."""
    (w1, b1, a1), (w2, b2, a2) = raw[0], raw[1]
    maps = raw[2:2 + N_MAP]
    (w7, b7, a7) = raw[2 + N_MAP]

    w1k = w1.reshape(C_FEAT, K1 * K1).astype(jnp.bfloat16)            # (56, 25)
    w2k = w2.reshape(C_MID, C_FEAT).astype(jnp.bfloat16)              # (12, 56)
    wmk = jnp.stack([jnp.transpose(w, (0, 2, 3, 1)).reshape(C_MID, KM * KM * C_MID)
                     for (w, _, _) in maps]).astype(jnp.bfloat16)     # (4, 12, 108)
    w7k = w7.reshape(C_FEAT, C_MID).astype(jnp.bfloat16)              # (56, 12)

    b1k = b1.reshape(C_FEAT, 1)
    b2k = b2.reshape(C_MID, 1)
    bmk = jnp.stack([b.reshape(C_MID, 1) for (_, b, _) in maps])      # (4, 12, 1)
    b7k = b7.reshape(C_FEAT, 1)

    alphas = jnp.stack([a1, a2] + [a for (_, _, a) in maps]
                       + [a7, jnp.asarray(0.0, jnp.float32)]).reshape(1, 8)
    return (w1k, b1k, w2k, b2k, wmk, bmk, w7k, b7k, alphas)


def _reference_forward(x_nchw, raw_params):
    """Plain-JAX f32 reference (lax conv, NCHW/OIHW) for correctness checking."""
    pads = (2, 0, 1, 1, 1, 1, 0)
    h = x_nchw
    for (w, b, a), p in zip(raw_params, pads):
        y = jax.lax.conv_general_dilated(
            h, w, window_strides=(1, 1), padding=[(p, p), (p, p)],
            dimension_numbers=("NCHW", "OIHW", "NCHW"))
        y = y + b[None, :, None, None]
        h = jnp.where(y >= 0, y, a * y)
    return h


if __name__ == "__main__":
    key = jax.random.PRNGKey(0)
    kx, kp = jax.random.split(key)

    # FSRCNN's first conv expects 1 input channel.
    x = jax.random.normal(kx, (2, 1, 16, 16), jnp.float32)
    raw_params = init_fsrcnn_params(kp)
    kparams = prepare_kernel_params(raw_params)

    # tile_h=8 -> grid (2 batches x 2 row-tiles) = 4 parallel steps.
    out = fsrcnn_forward(x, kparams, tile_h=8)
    out = jax.block_until_ready(out)
    assert out.shape == (2, C_FEAT, 16, 16), out.shape

    ref = _reference_forward(x, raw_params)
    err = float(jnp.max(jnp.abs(out - ref)))
    # bf16 MXU inputs with f32 accumulation => relaxed tolerance vs f32 ref.
    assert err < 3e-2, f"max abs error vs f32 reference: {err}"

    print("KERNEL_OK")
</pallas_src>

<mosaic_0001>
module attributes {stable_mosaic.version = 11 : i64} {
  func.func @_fsrcnn_kernel(%arg0: i32, %arg1: i32, %arg2: memref<1x8xf32, #tpu.memory_space<vmem>>, %arg3: memref<1x1x512xf32, #tpu.memory_space<vmem>>, %arg4: memref<4x512xf32, #tpu.memory_space<vmem>>, %arg5: memref<2x512xf32, #tpu.memory_space<vmem>>, %arg6: memref<56x25xbf16, #tpu.memory_space<vmem>>, %arg7: memref<56x1xf32, #tpu.memory_space<vmem>>, %arg8: memref<12x56xbf16, #tpu.memory_space<vmem>>, %arg9: memref<12x1xf32, #tpu.memory_space<vmem>>, %arg10: memref<4x12x108xbf16, #tpu.memory_space<vmem>>, %arg11: memref<4x12x1xf32, #tpu.memory_space<vmem>>, %arg12: memref<56x12xbf16, #tpu.memory_space<vmem>>, %arg13: memref<56x1xf32, #tpu.memory_space<vmem>>, %arg14: memref<1x56x128xf32, #tpu.memory_space<vmem>>, %arg15: memref<12x512xf32, #tpu.memory_space<vmem>>, %arg16: memref<108x320xf32, #tpu.memory_space<vmem>>) attributes {dimension_semantics = [#tpu.dimension_semantics<parallel>, #tpu.dimension_semantics<parallel>], iteration_bounds = array<i64: 2, 2>, scalar_prefetch = 0 : i64, scratch_operands = 2 : i64, tpu.core_type = #tpu.core_type<tc>, window_params = [{pipeline_mode = #tpu.pipeline_mode<synchronous>, transform_indices = @transform_0, window_bounds = array<i64: 1, 8>}, {transform_indices = @transform_1, window_bounds = array<i64: 1, 1, 512>}, {pipeline_mode = #tpu.pipeline_mode<synchronous>, transform_indices = @transform_2, window_bounds = array<i64: 4, 512>}, {pipeline_mode = #tpu.pipeline_mode<synchronous>, transform_indices = @transform_3, window_bounds = array<i64: 2, 512>}, {pipeline_mode = #tpu.pipeline_mode<synchronous>, transform_indices = @transform_4, window_bounds = array<i64: 56, 25>}, {pipeline_mode = #tpu.pipeline_mode<synchronous>, transform_indices = @transform_5, window_bounds = array<i64: 56, 1>}, {pipeline_mode = #tpu.pipeline_mode<synchronous>, transform_indices = @transform_6, window_bounds = array<i64: 12, 56>}, {pipeline_mode = #tpu.pipeline_mode<synchronous>, transform_indices = @transform_7, window_bounds = array<i64: 12, 1>}, {pipeline_mode = #tpu.pipeline_mode<synchronous>, transform_indices = @transform_8, window_bounds = array<i64: 4, 12, 108>}, {pipeline_mode = #tpu.pipeline_mode<synchronous>, transform_indices = @transform_9, window_bounds = array<i64: 4, 12, 1>}, {pipeline_mode = #tpu.pipeline_mode<synchronous>, transform_indices = @transform_10, window_bounds = array<i64: 56, 12>}, {pipeline_mode = #tpu.pipeline_mode<synchronous>, transform_indices = @transform_11, window_bounds = array<i64: 56, 1>}, {transform_indices = @transform_12, window_bounds = array<i64: 1, 56, 128>}]} {
    %c0 = arith.constant 0 : index
    %c0_0 = arith.constant 0 : index
    %c0_1 = arith.constant 0 : index
    %0 = vector.load %arg3[%c0, %c0_0, %c0_1] : memref<1x1x512xf32, #tpu.memory_space<vmem>>, vector<1x1x512xf32>
    %1 = vector.shape_cast %0 : vector<1x1x512xf32> to vector<1x512xf32>
    %c0_2 = arith.constant 0 : index
    %c0_3 = arith.constant 0 : index
    %2 = vector.load %arg4[%c0_2, %c0_3] : memref<4x512xf32, #tpu.memory_space<vmem>>, vector<1x512xf32>
    %3 = arith.mulf %1, %2 : vector<1x512xf32>
    %c1 = arith.constant 1 : index
    %c0_4 = arith.constant 0 : index
    %4 = vector.load %arg4[%c1, %c0_4] : memref<4x512xf32, #tpu.memory_space<vmem>>, vector<1x512xf32>
    %5 = arith.mulf %1, %4 : vector<1x512xf32>
    %c2 = arith.constant 2 : index
    %c0_5 = arith.constant 0 : index
    %6 = vector.load %arg4[%c2, %c0_5] : memref<4x512xf32, #tpu.memory_space<vmem>>, vector<1x512xf32>
    %7 = arith.mulf %1, %6 : vector<1x512xf32>
    %c3 = arith.constant 3 : index
    %c0_6 = arith.constant 0 : index
    %8 = vector.load %arg4[%c3, %c0_6] : memref<4x512xf32, #tpu.memory_space<vmem>>, vector<1x512xf32>
    %9 = arith.mulf %1, %8 : vector<1x512xf32>
    %10 = vector.extract_strided_slice %3 {offsets = [0, 94], sizes = [1, 320], strides = [1, 1]} : vector<1x512xf32> to vector<1x320xf32>
    %c0_7 = arith.constant 0 : index
    %c0_8 = arith.constant 0 : index
    %11 = vector.load %arg16[%c0_7, %c0_8] : memref<108x320xf32, #tpu.memory_space<vmem>>, vector<1x320xf32>
    tpu.vector_store %arg16[%c0_7, %c0_8], %10 {strides = array<i32>} : memref<108x320xf32, #tpu.memory_space<vmem>>, vector<1x320xf32>,
    %12 = vector.extract_strided_slice %5 {offsets = [0, 95], sizes = [1, 320], strides = [1, 1]} : vector<1x512xf32> to vector<1x320xf32>
    %c1_9 = arith.constant 1 : index
    %c0_10 = arith.constant 0 : index
    %13 = vector.load %arg16[%c1_9, %c0_10] : memref<108x320xf32, #tpu.memory_space<vmem>>, vector<1x320xf32>
    tpu.vector_store %arg16[%c1_9, %c0_10], %12 {strides = array<i32>} : memref<108x320xf32, #tpu.memory_space<vmem>>, vector<1x320xf32>,
    %14 = vector.extract_strided_slice %1 {offsets = [0, 96], sizes = [1, 320], strides = [1, 1]} : vector<1x512xf32> to vector<1x320xf32>
    %c2_11 = arith.constant 2 : index
    %c0_12 = arith.constant 0 : index
    %15 = vector.load %arg16[%c2_11, %c0_12] : memref<108x320xf32, #tpu.memory_space<vmem>>, vector<1x320xf32>
    tpu.vector_store %arg16[%c2_11, %c0_12], %14 {strides = array<i32>} : memref<108x320xf32, #tpu.memory_space<vmem>>, vector<1x320xf32>,
    %16 = vector.extract_strided_slice %7 {offsets = [0, 97], sizes = [1, 320], strides = [1, 1]} : vector<1x512xf32> to vector<1x320xf32>
    %c3_13 = arith.constant 3 : index
    %c0_14 = arith.constant 0 : index
    %17 = vector.load %arg16[%c3_13, %c0_14] : memref<108x320xf32, #tpu.memory_space<vmem>>, vector<1x320xf32>
    tpu.vector_store %arg16[%c3_13, %c0_14], %16 {strides = array<i32>} : memref<108x320xf32, #tpu.memory_space<vmem>>, vector<1x320xf32>,
    %18 = vector.extract_strided_slice %9 {offsets = [0, 98], sizes = [1, 320], strides = [1, 1]} : vector<1x512xf32> to vector<1x320xf32>
    %c4 = arith.constant 4 : index
    %c0_15 = arith.constant 0 : index
    %19 = vector.load %arg16[%c4, %c0_15] : memref<108x320xf32, #tpu.memory_space<vmem>>, vector<1x320xf32>
    tpu.vector_store %arg16[%c4, %c0_15], %18 {strides = array<i32>} : memref<108x320xf32, #tpu.memory_space<vmem>>, vector<1x320xf32>,
    %20 = vector.extract_strided_slice %3 {offsets = [0, 110], sizes = [1, 320], strides = [1, 1]} : vector<1x512xf32> to vector<1x320xf32>
    %c5 = arith.constant 5 : index
    %c0_16 = arith.constant 0 : index
    %21 = vector.load %arg16[%c5, %c0_16] : memref<108x320xf32, #tpu.memory_space<vmem>>, vector<1x320xf32>
    tpu.vector_store %arg16[%c5, %c0_16], %20 {strides = array<i32>} : memref<108x320xf32, #tpu.memory_space<vmem>>, vector<1x320xf32>,
    %22 = vector.extract_strided_slice %5 {offsets = [0, 111], sizes = [1, 320], strides = [1, 1]} : vector<1x512xf32> to vector<1x320xf32>
    %c6 = arith.constant 6 : index
    %c0_17 = arith.constant 0 : index
    %23 = vector.load %arg16[%c6, %c0_17] : memref<108x320xf32, #tpu.memory_space<vmem>>, vector<1x320xf32>
    tpu.vector_store %arg16[%c6, %c0_17], %22 {strides = array<i32>} : memref<108x320xf32, #tpu.memory_space<vmem>>, vector<1x320xf32>,
    %24 = vector.extract_strided_slice %1 {offsets = [0, 112], sizes = [1, 320], strides = [1, 1]} : vector<1x512xf32> to vector<1x320xf32>
    %c7 = arith.constant 7 : index
    %c0_18 = arith.constant 0 : index
    %25 = vector.load %arg16[%c7, %c0_18] : memref<108x320xf32, #tpu.memory_space<vmem>>, vector<1x320xf32>
    tpu.vector_store %arg16[%c7, %c0_18], %24 {strides = array<i32>} : memref<108x320xf32, #tpu.memory_space<vmem>>, vector<1x320xf32>,
    %26 = vector.extract_strided_slice %7 {offsets = [0, 113], sizes = [1, 320], strides = [1, 1]} : vector<1x512xf32> to vector<1x320xf32>
    %c8 = arith.constant 8 : index
    %c0_19 = arith.constant 0 : index
    %27 = vector.load %arg16[%c8, %c0_19] : memref<108x320xf32, #tpu.memory_space<vmem>>, vector<1x320xf32>
    tpu.vector_store %arg16[%c8, %c0_19], %26 {strides = array<i32>} : memref<108x320xf32, #tpu.memory_space<vmem>>, vector<1x320xf32>,
    %28 = vector.extract_strided_slice %9 {offsets = [0, 114], sizes = [1, 320], strides = [1, 1]} : vector<1x512xf32> to vector<1x320xf32>
    %c9 = arith.constant 9 : index
    %c0_20 = arith.constant 0 : index
    %29 = vector.load %arg16[%c9, %c0_20] : memref<108x320xf32, #tpu.memory_space<vmem>>, vector<1x320xf32>
    tpu.vector_store %arg16[%c9, %c0_20], %28 {strides = array<i32>} : memref<108x320xf32, #tpu.memory_space<vmem>>, vector<1x320xf32>,
    %30 = vector.extract_strided_slice %3 {offsets = [0, 126], sizes = [1, 320], strides = [1, 1]} : vector<1x512xf32> to vector<1x320xf32>
    %c10 = arith.constant 10 : index
    %c0_21 = arith.constant 0 : index
    %31 = vector.load %arg16[%c10, %c0_21] : memref<108x320xf32, #tpu.memory_space<vmem>>, vector<1x320xf32>
    tpu.vector_store %arg16[%c10, %c0_21], %30 {strides = array<i32>} : memref<108x320xf32, #tpu.memory_space<vmem>>, vector<1x320xf32>,
    %32 = vector.extract_strided_slice %5 {offsets = [0, 127], sizes = [1, 320], strides = [1, 1]} : vector<1x512xf32> to vector<1x320xf32>
    %c11 = arith.constant 11 : index
    %c0_22 = arith.constant 0 : index
    %33 = vector.load %arg16[%c11, %c0_22] : memref<108x320xf32, #tpu.memory_space<vmem>>, vector<1x320xf32>
    tpu.vector_store %arg16[%c11, %c0_22], %32 {strides = array<i32>} : memref<108x320xf32, #tpu.memory_space<vmem>>, vector<1x320xf32>,
    %34 = vector.extract_strided_slice %1 {offsets = [0, 128], sizes = [1, 320], strides = [1, 1]} : vector<1x512xf32> to vector<1x320xf32>
    %c12 = arith.constant 12 : index
    %c0_23 = arith.constant 0 : index
    %35 = vector.load %arg16[%c12, %c0_23] : memref<108x320xf32, #tpu.memory_space<vmem>>, vector<1x320xf32>
    tpu.vector_store %arg16[%c12, %c0_23], %34 {strides = array<i32>} : memref<108x320xf32, #tpu.memory_space<vmem>>, vector<1x320xf32>,
    %36 = vector.extract_strided_slice %7 {offsets = [0, 129], sizes = [1, 320], strides = [1, 1]} : vector<1x512xf32> to vector<1x320xf32>
    %c13 = arith.constant 13 : index
    %c0_24 = arith.constant 0 : index
    %37 = vector.load %arg16[%c13, %c0_24] : memref<108x320xf32, #tpu.memory_space<vmem>>, vector<1x320xf32>
    tpu.vector_store %arg16[%c13, %c0_24], %36 {strides = array<i32>} : memref<108x320xf32, #tpu.memory_space<vmem>>, vector<1x320xf32>,
    %38 = vector.extract_strided_slice %9 {offsets = [0, 130], sizes = [1, 320], strides = [1, 1]} : vector<1x512xf32> to vector<1x320xf32>
    %c14 = arith.constant 14 : index
    %c0_25 = arith.constant 0 : index
    %39 = vector.load %arg16[%c14, %c0_25] : memref<108x320xf32, #tpu.memory_space<vmem>>, vector<1x320xf32>
    tpu.vector_store %arg16[%c14, %c0_25], %38 {strides = array<i32>} : memref<108x320xf32, #tpu.memory_space<vmem>>, vector<1x320xf32>,
    %40 = vector.extract_strided_slice %3 {offsets = [0, 142], sizes = [1, 320], strides = [1, 1]} : vector<1x512xf32> to vector<1x320xf32>
    %c15 = arith.constant 15 : index
    %c0_26 = arith.constant 0 : index
    %41 = vector.load %arg16[%c15, %c0_26] : memref<108x320xf32, #tpu.memory_space<vmem>>, vector<1x320xf32>
    tpu.vector_store %arg16[%c15, %c0_26], %40 {strides = array<i32>} : memref<108x320xf32, #tpu.memory_space<vmem>>, vector<1x320xf32>,
    %42 = vector.extract_strided_slice %5 {offsets = [0, 143], sizes = [1, 320], strides = [1, 1]} : vector<1x512xf32> to vector<1x320xf32>
    %c16 = arith.constant 16 : index
    %c0_27 = arith.constant 0 : index
    %43 = vector.load %arg16[%c16, %c0_27] : memref<108x320xf32, #tpu.memory_space<vmem>>, vector<1x320xf32>
    tpu.vector_store %arg16[%c16, %c0_27], %42 {strides = array<i32>} : memref<108x320xf32, #tpu.memory_space<vmem>>, vector<1x320xf32>,
    %44 = vector.extract_strided_slice %1 {offsets = [0, 144], sizes = [1, 320], strides = [1, 1]} : vector<1x512xf32> to vector<1x320xf32>
    %c17 = arith.constant 17 : index
    %c0_28 = arith.constant 0 : index
    %45 = vector.load %arg16[%c17, %c0_28] : memref<108x320xf32, #tpu.memory_space<vmem>>, vector<1x320xf32>
    tpu.vector_store %arg16[%c17, %c0_28], %44 {strides = array<i32>} : memref<108x320xf32, #tpu.memory_space<vmem>>, vector<1x320xf32>,
    %46 = vector.extract_strided_slice %7 {offsets = [0, 145], sizes = [1, 320], strides = [1, 1]} : vector<1x512xf32> to vector<1x320xf32>
    %c18 = arith.constant 18 : index
    %c0_29 = arith.constant 0 : index
    %47 = vector.load %arg16[%c18, %c0_29] : memref<108x320xf32, #tpu.memory_space<vmem>>, vector<1x320xf32>
    tpu.vector_store %arg16[%c18, %c0_29], %46 {strides = array<i32>} : memref<108x320xf32, #tpu.memory_space<vmem>>, vector<1x320xf32>,
    %48 = vector.extract_strided_slice %9 {offsets = [0, 146], sizes = [1, 320], strides = [1, 1]} : vector<1x512xf32> to vector<1x320xf32>
    %c19 = arith.constant 19 : index
    %c0_30 = arith.constant 0 : index
    %49 = vector.load %arg16[%c19, %c0_30] : memref<108x320xf32, #tpu.memory_space<vmem>>, vector<1x320xf32>
    tpu.vector_store %arg16[%c19, %c0_30], %48 {strides = array<i32>} : memref<108x320xf32, #tpu.memory_space<vmem>>, vector<1x320xf32>,
    %50 = vector.extract_strided_slice %3 {offsets = [0, 158], sizes = [1, 320], strides = [1, 1]} : vector<1x512xf32> to vector<1x320xf32>
    %c20 = arith.constant 20 : index
    %c0_31 = arith.constant 0 : index
    %51 = vector.load %arg16[%c20, %c0_31] : memref<108x320xf32, #tpu.memory_space<vmem>>, vector<1x320xf32>
    tpu.vector_store %arg16[%c20, %c0_31], %50 {strides = array<i32>} : memref<108x320xf32, #tpu.memory_space<vmem>>, vector<1x320xf32>,
    %52 = vector.extract_strided_slice %5 {offsets = [0, 159], sizes = [1, 320], strides = [1, 1]} : vector<1x512xf32> to vector<1x320xf32>
    %c21 = arith.constant 21 : index
    %c0_32 = arith.constant 0 : index
    %53 = vector.load %arg16[%c21, %c0_32] : memref<108x320xf32, #tpu.memory_space<vmem>>, vector<1x320xf32>
    tpu.vector_store %arg16[%c21, %c0_32], %52 {strides = array<i32>} : memref<108x320xf32, #tpu.memory_space<vmem>>, vector<1x320xf32>,
    %54 = vector.extract_strided_slice %1 {offsets = [0, 160], sizes = [1, 320], strides = [1, 1]} : vector<1x512xf32> to vector<1x320xf32>
    %c22 = arith.constant 22 : index
    %c0_33 = arith.constant 0 : index
    %55 = vector.load %arg16[%c22, %c0_33] : memref<108x320xf32, #tpu.memory_space<vmem>>, vector<1x320xf32>
    tpu.vector_store %arg16[%c22, %c0_33], %54 {strides = array<i32>} : memref<108x320xf32, #tpu.memory_space<vmem>>, vector<1x320xf32>,
    %56 = vector.extract_strided_slice %7 {offsets = [0, 161], sizes = [1, 320], strides = [1, 1]} : vector<1x512xf32> to vector<1x320xf32>
    %c23 = arith.constant 23 : index
    %c0_34 = arith.constant 0 : index
    %57 = vector.load %arg16[%c23, %c0_34] : memref<108x320xf32, #tpu.memory_space<vmem>>, vector<1x320xf32>
    tpu.vector_store %arg16[%c23, %c0_34], %56 {strides = array<i32>} : memref<108x320xf32, #tpu.memory_space<vmem>>, vector<1x320xf32>,
    %58 = vector.extract_strided_slice %9 {offsets = [0, 162], sizes = [1, 320], strides = [1, 1]} : vector<1x512xf32> to vector<1x320xf32>
    %c24 = arith.constant 24 : index
    %c0_35 = arith.constant 0 : index
    %59 = vector.load %arg16[%c24, %c0_35] : memref<108x320xf32, #tpu.memory_space<vmem>>, vector<1x320xf32>
    tpu.vector_store %arg16[%c24, %c0_35], %58 {strides = array<i32>} : memref<108x320xf32, #tpu.memory_space<vmem>>, vector<1x320xf32>,
    %c0_36 = arith.constant 0 : index
    %c0_37 = arith.constant 0 : index
    %60 = vector.load %arg6[%c0_36, %c0_37] : memref<56x25xbf16, #tpu.memory_space<vmem>>, vector<56x25xbf16>
    %c0_38 = arith.constant 0 : index
    %c0_39 = arith.constant 0 : index
    %61 = vector.load %arg16[%c0_38, %c0_39] : memref<108x320xf32, #tpu.memory_space<vmem>>, vector<25x320xf32>
    %62 = arith.truncf %61 : vector<25x320xf32> to vector<25x320xbf16>
    %cst = arith.constant dense<0.000000e+00> : vector<56x320xf32>
    %63 = tpu.matmul %60, %62, %cst {dimension_numbers = #tpu.dot_dimension_numbers<[1], [0], [0], [1], [0, 0, 1, 1], [], []>} : vector<56x25xbf16>, vector<25x320xbf16>, vector<56x320xf32> -> vector<56x320xf32>
    %c0_40 = arith.constant 0 : index
    %c0_41 = arith.constant 0 : index
    %64 = vector.load %arg7[%c0_40, %c0_41] : memref<56x1xf32, #tpu.memory_space<vmem>>, vector<56x1xf32>
    %65 = vector.broadcast %64 : vector<56x1xf32> to vector<56x320xf32>
    %66 = arith.addf %63, %65 : vector<56x320xf32>
    %c0_42 = arith.constant 0 : index
    %c0_43 = arith.constant 0 : index
    %67 = vector.load %arg2[%c0_42, %c0_43] : memref<1x8xf32, #tpu.memory_space<vmem>>, vector<1x1xf32>
    %cst_44 = arith.constant 0.000000e+00 : f32
    %68 = vector.broadcast %cst_44 : f32 to vector<56x320xf32>
    %69 = arith.cmpf oge, %66, %68 : vector<56x320xf32>
    %70 = vector.broadcast %67 : vector<1x1xf32> to vector<56x320xf32>
    %71 = arith.mulf %70, %66 : vector<56x320xf32>
    %72 = arith.select %69, %66, %71 : vector<56x320xi1>, vector<56x320xf32>
    %c0_45 = arith.constant 0 : index
    %c0_46 = arith.constant 0 : index
    %73 = vector.load %arg8[%c0_45, %c0_46] : memref<12x56xbf16, #tpu.memory_space<vmem>>, vector<12x56xbf16>
    %74 = arith.truncf %72 : vector<56x320xf32> to vector<56x320xbf16>
    %cst_47 = arith.constant dense<0.000000e+00> : vector<12x320xf32>
    %75 = tpu.matmul %73, %74, %cst_47 {dimension_numbers = #tpu.dot_dimension_numbers<[1], [0], [0], [1], [0, 0, 1, 1], [], []>} : vector<12x56xbf16>, vector<56x320xbf16>, vector<12x320xf32> -> vector<12x320xf32>
    %c0_48 = arith.constant 0 : index
    %c0_49 = arith.constant 0 : index
    %76 = vector.load %arg9[%c0_48, %c0_49] : memref<12x1xf32, #tpu.memory_space<vmem>>, vector<12x1xf32>
    %77 = vector.broadcast %76 : vector<12x1xf32> to vector<12x320xf32>
    %78 = arith.addf %75, %77 : vector<12x320xf32>
    %c0_50 = arith.constant 0 : index
    %c1_51 = arith.constant 1 : index
    %79 = vector.load %arg2[%c0_50, %c1_51] : memref<1x8xf32, #tpu.memory_space<vmem>>, vector<1x1xf32>
    %cst_52 = arith.constant 0.000000e+00 : f32
    %80 = vector.broadcast %cst_52 : f32 to vector<12x320xf32>
    %81 = arith.cmpf oge, %78, %80 : vector<12x320xf32>
    %82 = vector.broadcast %79 : vector<1x1xf32> to vector<12x320xf32>
    %83 = arith.mulf %82, %78 : vector<12x320xf32>
    %84 = arith.select %81, %78, %83 : vector<12x320xi1>, vector<12x320xf32>
    %c8_i32 = arith.constant 8 : i32
    %85 = arith.muli %arg1, %c8_i32 : i32
    %c6_i32 = arith.constant 6 : i32
    %86 = arith.subi %85, %c6_i32 : i32
    %c0_i32 = arith.constant 0 : i32
    %87 = arith.subi %c0_i32, %86 : i32
    %c0_i32_53 = arith.constant 0 : i32
    %88 = arith.maxsi %c0_i32_53, %87 : i32
    %c16_i32 = arith.constant 16 : i32
    %89 = arith.muli %88, %c16_i32 : i32
    %c16_i32_54 = arith.constant 16 : i32
    %90 = arith.subi %c16_i32_54, %86 : i32
    %c20_i32 = arith.constant 20 : i32
    %91 = arith.minsi %c20_i32, %90 : i32
    %c16_i32_55 = arith.constant 16 : i32
    %92 = arith.muli %91, %c16_i32_55 : i32
    %93 = tpu.iota {dimensions = array<i32: 1>} : vector<1x320xi32>
    %94 = vector.broadcast %89 : i32 to vector<1x320xi32>
    %95 = arith.cmpi sge, %93, %94 : vector<1x320xi32>
    %96 = vector.broadcast %92 : i32 to vector<1x320xi32>
    %97 = arith.cmpi slt, %93, %96 : vector<1x320xi32>
    %98 = arith.andi %95, %97 : vector<1x320xi1>
    %cst_56 = arith.constant 0.000000e+00 : f32
    %99 = vector.broadcast %cst_56 : f32 to vector<12x512xf32>
    %c0_57 = arith.constant 0 : index
    %c0_58 = arith.constant 0 : index
    %100 = vector.load %arg15[%c0_57, %c0_58] : memref<12x512xf32, #tpu.memory_space<vmem>>, vector<12x512xf32>
    tpu.vector_store %arg15[%c0_57, %c0_58], %99 {strides = array<i32>} : memref<12x512xf32, #tpu.memory_space<vmem>>, vector<12x512xf32>,
    %cst_59 = arith.constant 0.000000e+00 : f32
    %101 = vector.shape_cast %98 : vector<1x320xi1> to vector<1x320xi1>
    %102 = vector.broadcast %101 : vector<1x320xi1> to vector<12x320xi1>
    %103 = vector.broadcast %cst_59 : f32 to vector<12x320xf32>
    %104 = arith.select %102, %84, %103 : vector<12x320xi1>, vector<12x320xf32>
    %c0_60 = arith.constant 0 : index
    %c128 = arith.constant 128 : index
    %105 = vector.load %arg15[%c0_60, %c128] : memref<12x512xf32, #tpu.memory_space<vmem>>, vector<12x320xf32>
    tpu.vector_store %arg15[%c0_60, %c128], %104 {strides = array<i32>} : memref<12x512xf32, #tpu.memory_space<vmem>>, vector<12x320xf32>,
    %c0_61 = arith.constant 0 : index
    %c0_62 = arith.constant 0 : index
    %106 = vector.load %arg15[%c0_61, %c0_62] : memref<12x512xf32, #tpu.memory_space<vmem>>, vector<12x512xf32>
    %c0_63 = arith.constant 0 : index
    %c0_64 = arith.constant 0 : index
    %107 = vector.load %arg5[%c0_63, %c0_64] : memref<2x512xf32, #tpu.memory_space<vmem>>, vector<1x512xf32>
    %108 = vector.broadcast %107 : vector<1x512xf32> to vector<12x512xf32>
    %109 = arith.mulf %106, %108 : vector<12x512xf32>
    %c1_65 = arith.constant 1 : index
    %c0_66 = arith.constant 0 : index
    %110 = vector.load %arg5[%c1_65, %c0_66] : memref<2x512xf32, #tpu.memory_space<vmem>>, vector<1x512xf32>
    %111 = vector.broadcast %110 : vector<1x512xf32> to vector<12x512xf32>
    %112 = arith.mulf %106, %111 : vector<12x512xf32>
    %113 = vector.extract_strided_slice %109 {offsets = [0, 111], sizes = [12, 320], strides = [1, 1]} : vector<12x512xf32> to vector<12x320xf32>
    %c0_67 = arith.constant 0 : index
    %c0_68 = arith.constant 0 : index
    %114 = vector.load %arg16[%c0_67, %c0_68] : memref<108x320xf32, #tpu.memory_space<vmem>>, vector<12x320xf32>
    tpu.vector_store %arg16[%c0_67, %c0_68], %113 {strides = array<i32>} : memref<108x320xf32, #tpu.memory_space<vmem>>, vector<12x320xf32>,
    %115 = vector.extract_strided_slice %106 {offsets = [0, 112], sizes = [12, 320], strides = [1, 1]} : vector<12x512xf32> to vector<12x320xf32>
    %c12_69 = arith.constant 12 : index
    %c0_70 = arith.constant 0 : index
    %116 = vector.load %arg16[%c12_69, %c0_70] : memref<108x320xf32, #tpu.memory_space<vmem>>, vector<12x320xf32>
    tpu.vector_store %arg16[%c12_69, %c0_70], %115 {strides = array<i32>} : memref<108x320xf32, #tpu.memory_space<vmem>>, vector<12x320xf32>,
    %117 = vector.extract_strided_slice %112 {offsets = [0, 113], sizes = [12, 320], strides = [1, 1]} : vector<12x512xf32> to vector<12x320xf32>
    %c24_71 = arith.constant 24 : index
    %c0_72 = arith.constant 0 : index
    %118 = vector.load %arg16[%c24_71, %c0_72] : memref<108x320xf32, #tpu.memory_space<vmem>>, vector<12x320xf32>
    tpu.vector_store %arg16[%c24_71, %c0_72], %117 {strides = array<i32>} : memref<108x320xf32, #tpu.memory_space<vmem>>, vector<12x320xf32>,
    %119 = vector.extract_strided_slice %109 {offsets = [0, 127], sizes = [12, 320], strides = [1, 1]} : vector<12x512xf32> to vector<12x320xf32>
    %c36 = arith.constant 36 : index
    %c0_73 = arith.constant 0 : index
    %120 = vector.load %arg16[%c36, %c0_73] : memref<108x320xf32, #tpu.memory_space<vmem>>, vector<12x320xf32>
    tpu.vector_store %arg16[%c36, %c0_73], %119 {strides = array<i32>} : memref<108x320xf32, #tpu.memory_space<vmem>>, vector<12x320xf32>,
    %121 = vector.extract_strided_slice %106 {offsets = [0, 128], sizes = [12, 320], strides = [1, 1]} : vector<12x512xf32> to vector<12x320xf32>
    %c48 = arith.constant 48 : index
    %c0_74 = arith.constant 0 : index
    %122 = vector.load %arg16[%c48, %c0_74] : memref<108x320xf32, #tpu.memory_space<vmem>>, vector<12x320xf32>
    tpu.vector_store %arg16[%c48, %c0_74], %121 {strides = array<i32>} : memref<108x320xf32, #tpu.memory_space<vmem>>, vector<12x320xf32>,
    %123 = vector.extract_strided_slice %112 {offsets = [0, 129], sizes = [12, 320], strides = [1, 1]} : vector<12x512xf32> to vector<12x320xf32>
    %c60 = arith.constant 60 : index
    %c0_75 = arith.constant 0 : index
    %124 = vector.load %arg16[%c60, %c0_75] : memref<108x320xf32, #tpu.memory_space<vmem>>, vector<12x320xf32>
    tpu.vector_store %arg16[%c60, %c0_75], %123 {strides = array<i32>} : memref<108x320xf32, #tpu.memory_space<vmem>>, vector<12x320xf32>,
    %125 = vector.extract_strided_slice %109 {offsets = [0, 143], sizes = [12, 320], strides = [1, 1]} : vector<12x512xf32> to vector<12x320xf32>
    %c72 = arith.constant 72 : index
    %c0_76 = arith.constant 0 : index
    %126 = vector.load %arg16[%c72, %c0_76] : memref<108x320xf32, #tpu.memory_space<vmem>>, vector<12x320xf32>
    tpu.vector_store %arg16[%c72, %c0_76], %125 {strides = array<i32>} : memref<108x320xf32, #tpu.memory_space<vmem>>, vector<12x320xf32>,
    %127 = vector.extract_strided_slice %106 {offsets = [0, 144], sizes = [12, 320], strides = [1, 1]} : vector<12x512xf32> to vector<12x320xf32>
    %c84 = arith.constant 84 : index
    %c0_77 = arith.constant 0 : index
    %128 = vector.load %arg16[%c84, %c0_77] : memref<108x320xf32, #tpu.memory_space<vmem>>, vector<12x320xf32>
    tpu.vector_store %arg16[%c84, %c0_77], %127 {strides = array<i32>} : memref<108x320xf32, #tpu.memory_space<vmem>>, vector<12x320xf32>,
    %129 = vector.extract_strided_slice %112 {offsets = [0, 145], sizes = [12, 320], strides = [1, 1]} : vector<12x512xf32> to vector<12x320xf32>
    %c96 = arith.constant 96 : index
    %c0_78 = arith.constant 0 : index
    %130 = vector.load %arg16[%c96, %c0_78] : memref<108x320xf32, #tpu.memory_space<vmem>>, vector<12x320xf32>
    tpu.vector_store %arg16[%c96, %c0_78], %129 {strides = array<i32>} : memref<108x320xf32, #tpu.memory_space<vmem>>, vector<12x320xf32>,
    %c0_79 = arith.constant 0 : index
    %c0_80 = arith.constant 0 : index
    %c0_81 = arith.constant 0 : index
    %131 = vector.load %arg10[%c0_79, %c0_80, %c0_81] : memref<4x12x108xbf16, #tpu.memory_space<vmem>>, vector<1x12x108xbf16>
    %132 = vector.shape_cast %131 : vector<1x12x108xbf16> to vector<12x108xbf16>
    %c0_82 = arith.constant 0 : index
    %c0_83 = arith.constant 0 : index
    %133 = vector.load %arg16[%c0_82, %c0_83] : memref<108x320xf32, #tpu.memory_space<vmem>>, vector<108x320xf32>
    %134 = arith.truncf %133 : vector<108x320xf32> to vector<108x320xbf16>
    %cst_84 = arith.constant dense<0.000000e+00> : vector<12x320xf32>
    %135 = tpu.matmul %132, %134, %cst_84 {dimension_numbers = #tpu.dot_dimension_numbers<[1], [0], [0], [1], [0, 0, 1, 1], [], []>} : vector<12x108xbf16>, vector<108x320xbf16>, vector<12x320xf32> -> vector<12x320xf32>
    %c0_85 = arith.constant 0 : index
    %c0_86 = arith.constant 0 : index
    %c0_87 = arith.constant 0 : index
    %136 = vector.load %arg11[%c0_85, %c0_86, %c0_87] : memref<4x12x1xf32, #tpu.memory_space<vmem>>, vector<1x12x1xf32>
    %137 = vector.shape_cast %136 : vector<1x12x1xf32> to vector<12x1xf32>
    %138 = vector.broadcast %137 : vector<12x1xf32> to vector<12x320xf32>
    %139 = arith.addf %135, %138 : vector<12x320xf32>
    %c0_88 = arith.constant 0 : index
    %c2_89 = arith.constant 2 : index
    %140 = vector.load %arg2[%c0_88, %c2_89] : memref<1x8xf32, #tpu.memory_space<vmem>>, vector<1x1xf32>
    %cst_90 = arith.constant 0.000000e+00 : f32
    %141 = vector.broadcast %cst_90 : f32 to vector<12x320xf32>
    %142 = arith.cmpf oge, %139, %141 : vector<12x320xf32>
    %143 = vector.broadcast %140 : vector<1x1xf32> to vector<12x320xf32>
    %144 = arith.mulf %143, %139 : vector<12x320xf32>
    %145 = arith.select %142, %139, %144 : vector<12x320xi1>, vector<12x320xf32>
    %cst_91 = arith.constant 0.000000e+00 : f32
    %146 = vector.shape_cast %98 : vector<1x320xi1> to vector<1x320xi1>
    %147 = vector.broadcast %146 : vector<1x320xi1> to vector<12x320xi1>
    %148 = vector.broadcast %cst_91 : f32 to vector<12x320xf32>
    %149 = arith.select %147, %145, %148 : vector<12x320xi1>, vector<12x320xf32>
    %c0_92 = arith.constant 0 : index
    %c128_93 = arith.constant 128 : index
    %150 = vector.load %arg15[%c0_92, %c128_93] : memref<12x512xf32, #tpu.memory_space<vmem>>, vector<12x320xf32>
    tpu.vector_store %arg15[%c0_92, %c128_93], %149 {strides = array<i32>} : memref<12x512xf32, #tpu.memory_space<vmem>>, vector<12x320xf32>,
    %c0_94 = arith.constant 0 : index
    %c0_95 = arith.constant 0 : index
    %151 = vector.load %arg15[%c0_94, %c0_95] : memref<12x512xf32, #tpu.memory_space<vmem>>, vector<12x512xf32>
    %c0_96 = arith.constant 0 : index
    %c0_97 = arith.constant 0 : index
    %152 = vector.load %arg5[%c0_96, %c0_97] : memref<2x512xf32, #tpu.memory_space<vmem>>, vector<1x512xf32>
    %153 = vector.broadcast %152 : vector<1x512xf32> to vector<12x512xf32>
    %154 = arith.mulf %151, %153 : vector<12x512xf32>
    %c1_98 = arith.constant 1 : index
    %c0_99 = arith.constant 0 : index
    %155 = vector.load %arg5[%c1_98, %c0_99] : memref<2x512xf32, #tpu.memory_space<vmem>>, vector<1x512xf32>
    %156 = vector.broadcast %155 : vector<1x512xf32> to vector<12x512xf32>
    %157 = arith.mulf %151, %156 : vector<12x512xf32>
    %158 = vector.extract_strided_slice %154 {offsets = [0, 111], sizes = [12, 320], strides = [1, 1]} : vector<12x512xf32> to vector<12x320xf32>
    %c0_100 = arith.constant 0 : index
    %c0_101 = arith.constant 0 : index
    %159 = vector.load %arg16[%c0_100, %c0_101] : memref<108x320xf32, #tpu.memory_space<vmem>>, vector<12x320xf32>
    tpu.vector_store %arg16[%c0_100, %c0_101], %158 {strides = array<i32>} : memref<108x320xf32, #tpu.memory_space<vmem>>, vector<12x320xf32>,
    %160 = vector.extract_strided_slice %151 {offsets = [0, 112], sizes = [12, 320], strides = [1, 1]} : vector<12x512xf32> to vector<12x320xf32>
    %c12_102 = arith.constant 12 : index
    %c0_103 = arith.constant 0 : index
    %161 = vector.load %arg16[%c12_102, %c0_103] : memref<108x320xf32, #tpu.memory_space<vmem>>, vector<12x320xf32>
    tpu.vector_store %arg16[%c12_102, %c0_103], %160 {strides = array<i32>} : memref<108x320xf32, #tpu.memory_space<vmem>>, vector<12x320xf32>,
    %162 = vector.extract_strided_slice %157 {offsets = [0, 113], sizes = [12, 320], strides = [1, 1]} : vector<12x512xf32> to vector<12x320xf32>
    %c24_104 = arith.constant 24 : index
    %c0_105 = arith.constant 0 : index
    %163 = vector.load %arg16[%c24_104, %c0_105] : memref<108x320xf32, #tpu.memory_space<vmem>>, vector<12x320xf32>
    tpu.vector_store %arg16[%c24_104, %c0_105], %162 {strides = array<i32>} : memref<108x320xf32, #tpu.memory_space<vmem>>, vector<12x320xf32>,
    %164 = vector.extract_strided_slice %154 {offsets = [0, 127], sizes = [12, 320], strides = [1, 1]} : vector<12x512xf32> to vector<12x320xf32>
    %c36_106 = arith.constant 36 : index
    %c0_107 = arith.constant 0 : index
    %165 = vector.load %arg16[%c36_106, %c0_107] : memref<108x320xf32, #tpu.memory_space<vmem>>, vector<12x320xf32>
    tpu.vector_store %arg16[%c36_106, %c0_107], %164 {strides = array<i32>} : memref<108x320xf32, #tpu.memory_space<vmem>>, vector<12x320xf32>,
    %166 = vector.extract_strided_slice %151 {offsets = [0, 128], sizes = [12, 320], strides = [1, 1]} : vector<12x512xf32> to vector<12x320xf32>
    %c48_108 = arith.constant 48 : index
    %c0_109 = arith.constant 0 : index
    %167 = vector.load %arg16[%c48_108, %c0_109] : memref<108x320xf32, #tpu.memory_space<vmem>>, vector<12x320xf32>
    tpu.vector_store %arg16[%c48_108, %c0_109], %166 {strides = array<i32>} : memref<108x320xf32, #tpu.memory_space<vmem>>, vector<12x320xf32>,
    %168 = vector.extract_strided_slice %157 {offsets = [0, 129], sizes = [12, 320], strides = [1, 1]} : vector<12x512xf32> to vector<12x320xf32>
    %c60_110 = arith.constant 60 : index
    %c0_111 = arith.constant 0 : index
    %169 = vector.load %arg16[%c60_110, %c0_111] : memref<108x320xf32, #tpu.memory_space<vmem>>, vector<12x320xf32>
    tpu.vector_store %arg16[%c60_110, %c0_111], %168 {strides = array<i32>} : memref<108x320xf32, #tpu.memory_space<vmem>>, vector<12x320xf32>,
    %170 = vector.extract_strided_slice %154 {offsets = [0, 143], sizes = [12, 320], strides = [1, 1]} : vector<12x512xf32> to vector<12x320xf32>
    %c72_112 = arith.constant 72 : index
    %c0_113 = arith.constant 0 : index
    %171 = vector.load %arg16[%c72_112, %c0_113] : memref<108x320xf32, #tpu.memory_space<vmem>>, vector<12x320xf32>
    tpu.vector_store %arg16[%c72_112, %c0_113], %170 {strides = array<i32>} : memref<108x320xf32, #tpu.memory_space<vmem>>, vector<12x320xf32>,
    %172 = vector.extract_strided_slice %151 {offsets = [0, 144], sizes = [12, 320], strides = [1, 1]} : vector<12x512xf32> to vector<12x320xf32>
    %c84_114 = arith.constant 84 : index
    %c0_115 = arith.constant 0 : index
    %173 = vector.load %arg16[%c84_114, %c0_115] : memref<108x320xf32, #tpu.memory_space<vmem>>, vector<12x320xf32>
    tpu.vector_store %arg16[%c84_114, %c0_115], %172 {strides = array<i32>} : memref<108x320xf32, #tpu.memory_space<vmem>>, vector<12x320xf32>,
    %174 = vector.extract_strided_slice %157 {offsets = [0, 145], sizes = [12, 320], strides = [1, 1]} : vector<12x512xf32> to vector<12x320xf32>
    %c96_116 = arith.constant 96 : index
    %c0_117 = arith.constant 0 : index
    %175 = vector.load %arg16[%c96_116, %c0_117] : memref<108x320xf32, #tpu.memory_space<vmem>>, vector<12x320xf32>
    tpu.vector_store %arg16[%c96_116, %c0_117], %174 {strides = array<i32>} : memref<108x320xf32, #tpu.memory_space<vmem>>, vector<12x320xf32>,
    %c1_118 = arith.constant 1 : index
    %c0_119 = arith.constant 0 : index
    %c0_120 = arith.constant 0 : index
    %176 = vector.load %arg10[%c1_118, %c0_119, %c0_120] : memref<4x12x108xbf16, #tpu.memory_space<vmem>>, vector<1x12x108xbf16>
    %177 = vector.shape_cast %176 : vector<1x12x108xbf16> to vector<12x108xbf16>
    %c0_121 = arith.constant 0 : index
    %c0_122 = arith.constant 0 : index
    %178 = vector.load %arg16[%c0_121, %c0_122] : memref<108x320xf32, #tpu.memory_space<vmem>>, vector<108x320xf32>
    %179 = arith.truncf %178 : vector<108x320xf32> to vector<108x320xbf16>
    %cst_123 = arith.constant dense<0.000000e+00> : vector<12x320xf32>
    %180 = tpu.matmul %177, %179, %cst_123 {dimension_numbers = #tpu.dot_dimension_numbers<[1], [0], [0], [1], [0, 0, 1, 1], [], []>} : vector<12x108xbf16>, vector<108x320xbf16>, vector<12x320xf32> -> vector<12x320xf32>
    %c1_124 = arith.constant 1 : index
    %c0_125 = arith.constant 0 : index
    %c0_126 = arith.constant 0 : index
    %181 = vector.load %arg11[%c1_124, %c0_125, %c0_126] : memref<4x12x1xf32, #tpu.memory_space<vmem>>, vector<1x12x1xf32>
    %182 = vector.shape_cast %181 : vector<1x12x1xf32> to vector<12x1xf32>
    %183 = vector.broadcast %182 : vector<12x1xf32> to vector<12x320xf32>
    %184 = arith.addf %180, %183 : vector<12x320xf32>
    %c0_127 = arith.constant 0 : index
    %c3_128 = arith.constant 3 : index
    %185 = vector.load %arg2[%c0_127, %c3_128] : memref<1x8xf32, #tpu.memory_space<vmem>>, vector<1x1xf32>
    %cst_129 = arith.constant 0.000000e+00 : f32
    %186 = vector.broadcast %cst_129 : f32 to vector<12x320xf32>
    %187 = arith.cmpf oge, %184, %186 : vector<12x320xf32>
    %188 = vector.broadcast %185 : vector<1x1xf32> to vector<12x320xf32>
    %189 = arith.mulf %188, %184 : vector<12x320xf32>
    %190 = arith.select %187, %184, %189 : vector<12x320xi1>, vector<12x320xf32>
    %cst_130 = arith.constant 0.000000e+00 : f32
    %191 = vector.shape_cast %98 : vector<1x320xi1> to vector<1x320xi1>
    %192 = vector.broadcast %191 : vector<1x320xi1> to vector<12x320xi1>
    %193 = vector.broadcast %cst_130 : f32 to vector<12x320xf32>
    %194 = arith.select %192, %190, %193 : vector<12x320xi1>, vector<12x320xf32>
    %c0_131 = arith.constant 0 : index
    %c128_132 = arith.constant 128 : index
    %195 = vector.load %arg15[%c0_131, %c128_132] : memref<12x512xf32, #tpu.memory_space<vmem>>, vector<12x320xf32>
    tpu.vector_store %arg15[%c0_131, %c128_132], %194 {strides = array<i32>} : memref<12x512xf32, #tpu.memory_space<vmem>>, vector<12x320xf32>,
    %c0_133 = arith.constant 0 : index
    %c0_134 = arith.constant 0 : index
    %196 = vector.load %arg15[%c0_133, %c0_134] : memref<12x512xf32, #tpu.memory_space<vmem>>, vector<12x512xf32>
    %c0_135 = arith.constant 0 : index
    %c0_136 = arith.constant 0 : index
    %197 = vector.load %arg5[%c0_135, %c0_136] : memref<2x512xf32, #tpu.memory_space<vmem>>, vector<1x512xf32>
    %198 = vector.broadcast %197 : vector<1x512xf32> to vector<12x512xf32>
    %199 = arith.mulf %196, %198 : vector<12x512xf32>
    %c1_137 = arith.constant 1 : index
    %c0_138 = arith.constant 0 : index
    %200 = vector.load %arg5[%c1_137, %c0_138] : memref<2x512xf32, #tpu.memory_space<vmem>>, vector<1x512xf32>
    %201 = vector.broadcast %200 : vector<1x512xf32> to vector<12x512xf32>
    %202 = arith.mulf %196, %201 : vector<12x512xf32>
    %203 = vector.extract_strided_slice %199 {offsets = [0, 111], sizes = [12, 320], strides = [1, 1]} : vector<12x512xf32> to vector<12x320xf32>
    %c0_139 = arith.constant 0 : index
    %c0_140 = arith.constant 0 : index
    %204 = vector.load %arg16[%c0_139, %c0_140] : memref<108x320xf32, #tpu.memory_space<vmem>>, vector<12x320xf32>
    tpu.vector_store %arg16[%c0_139, %c0_140], %203 {strides = array<i32>} : memref<108x320xf32, #tpu.memory_space<vmem>>, vector<12x320xf32>,
    %205 = vector.extract_strided_slice %196 {offsets = [0, 112], sizes = [12, 320], strides = [1, 1]} : vector<12x512xf32> to vector<12x320xf32>
    %c12_141 = arith.constant 12 : index
    %c0_142 = arith.constant 0 : index
    %206 = vector.load %arg16[%c12_141, %c0_142] : memref<108x320xf32, #tpu.memory_space<vmem>>, vector<12x320xf32>
    tpu.vector_store %arg16[%c12_141, %c0_142], %205 {strides = array<i32>} : memref<108x320xf32, #tpu.memory_space<vmem>>, vector<12x320xf32>,
    %207 = vector.extract_strided_slice %202 {offsets = [0, 113], sizes = [12, 320], strides = [1, 1]} : vector<12x512xf32> to vector<12x320xf32>
    %c24_143 = arith.constant 24 : index
    %c0_144 = arith.constant 0 : index
    %208 = vector.load %arg16[%c24_143, %c0_144] : memref<108x320xf32, #tpu.memory_space<vmem>>, vector<12x320xf32>
    tpu.vector_store %arg16[%c24_143, %c0_144], %207 {strides = array<i32>} : memref<108x320xf32, #tpu.memory_space<vmem>>, vector<12x320xf32>,
    %209 = vector.extract_strided_slice %199 {offsets = [0, 127], sizes = [12, 320], strides = [1, 1]} : vector<12x512xf32> to vector<12x320xf32>
    %c36_145 = arith.constant 36 : index
    %c0_146 = arith.constant 0 : index
    %210 = vector.load %arg16[%c36_145, %c0_146] : memref<108x320xf32, #tpu.memory_space<vmem>>, vector<12x320xf32>
    tpu.vector_store %arg16[%c36_145, %c0_146], %209 {strides = array<i32>} : memref<108x320xf32, #tpu.memory_space<vmem>>, vector<12x320xf32>,
    %211 = vector.extract_strided_slice %196 {offsets = [0, 128], sizes = [12, 320], strides = [1, 1]} : vector<12x512xf32> to vector<12x320xf32>
    %c48_147 = arith.constant 48 : index
    %c0_148 = arith.constant 0 : index
    %212 = vector.load %arg16[%c48_147, %c0_148] : memref<108x320xf32, #tpu.memory_space<vmem>>, vector<12x320xf32>
    tpu.vector_store %arg16[%c48_147, %c0_148], %211 {strides = array<i32>} : memref<108x320xf32, #tpu.memory_space<vmem>>, vector<12x320xf32>,
    %213 = vector.extract_strided_slice %202 {offsets = [0, 129], sizes = [12, 320], strides = [1, 1]} : vector<12x512xf32> to vector<12x320xf32>
    %c60_149 = arith.constant 60 : index
    %c0_150 = arith.constant 0 : index
    %214 = vector.load %arg16[%c60_149, %c0_150] : memref<108x320xf32, #tpu.memory_space<vmem>>, vector<12x320xf32>
    tpu.vector_store %arg16[%c60_149, %c0_150], %213 {strides = array<i32>} : memref<108x320xf32, #tpu.memory_space<vmem>>, vector<12x320xf32>,
    %215 = vector.extract_strided_slice %199 {offsets = [0, 143], sizes = [12, 320], strides = [1, 1]} : vector<12x512xf32> to vector<12x320xf32>
    %c72_151 = arith.constant 72 : index
    %c0_152 = arith.constant 0 : index
    %216 = vector.load %arg16[%c72_151, %c0_152] : memref<108x320xf32, #tpu.memory_space<vmem>>, vector<12x320xf32>
    tpu.vector_store %arg16[%c72_151, %c0_152], %215 {strides = array<i32>} : memref<108x320xf32, #tpu.memory_space<vmem>>, vector<12x320xf32>,
    %217 = vector.extract_strided_slice %196 {offsets = [0, 144], sizes = [12, 320], strides = [1, 1]} : vector<12x512xf32> to vector<12x320xf32>
    %c84_153 = arith.constant 84 : index
    %c0_154 = arith.constant 0 : index
    %218 = vector.load %arg16[%c84_153, %c0_154] : memref<108x320xf32, #tpu.memory_space<vmem>>, vector<12x320xf32>
    tpu.vector_store %arg16[%c84_153, %c0_154], %217 {strides = array<i32>} : memref<108x320xf32, #tpu.memory_space<vmem>>, vector<12x320xf32>,
    %219 = vector.extract_strided_slice %202 {offsets = [0, 145], sizes = [12, 320], strides = [1, 1]} : vector<12x512xf32> to vector<12x320xf32>
    %c96_155 = arith.constant 96 : index
    %c0_156 = arith.constant 0 : index
    %220 = vector.load %arg16[%c96_155, %c0_156] : memref<108x320xf32, #tpu.memory_space<vmem>>, vector<12x320xf32>
    tpu.vector_store %arg16[%c96_155, %c0_156], %219 {strides = array<i32>} : memref<108x320xf32, #tpu.memory_space<vmem>>, vector<12x320xf32>,
    %c2_157 = arith.constant 2 : index
    %c0_158 = arith.constant 0 : index
    %c0_159 = arith.constant 0 : index
    %221 = vector.load %arg10[%c2_157, %c0_158, %c0_159] : memref<4x12x108xbf16, #tpu.memory_space<vmem>>, vector<1x12x108xbf16>
    %222 = vector.shape_cast %221 : vector<1x12x108xbf16> to vector<12x108xbf16>
    %c0_160 = arith.constant 0 : index
    %c0_161 = arith.constant 0 : index
    %223 = vector.load %arg16[%c0_160, %c0_161] : memref<108x320xf32, #tpu.memory_space<vmem>>, vector<108x320xf32>
    %224 = arith.truncf %223 : vector<108x320xf32> to vector<108x320xbf16>
    %cst_162 = arith.constant dense<0.000000e+00> : vector<12x320xf32>
    %225 = tpu.matmul %222, %224, %cst_162 {dimension_numbers = #tpu.dot_dimension_numbers<[1], [0], [0], [1], [0, 0, 1, 1], [], []>} : vector<12x108xbf16>, vector<108x320xbf16>, vector<12x320xf32> -> vector<12x320xf32>
    %c2_163 = arith.constant 2 : index
    %c0_164 = arith.constant 0 : index
    %c0_165 = arith.constant 0 : index
    %226 = vector.load %arg11[%c2_163, %c0_164, %c0_165] : memref<4x12x1xf32, #tpu.memory_space<vmem>>, vector<1x12x1xf32>
    %227 = vector.shape_cast %226 : vector<1x12x1xf32> to vector<12x1xf32>
    %228 = vector.broadcast %227 : vector<12x1xf32> to vector<12x320xf32>
    %229 = arith.addf %225, %228 : vector<12x320xf32>
    %c0_166 = arith.constant 0 : index
    %c4_167 = arith.constant 4 : index
    %230 = vector.load %arg2[%c0_166, %c4_167] : memref<1x8xf32, #tpu.memory_space<vmem>>, vector<1x1xf32>
    %cst_168 = arith.constant 0.000000e+00 : f32
    %231 = vector.broadcast %cst_168 : f32 to vector<12x320xf32>
    %232 = arith.cmpf oge, %229, %231 : vector<12x320xf32>
    %233 = vector.broadcast %230 : vector<1x1xf32> to vector<12x320xf32>
    %234 = arith.mulf %233, %229 : vector<12x320xf32>
    %235 = arith.select %232, %229, %234 : vector<12x320xi1>, vector<12x320xf32>
    %cst_169 = arith.constant 0.000000e+00 : f32
    %236 = vector.shape_cast %98 : vector<1x320xi1> to vector<1x320xi1>
    %237 = vector.broadcast %236 : vector<1x320xi1> to vector<12x320xi1>
    %238 = vector.broadcast %cst_169 : f32 to vector<12x320xf32>
    %239 = arith.select %237, %235, %238 : vector<12x320xi1>, vector<12x320xf32>
    %c0_170 = arith.constant 0 : index
    %c128_171 = arith.constant 128 : index
    %240 = vector.load %arg15[%c0_170, %c128_171] : memref<12x512xf32, #tpu.memory_space<vmem>>, vector<12x320xf32>
    tpu.vector_store %arg15[%c0_170, %c128_171], %239 {strides = array<i32>} : memref<12x512xf32, #tpu.memory_space<vmem>>, vector<12x320xf32>,
    %c0_172 = arith.constant 0 : index
    %c0_173 = arith.constant 0 : index
    %241 = vector.load %arg15[%c0_172, %c0_173] : memref<12x512xf32, #tpu.memory_space<vmem>>, vector<12x512xf32>
    %c0_174 = arith.constant 0 : index
    %c0_175 = arith.constant 0 : index
    %242 = vector.load %arg5[%c0_174, %c0_175] : memref<2x512xf32, #tpu.memory_space<vmem>>, vector<1x512xf32>
    %243 = vector.broadcast %242 : vector<1x512xf32> to vector<12x512xf32>
    %244 = arith.mulf %241, %243 : vector<12x512xf32>
    %c1_176 = arith.constant 1 : index
    %c0_177 = arith.constant 0 : index
    %245 = vector.load %arg5[%c1_176, %c0_177] : memref<2x512xf32, #tpu.memory_space<vmem>>, vector<1x512xf32>
    %246 = vector.broadcast %245 : vector<1x512xf32> to vector<12x512xf32>
    %247 = arith.mulf %241, %246 : vector<12x512xf32>
    %248 = vector.extract_strided_slice %244 {offsets = [0, 111], sizes = [12, 320], strides = [1, 1]} : vector<12x512xf32> to vector<12x320xf32>
    %c0_178 = arith.constant 0 : index
    %c0_179 = arith.constant 0 : index
    %249 = vector.load %arg16[%c0_178, %c0_179] : memref<108x320xf32, #tpu.memory_space<vmem>>, vector<12x320xf32>
    tpu.vector_store %arg16[%c0_178, %c0_179], %248 {strides = array<i32>} : memref<108x320xf32, #tpu.memory_space<vmem>>, vector<12x320xf32>,
    %250 = vector.extract_strided_slice %241 {offsets = [0, 112], sizes = [12, 320], strides = [1, 1]} : vector<12x512xf32> to vector<12x320xf32>
    %c12_180 = arith.constant 12 : index
    %c0_181 = arith.constant 0 : index
    %251 = vector.load %arg16[%c12_180, %c0_181] : memref<108x320xf32, #tpu.memory_space<vmem>>, vector<12x320xf32>
    tpu.vector_store %arg16[%c12_180, %c0_181], %250 {strides = array<i32>} : memref<108x320xf32, #tpu.memory_space<vmem>>, vector<12x320xf32>,
    %252 = vector.extract_strided_slice %247 {offsets = [0, 113], sizes = [12, 320], strides = [1, 1]} : vector<12x512xf32> to vector<12x320xf32>
    %c24_182 = arith.constant 24 : index
    %c0_183 = arith.constant 0 : index
    %253 = vector.load %arg16[%c24_182, %c0_183] : memref<108x320xf32, #tpu.memory_space<vmem>>, vector<12x320xf32>
    tpu.vector_store %arg16[%c24_182, %c0_183], %252 {strides = array<i32>} : memref<108x320xf32, #tpu.memory_space<vmem>>, vector<12x320xf32>,
    %254 = vector.extract_strided_slice %244 {offsets = [0, 127], sizes = [12, 320], strides = [1, 1]} : vector<12x512xf32> to vector<12x320xf32>
    %c36_184 = arith.constant 36 : index
    %c0_185 = arith.constant 0 : index
    %255 = vector.load %arg16[%c36_184, %c0_185] : memref<108x320xf32, #tpu.memory_space<vmem>>, vector<12x320xf32>
    tpu.vector_store %arg16[%c36_184, %c0_185], %254 {strides = array<i32>} : memref<108x320xf32, #tpu.memory_space<vmem>>, vector<12x320xf32>,
    %256 = vector.extract_strided_slice %241 {offsets = [0, 128], sizes = [12, 320], strides = [1, 1]} : vector<12x512xf32> to vector<12x320xf32>
    %c48_186 = arith.constant 48 : index
    %c0_187 = arith.constant 0 : index
    %257 = vector.load %arg16[%c48_186, %c0_187] : memref<108x320xf32, #tpu.memory_space<vmem>>, vector<12x320xf32>
    tpu.vector_store %arg16[%c48_186, %c0_187], %256 {strides = array<i32>} : memref<108x320xf32, #tpu.memory_space<vmem>>, vector<12x320xf32>,
    %258 = vector.extract_strided_slice %247 {offsets = [0, 129], sizes = [12, 320], strides = [1, 1]} : vector<12x512xf32> to vector<12x320xf32>
    %c60_188 = arith.constant 60 : index
    %c0_189 = arith.constant 0 : index
    %259 = vector.load %arg16[%c60_188, %c0_189] : memref<108x320xf32, #tpu.memory_space<vmem>>, vector<12x320xf32>
    tpu.vector_store %arg16[%c60_188, %c0_189], %258 {strides = array<i32>} : memref<108x320xf32, #tpu.memory_space<vmem>>, vector<12x320xf32>,
    %260 = vector.extract_strided_slice %244 {offsets = [0, 143], sizes = [12, 320], strides = [1, 1]} : vector<12x512xf32> to vector<12x320xf32>
    %c72_190 = arith.constant 72 : index
    %c0_191 = arith.constant 0 : index
    %261 = vector.load %arg16[%c72_190, %c0_191] : memref<108x320xf32, #tpu.memory_space<vmem>>, vector<12x320xf32>
    tpu.vector_store %arg16[%c72_190, %c0_191], %260 {strides = array<i32>} : memref<108x320xf32, #tpu.memory_space<vmem>>, vector<12x320xf32>,
    %262 = vector.extract_strided_slice %241 {offsets = [0, 144], sizes = [12, 320], strides = [1, 1]} : vector<12x512xf32> to vector<12x320xf32>
    %c84_192 = arith.constant 84 : index
    %c0_193 = arith.constant 0 : index
    %263 = vector.load %arg16[%c84_192, %c0_193] : memref<108x320xf32, #tpu.memory_space<vmem>>, vector<12x320xf32>
    tpu.vector_store %arg16[%c84_192, %c0_193], %262 {strides = array<i32>} : memref<108x320xf32, #tpu.memory_space<vmem>>, vector<12x320xf32>,
    %264 = vector.extract_strided_slice %247 {offsets = [0, 145], sizes = [12, 320], strides = [1, 1]} : vector<12x512xf32> to vector<12x320xf32>
    %c96_194 = arith.constant 96 : index
    %c0_195 = arith.constant 0 : index
    %265 = vector.load %arg16[%c96_194, %c0_195] : memref<108x320xf32, #tpu.memory_space<vmem>>, vector<12x320xf32>
    tpu.vector_store %arg16[%c96_194, %c0_195], %264 {strides = array<i32>} : memref<108x320xf32, #tpu.memory_space<vmem>>, vector<12x320xf32>,
    %c3_196 = arith.constant 3 : index
    %c0_197 = arith.constant 0 : index
    %c0_198 = arith.constant 0 : index
    %266 = vector.load %arg10[%c3_196, %c0_197, %c0_198] : memref<4x12x108xbf16, #tpu.memory_space<vmem>>, vector<1x12x108xbf16>
    %267 = vector.shape_cast %266 : vector<1x12x108xbf16> to vector<12x108xbf16>
    %c0_199 = arith.constant 0 : index
    %c0_200 = arith.constant 0 : index
    %268 = vector.load %arg16[%c0_199, %c0_200] : memref<108x320xf32, #tpu.memory_space<vmem>>, vector<108x320xf32>
    %269 = arith.truncf %268 : vector<108x320xf32> to vector<108x320xbf16>
    %cst_201 = arith.constant dense<0.000000e+00> : vector<12x320xf32>
    %270 = tpu.matmul %267, %269, %cst_201 {dimension_numbers = #tpu.dot_dimension_numbers<[1], [0], [0], [1], [0, 0, 1, 1], [], []>} : vector<12x108xbf16>, vector<108x320xbf16>, vector<12x320xf32> -> vector<12x320xf32>
    %c3_202 = arith.constant 3 : index
    %c0_203 = arith.constant 0 : index
    %c0_204 = arith.constant 0 : index
    %271 = vector.load %arg11[%c3_202, %c0_203, %c0_204] : memref<4x12x1xf32, #tpu.memory_space<vmem>>, vector<1x12x1xf32>
    %272 = vector.shape_cast %271 : vector<1x12x1xf32> to vector<12x1xf32>
    %273 = vector.broadcast %272 : vector<12x1xf32> to vector<12x320xf32>
    %274 = arith.addf %270, %273 : vector<12x320xf32>
    %c0_205 = arith.constant 0 : index
    %c5_206 = arith.constant 5 : index
    %275 = vector.load %arg2[%c0_205, %c5_206] : memref<1x8xf32, #tpu.memory_space<vmem>>, vector<1x1xf32>
    %cst_207 = arith.constant 0.000000e+00 : f32
    %276 = vector.broadcast %cst_207 : f32 to vector<12x320xf32>
    %277 = arith.cmpf oge, %274, %276 : vector<12x320xf32>
    %278 = vector.broadcast %275 : vector<1x1xf32> to vector<12x320xf32>
    %279 = arith.mulf %278, %274 : vector<12x320xf32>
    %280 = arith.select %277, %274, %279 : vector<12x320xi1>, vector<12x320xf32>
    %281 = vector.extract_strided_slice %280 {offsets = [0, 96], sizes = [12, 128], strides = [1, 1]} : vector<12x320xf32> to vector<12x128xf32>
    %c0_208 = arith.constant 0 : index
    %c0_209 = arith.constant 0 : index
    %282 = vector.load %arg12[%c0_208, %c0_209] : memref<56x12xbf16, #tpu.memory_space<vmem>>, vector<56x12xbf16>
    %283 = arith.truncf %281 : vector<12x128xf32> to vector<12x128xbf16>
    %cst_210 = arith.constant dense<0.000000e+00> : vector<56x128xf32>
    %284 = tpu.matmul %282, %283, %cst_210 {dimension_numbers = #tpu.dot_dimension_numbers<[1], [0], [0], [1], [0, 0, 1, 1], [], []>} : vector<56x12xbf16>, vector<12x128xbf16>, vector<56x128xf32> -> vector<56x128xf32>
    %c0_211 = arith.constant 0 : index
    %c0_212 = arith.constant 0 : index
    %285 = vector.load %arg13[%c0_211, %c0_212] : memref<56x1xf32, #tpu.memory_space<vmem>>, vector<56x1xf32>
    %286 = vector.broadcast %285 : vector<56x1xf32> to vector<56x128xf32>
    %287 = arith.addf %284, %286 : vector<56x128xf32>
    %c0_213 = arith.constant 0 : index
    %c6_214 = arith.constant 6 : index
    %288 = vector.load %arg2[%c0_213, %c6_214] : memref<1x8xf32, #tpu.memory_space<vmem>>, vector<1x1xf32>
    %cst_215 = arith.constant 0.000000e+00 : f32
    %289 = vector.broadcast %cst_215 : f32 to vector<56x128xf32>
    %290 = arith.cmpf oge, %287, %289 : vector<56x128xf32>
    %291 = vector.broadcast %288 : vector<1x1xf32> to vector<56x128xf32>
    %292 = arith.mulf %291, %287 : vector<56x128xf32>
    %293 = arith.select %290, %287, %292 : vector<56x128xi1>, vector<56x128xf32>
    %c0_216 = arith.constant 0 : index
    %c0_217 = arith.constant 0 : index
    %c0_218 = arith.constant 0 : index
    %294 = vector.load %arg14[%c0_216, %c0_217, %c0_218] : memref<1x56x128xf32, #tpu.memory_space<vmem>>, vector<1x56x128xf32>
    %295 = vector.shape_cast %294 : vector<1x56x128xf32> to vector<56x128xf32>
    %296 = vector.shape_cast %293 : vector<56x128xf32> to vector<1x56x128xf32>
    tpu.vector_store %arg14[%c0_216, %c0_217, %c0_218], %296 {strides = array<i32>} : memref<1x56x128xf32, #tpu.memory_space<vmem>>, vector<1x56x128xf32>,
    return
  }
  func.func @transform_0(%arg0: i32, %arg1: i32) -> (i32, i32) {
    %c0_i32 = arith.constant 0 : i32
    %c0_i32_0 = arith.constant 0 : i32
    %c0_i32_1 = arith.constant 0 : i32
    return %c0_i32, %c0_i32_0 : i32, i32
  }
  func.func @transform_1(%arg0: i32, %arg1: i32) -> (i32, i32, i32) {
    %c2_i32 = arith.constant 2 : i32
    %0 = arith.muli %arg0, %c2_i32 : i32
    %1 = arith.addi %0, %arg1 : i32
    %c0_i32 = arith.constant 0 : i32
    %c0_i32_0 = arith.constant 0 : i32
    %c0_i32_1 = arith.constant 0 : i32
    return %1, %c0_i32, %c0_i32_0 : i32, i32, i32
  }
  func.func @transform_2(%arg0: i32, %arg1: i32) -> (i32, i32) {
    %c0_i32 = arith.constant 0 : i32
    %c0_i32_0 = arith.constant 0 : i32
    %c0_i32_1 = arith.constant 0 : i32
    return %c0_i32, %c0_i32_0 : i32, i32
  }
  func.func @transform_3(%arg0: i32, %arg1: i32) -> (i32, i32) {
    %c0_i32 = arith.constant 0 : i32
    %c0_i32_0 = arith.constant 0 : i32
    %c0_i32_1 = arith.constant 0 : i32
    return %c0_i32, %c0_i32_0 : i32, i32
  }
  func.func @transform_4(%arg0: i32, %arg1: i32) -> (i32, i32) {
    %c0_i32 = arith.constant 0 : i32
    %c0_i32_0 = arith.constant 0 : i32
    %c0_i32_1 = arith.constant 0 : i32
    return %c0_i32, %c0_i32_0 : i32, i32
  }
  func.func @transform_5(%arg0: i32, %arg1: i32) -> (i32, i32) {
    %c0_i32 = arith.constant 0 : i32
    %c0_i32_0 = arith.constant 0 : i32
    %c0_i32_1 = arith.constant 0 : i32
    return %c0_i32, %c0_i32_0 : i32, i32
  }
  func.func @transform_6(%arg0: i32, %arg1: i32) -> (i32, i32) {
    %c0_i32 = arith.constant 0 : i32
    %c0_i32_0 = arith.constant 0 : i32
    %c0_i32_1 = arith.constant 0 : i32
    return %c0_i32, %c0_i32_0 : i32, i32
  }
  func.func @transform_7(%arg0: i32, %arg1: i32) -> (i32, i32) {
    %c0_i32 = arith.constant 0 : i32
    %c0_i32_0 = arith.constant 0 : i32
    %c0_i32_1 = arith.constant 0 : i32
    return %c0_i32, %c0_i32_0 : i32, i32
  }
  func.func @transform_8(%arg0: i32, %arg1: i32) -> (i32, i32, i32) {
    %c0_i32 = arith.constant 0 : i32
    %c0_i32_0 = arith.constant 0 : i32
    %c0_i32_1 = arith.constant 0 : i32
    %c0_i32_2 = arith.constant 0 : i32
    return %c0_i32, %c0_i32_0, %c0_i32_1 : i32, i32, i32
  }
  func.func @transform_9(%arg0: i32, %arg1: i32) -> (i32, i32, i32) {
    %c0_i32 = arith.constant 0 : i32
    %c0_i32_0 = arith.constant 0 : i32
    %c0_i32_1 = arith.constant 0 : i32
    %c0_i32_2 = arith.constant 0 : i32
    return %c0_i32, %c0_i32_0, %c0_i32_1 : i32, i32, i32
  }
  func.func @transform_10(%arg0: i32, %arg1: i32) -> (i32, i32) {
    %c0_i32 = arith.constant 0 : i32
    %c0_i32_0 = arith.constant 0 : i32
    %c0_i32_1 = arith.constant 0 : i32
    return %c0_i32, %c0_i32_0 : i32, i32
  }
  func.func @transform_11(%arg0: i32, %arg1: i32) -> (i32, i32) {
    %c0_i32 = arith.constant 0 : i32
    %c0_i32_0 = arith.constant 0 : i32
    %c0_i32_1 = arith.constant 0 : i32
    return %c0_i32, %c0_i32_0 : i32, i32
  }
  func.func @transform_12(%arg0: i32, %arg1: i32) -> (i32, i32, i32) {
    %c0_i32 = arith.constant 0 : i32
    %c0_i32_0 = arith.constant 0 : i32
    return %arg0, %c0_i32, %arg1 : i32, i32, i32
  }
}

</mosaic_0001>

<bundles_post_ra>
// kernel: fsrcnn_forward.1
= control target key start
LH: loop header
LB: loop body
LE: loop exit
PB: predicated region body
PF: predicated region fallthrough
CT: control target
= control target key end

     0   :  { %s6179_s0 = inlined_call_operand.vmem [shape: f32[1,8], index: 0, kind: input, shape index: {}]   ;;  %s6180_s1 = inlined_call_operand.vmem [shape: f32[4,1,512], index: 1, kind: input, shape index: {}]   ;;  %s6181_s2 = inlined_call_operand.vmem [shape: f32[4,512], index: 2, kind: input, shape index: {}]   ;;  %s6182_s3 = inlined_call_operand.vmem [shape: f32[2,512], index: 3, kind: input, shape index: {}]   ;;  %s6183_s4 = inlined_call_operand.vmem [shape: bf16[56,25], index: 4, kind: input, shape index: {}]   ;;  %s6184_s5 = inlined_call_operand.vmem [shape: f32[56,1], index: 5, kind: input, shape index: {}]   ;;  %s6185_s6 = inlined_call_operand.vmem [shape: bf16[12,56], index: 6, kind: input, shape index: {}]   ;;  %s6186_s7 = inlined_call_operand.vmem [shape: f32[12,1], index: 7, kind: input, shape index: {}]   ;;  %s6187_s8 = inlined_call_operand.vmem [shape: bf16[4,12,108], index: 8, kind: input, shape index: {}]   ;;  %s6188_s9 = inlined_call_operand.vmem [shape: f32[4,12,1], index: 9, kind: input, shape index: {}]   ;;  %s6189_s10 = inlined_call_operand.vmem [shape: bf16[56,12], index: 10, kind: input, shape index: {}]   ;;  %s6190_s11 = inlined_call_operand.vmem [shape: f32[56,1], index: 11, kind: input, shape index: {}]   ;;  %s6191_s12 = inlined_call_operand.vmem [shape: f32[2,56,256], index: 12, kind: output, shape index: {}]  }
   0x1   :  { %6226 = sst [smem:[#allocation9_spill]] %s6180_s1 }
   0x2   :  { %6227 = sst [smem:[#allocation10_spill]] %s6181_s2 }
   0x3   :  { %6228 = sst [smem:[#allocation11_spill]] %s6183_s4 }
   0x4   :  { %s4366_s21 = smov 0   ;;  %s4368_s22 = smov 0  }
   0x5   :  { %s4370_s23 = smov 0   ;;  %s4372_s24 = smov 0  }
   0x6   :  { %s4374_s25 = smov 0   ;;  %s4376_s26 = smov 0  }
   0x7   :  { %s4378_s27 = smov 0  }
   0x8 LB: > { %6229 = sst [smem:[#allocation5_spill]] %s4256_s25  ;;  %s31_s28 = sadd.s32 1, %s4256_s25  ;;  %s4264_s27 = sphi %s4378_s27, %s22_s27   ;;  %s4260_s26 = sphi %s4376_s26, %s6409_s26   ;;  %s4256_s25 = sphi %s4374_s25, %s6404_s25   ;;  %s4252_s24 = sphi %s4372_s24, %s6408_s24   ;;  %s4248_s23 = sphi %s4370_s23, %s6403_s23   ;;  %s4244_s22 = sphi %s4368_s22, %s6407_s22   ;;  %s4240_s21 = sphi %s4366_s21, %s6406_s21  }
   0x9   : > { %6230 = sst [smem:[#allocation6_spill]] %s4264_s27  ;;  %p32_p0 = scmp.ge.s32.totalorder %s31_s28, 2 }
   0xa   : > { %s34_s29 = sadd.s32 1, %s4260_s26  ;;  %s3844_s30 = sadd.s32 4294967295, %s4264_s27  }
   0xb   : > { %p314_p1 = scmp.ne.s32.totalorder %s4244_s22, %s4240_s21  ;;  %s6411_s28 = smov (%p32_p0, %s31_s28), 0 }
   0xc   : > { %6231 = sst [smem:[#allocation7_spill]] %s6411_s28  ;;  %s6413_s29 = smov (!%p32_p0, %s34_s29), %s4260_s26 }
   0xd   : > { %s300_s13 = ssub.s32 %s4256_s25, %s6411_s28  ;;  %p315_p2 = scmp.eq.s32.totalorder %s3844_s30, 3 }
   0xe   : > { %p36_p3 = scmp.ge.s32.totalorder %s6413_s29, 2  ;;  %p3850_p4 = scmp.ge.s32.totalorder %s4264_s27, 1 }
   0xf   : > { %p4412_p5 = por %p315_p2, %p314_p1  ;;  %p383_p6 = scmp.lt.s32.totalorder %s4264_s27, 5 }
  0x10   : > { %s6415_s29 = smov (%p36_p3, %s6413_s29), 0  ;;  %s304_s17 = sadd.s32 1, %s4244_s22 }
  0x11   : > { %6233 = sst [smem:[#allocation8_spill]] %s6415_s29  ;;  %p384_p7 = pnand %p3850_p4, %p383_p6 }
  0x12   : > { %s299_s15 = ssub.s32 %s4260_s26, %s6415_s29  ;;  %s3851_s19 = sshll.u32 (!%p384_p7), %s4252_s24, 1 }
  0x13   : > { %s301_s16 = sor.u32 %s300_s13, %s299_s15  ;;  %387 = sbr.rel (%p384_p7) target bundleno = 2710 (0xa96), region = 68 }
  0x14   : > { %p302_p8 = scmp.eq.s32.totalorder %s301_s16, 0  ;;  %s426_s20 = sadd.s32 (!%p384_p7), %s4248_s23, %s3851_s19 }
  0x15   : > { %p427_p9 = scmp.lt.s32.totalorder (!%p384_p7), %s426_s20, 3  ;;  %s6234_s2 = sld [smem:[#allocation10_spill]] (!%p384_p7) }
  0x16   : > { %s4423_s18 = scalar_select %p302_p8, %s4244_s22, %s304_s17  }
  0x17   : > { %s6235_s1 = sld [smem:[#allocation9_spill]] (!%p384_p7)  ;;  %s6206_s28 = smov (!%p384_p7), 112  }
  0x18   : > { %s6417_s20 = smov (!%p427_p9, %s426_s20), 3  ;;  %v453_v1 = vlaneseq  ;;  %s6196_s29 = smov 111   ;;  %vm772_vm1 = vcmask 203776   ;;  %v4290_v13 = vmov 0   ;;  %v4471_v14 = vld [vmem:[%s6179_s0] ss:$0 sm:$0xff] }
  0x19   : > { %s3852_s13 = sshll.u32 %s6417_s20, 2  ;;  %s6198_s20 = smov 113   ;;  %830 = vmatprep.mubr.bf16.mxu0 %v4290_v13  ;;  %4144 = vset.pattern.permute.xlu1 %v4290_v13  ;;  %v718_v15 = vld [vmem:[%s6184_s5 + $0x30] sm:$0xff]  ;;  %v716_v16 = vld [vmem:[%s6184_s5 + $0x20] sm:$0xff]  ;;  %v717_v17 = vld [vmem:[%s6184_s5 + $0x28] sm:$0xff]  ;;  %vm611_vm2 = vcmask 916480  }
  0x1a   : > { %vm4440_vm0 = vcmp.lt.s32.totalorder %v453_v1, 320  ;;  %s4269_s30 = smov 110   ;;  %s4271_s15 = smov 97   ;;  %4143 = vset.pattern.permute.xlu0 %v4290_v13  ;;  %v714_v18 = vld [vmem:[%s6184_s5 + $0x10] sm:$0xff]  ;;  %v715_v19 = vld [vmem:[%s6184_s5 + $0x18] sm:$0xff]  ;;  %v712_v20 = vld [vmem:[%s6184_s5] sm:$0xff] }
  0x1b   : > { %v3854_v0 = vld [vmem:[%s6234_s2 + $0x2] ss:$4 sm:$0xf]  ;;  %v3853_v2 = vld [vmem:[%s6234_s2 + $0x1] ss:$4 sm:$0xf] }
  0x1c   : > { %v3855_v3 = vld [vmem:[%s6234_s2 + $0x3] ss:$4 sm:$0xf]  ;;  %v435_v9 = vld [vmem:[%s6234_s2] ss:$4 sm:$0xf] }
  0x1d   : > { %s430_s19 = scalar_lea.vmem %s6235_s1, %s3852_s13  ;;  %s4270_s13 = smov 98   ;;  %v713_v21 = vld [vmem:[%s6184_s5 + $0x8] sm:$0xff]  ;;  %v1020_v23 = vld [vmem:[%s6186_s7] sm:$0xff]  ;;  %vm6218_vm3 = vcmask 908288   ;;  %vm6217_vm4 = vcmask 924672   ;;  %vm631_vm5 = vcmask 900096  }
  0x1e   : > { %v434_v4 = vld [vmem:[%s430_s19] sm:$0xf]  ;;  %s4272_s16 = smov 96   ;;  %s4273_s17 = smov 95   ;;  %v1021_v22 = vld [vmem:[%s6186_s7 + $0x8] sm:$0xf] }
  0x1f   : > { %607 = vrot.lane.b32.xlu0 %v434_v4, %s6206_s28  ;;  %v562_v6 = vrot.slane %v434_v4, 1  ;;  %v442_v7 = vmul.f32 %v3854_v0, %v434_v4  ;;  %v439_v8 = vmul.f32 %v3853_v2, %v434_v4  ;;  %v445_v10 = vmul.f32 %v3855_v3, %v434_v4  ;;  %s4274_s19 = smov 94   ;;  %s4275_s25 = smov 34  }
  0x20   : > { %v436_v11 = vmul.f32 %v435_v9, %v434_v4  ;;  %s4276_s27 = smov 33   ;;  %s6238_s4 = sld [smem:[#allocation11_spill]]  ;;  %vm641_vm6 = vcmask 801792   ;;  %vm651_vm7 = vcmask 793600   ;;  %vm661_vm8 = vcmask 785408  }
  0x21   : > { %565 = vst.msk [vmem:[#allocation3 + $0x1c] ss:$8 sm:$0x7] %vm4440_vm0, %v562_v6  ;;  %617 = vrot.lane.b32.xlu1 %v442_v7, %s6196_s29  ;;  %s6200_s29 = smov 32   ;;  %vm671_vm9 = vcmask 777216   ;;  %vm681_vm10 = vcmask 769024  }
  0x22   : > { %vm450_vm11 = vcmask 277504   ;;  %vm463_vm12 = vcmask 269312   ;;  %vm6221_vm13 = vcmask 1043456   ;;  %vm6212_vm14 = vcmask 261120   ;;  %s6274_s1 = smov 15   ;;  %s422_s2 = sand.u32 1, %s4240_s21  }
  0x23   : > { %597 = vrot.lane.b32.xlu0 %v439_v8, %s6198_s20  ;;  %s4278_s20 = smov 31   ;;  %vm786_vm15 = vcmask 1044480   ;;  %v4291_v6 = vmov 65535   ;;  %s4052_s21 = smul.u32 (%p4412_p5), 14, %s4252_s24 }
  0x25   : > { %627 = vrot.lane.b32.xlu1 %v445_v10, %s4269_s30  ;;  %s4279_s30 = smov 30  }
  0x26   : > { %v4461_v12 = vld [vmem:[%s6238_s4] sm:$0xff]   ;;  %v4173_v5 = vld [vmem:[%s6238_s4 + $0x10] sm:$0xff]  }
  0x27   : > { %637 = vrot.lane.b32.xlu0 %v436_v11, %s4270_s13  ;;  %s4280_s13 = smov 18   ;;  %3966 = vmatprep.mubr.msk.bf16.mxu1 %vm772_vm1, %v4461_v12 }
  0x29   : > { %647 = vrot.lane.b32.xlu1 %v439_v8, %s4271_s15  ;;  %s6202_s15 = smov 17  }
  0x2b   : > { %657 = vrot.lane.b32.xlu0 %v434_v4, %s4272_s16  ;;  %s6208_s16 = smov 16  }
  0x2d   : > { %667 = vrot.lane.b32.xlu1 %v442_v7, %s4273_s17  ;;  %s6219_s17 = smov 15  }
  0x2f   : > { %677 = vrot.lane.b32.xlu0 %v445_v10, %s4274_s19  ;;  %s4284_s19 = smov 14  }
  0x31   : > { %447 = vrot.lane.b32.xlu1 %v436_v11, %s4275_s25  ;;  %s4285_s25 = smov 2  }
  0x33   : > { %460 = vrot.lane.b32.xlu0 %v439_v8, %s4276_s27  ;;  %s6210_s27 = smov 1  }
  0x35   : > { %470 = vrot.lane.b32.xlu1 %v434_v4, %s6200_s29  ;;  %s6240_s29 = smov 16  }
  0x37   : > { %480 = vrot.lane.b32.xlu0 %v442_v7, %s4278_s20  ;;  %s6204_s20 = smov 127  }
  0x39   : > { %490 = vrot.lane.b32.xlu1 %v445_v10, %s4279_s30  ;;  %s4288_s30 = smov 126  }
  0x3b   : > { %499 = vrot.lane.b32.xlu0 %v436_v11, %s4280_s13  ;;  %s4289_s13 = smov 114  }
  0x3d   : > { %508 = vrot.lane.b32.xlu1 %v439_v8, %s6202_s15  ;;  %s3873_s15 = sshll.u32 %s4248_s23, 3 }
  0x3e   : > { %s1161_s28 = ssub.s32 22, %s3873_s15 }
  0x3f   : > { %517 = vrot.lane.b32.xlu0 %v434_v4, %s6208_s16  ;;  %p1162_p11 = scmp.lt.s32.totalorder %s1161_s28, 20  ;;  %s6244_s16 = smov 111  }
  0x41   : > { %526 = vrot.lane.b32.xlu1 %v442_v7, %s6219_s17  ;;  %s6421_s28 = smov (!%p1162_p11, %s1161_s28), 20 }
  0x43   : > { %535 = vrot.lane.b32.xlu0 %v445_v10, %s4284_s19  ;;  %s3875_s19 = sshll.u32 %s6421_s28, 4 }
  0x45   : > { %544 = vrot.lane.b32.xlu1 %v436_v11, %s4285_s25  ;;  %s6243_s25 = smov 112  }
  0x47   : > { %553 = vrot.lane.b32.xlu0 %v439_v8, %s6210_s27  ;;  %s6245_s27 = smov 113  }
  0x49   : > { %567 = vrot.lane.b32.xlu1 %v442_v7, %s6204_s20  ;;  %v787_v7 = vsel %vm6221_vm13, 4294967295, %v4291_v6 }
  0x4b   : > { %577 = vrot.lane.b32.xlu0 %v445_v10, %s4288_s30  ;;  %s6239_s30 = smov 1  }
  0x4d   : > { %587 = vrot.lane.b32.xlu1 %v436_v11, %s4289_s13  ;;  %s1157_s13 = ssub.s32 6, %s3873_s15  ;;  %s6248_s15 = smov 127  }
  0x4e   : > { %p1158_p10 = scmp.gt.s32.totalorder %s1157_s13, 0 }
  0x4f   : > { %751 = vperm.xlu0 %4143, %v718_v15  }
  0x50   : > { %s6419_s13 = smov (!%p1158_p10, %s1157_s13), 0 }
  0x51   : > { %961 = vperm.xlu1 %4144, %v4471_v14   ;;  %s3874_s20 = sshll.u32 %s6419_s13, 4  ;;  %s6251_s13 = smov 17  }
  0x53   : > { %746 = vperm.xlu0 %4143, %v717_v17  }
  0x55   : > { %741 = vperm.xlu1 %4144, %v716_v16   ;;  %v788_v16 = vsel %vm786_vm15, %v787_v7, 0  ;;  %vm6224_vm15 = vcmask 7168  }
  0x57   : > { %736 = vperm.xlu0 %4143, %v715_v19  }
  0x59   : > { %731 = vperm.xlu1 %4144, %v714_v18  }
  0x5b   : > { %726 = vperm.xlu0 %4143, %v713_v21  }
  0x5d   : > { %721 = vperm.xlu1 %4144, %v712_v20  }
  0x5f   : > { %1029 = vperm.xlu0 %4143, %v1021_v22  }
  0x61   : > { %1024 = vperm.xlu1 %4144, %v1020_v23  }
  0x91   : > { %v608_v24 = vpop.permute.xlu0 %607 }
  0x92   : > { %v609_v25 = vrot.slane %v608_v24, 1  ;;  %v610_v26 = vrot.slane %v608_v24, 2 }
  0x93   : > { %v618_v27 = vpop.permute.xlu1 %617 }
  0x94   : > { %v612_v28 = vsel %vm611_vm2, %v609_v25, %v610_v26  ;;  %v619_v29 = vrot.slane %v618_v27, 1  ;;  %v620_v30 = vrot.slane %v618_v27, 2 }
  0x95   : > { %615 = vst.msk [vmem:[#allocation3 + $0x31] ss:$8 sm:$0x7] %vm4440_vm0, %v612_v28  ;;  %v598_v31 = vpop.permute.xlu0 %597 }
  0x96   : > { %v622_v32 = vsel %vm6218_vm3, %v619_v29, %v620_v30  ;;  %v599_v33 = vrot.slane %v598_v31, 1  ;;  %v600_v34 = vrot.slane %v598_v31, 2 }
  0x97   : > { %625 = vst.msk [vmem:[#allocation3 + $0x32] ss:$8 sm:$0x7] %vm4440_vm0, %v622_v32  ;;  %v628_v35 = vpop.permute.xlu1 %627 }
  0x98   : > { %v602_v36 = vsel %vm6217_vm4, %v599_v33, %v600_v34  ;;  %v629_v37 = vrot.slane %v628_v35, 1  ;;  %v630_v38 = vrot.slane %v628_v35, 2 }
  0x99   : > { %605 = vst.msk [vmem:[#allocation3 + $0x30] ss:$8 sm:$0x7] %vm4440_vm0, %v602_v36  ;;  %v638_v39 = vpop.permute.xlu0 %637 }
  0x9a   : > { %v632_v40 = vsel %vm631_vm5, %v629_v37, %v630_v38  ;;  %v639_v41 = vrot.slane %v638_v39, 1  ;;  %v640_v42 = vrot.slane %v638_v39, 2  ;;  %vm483_vm5 = vcmask 252928  }
  0x9b   : > { %635 = vst.msk [vmem:[#allocation3 + $0x33] ss:$8 sm:$0x7] %vm4440_vm0, %v632_v40  ;;  %v648_v43 = vpop.permute.xlu1 %647 }
  0x9c   : > { %v642_v44 = vsel %vm641_vm6, %v639_v41, %v640_v42  ;;  %v649_v45 = vrot.slane %v648_v43, 1  ;;  %v650_v46 = vrot.slane %v648_v43, 2  ;;  %vm493_vm6 = vcmask 244736  }
  0x9d   : > { %645 = vst.msk [vmem:[#allocation3 + $0x34] ss:$8 sm:$0x7] %vm4440_vm0, %v642_v44  ;;  %v658_v47 = vpop.permute.xlu0 %657 }
  0x9e   : > { %v652_v48 = vsel %vm651_vm7, %v649_v45, %v650_v46  ;;  %v659_v49 = vrot.slane %v658_v47, 1  ;;  %v660_v50 = vrot.slane %v658_v47, 2  ;;  %vm502_vm7 = vcmask 146432  }
  0x9f   : > { %655 = vst.msk [vmem:[#allocation3 + $0x35] ss:$8 sm:$0x7] %vm4440_vm0, %v652_v48  ;;  %v668_v51 = vpop.permute.xlu1 %667 }
  0xa0   : > { %v662_v52 = vsel %vm661_vm8, %v659_v49, %v660_v50  ;;  %v669_v53 = vrot.slane %v668_v51, 1  ;;  %v670_v54 = vrot.slane %v668_v51, 2  ;;  %vm6213_vm8 = vcmask 138240  }
  0xa1   : > { %665 = vst.msk [vmem:[#allocation3 + $0x36] ss:$8 sm:$0x7] %vm4440_vm0, %v662_v52  ;;  %v678_v55 = vpop.permute.xlu0 %677 }
  0xa2   : > { %v672_v56 = vsel %vm671_vm9, %v669_v53, %v670_v54  ;;  %v679_v57 = vrot.slane %v678_v55, 1  ;;  %v680_v58 = vrot.slane %v678_v55, 2  ;;  %vm6214_vm9 = vcmask 130048  }
  0xa3   : > { %675 = vst.msk [vmem:[#allocation3 + $0x37] ss:$8 sm:$0x7] %vm4440_vm0, %v672_v56  ;;  %v448_v59 = vpop.permute.xlu1 %447 }
  0xa4   : > { %v682_v60 = vsel %vm681_vm10, %v679_v57, %v680_v58  ;;  %v449_v61 = vrot.slane %v448_v59, 1  ;;  %vm529_vm10 = vcmask 121856  }
  0xa5   : > { %685 = vst.msk [vmem:[#allocation3 + $0x48] ss:$8 sm:$0x7] %vm4440_vm0, %v682_v60  ;;  %v461_v62 = vpop.permute.xlu0 %460 }
  0xa6   : > { %v451_v63 = vsel %vm450_vm11, %v448_v59, %v449_v61  ;;  %v462_v0 = vrot.slane %v461_v62, 1  ;;  %vm538_vm11 = vcmask 113664  }
  0xa7   : > { %457 = vst.msk [vmem:[#allocation3] ss:$8 sm:$0x7] %vm4440_vm0, %v451_v63  ;;  %v471_v2 = vpop.permute.xlu1 %470 }
  0xa8   : > { %v464_v3 = vsel %vm463_vm12, %v461_v62, %v462_v0  ;;  %v472_v4 = vrot.slane %v471_v2, 1  ;;  %vm547_vm12 = vcmask 15360  }
  0xa9   : > { %467 = vst.msk [vmem:[#allocation3 + $0x1] ss:$8 sm:$0x7] %vm4440_vm0, %v464_v3  ;;  %v481_v8 = vpop.permute.xlu0 %480 }
  0xaa   : > { %v474_v9 = vsel %vm6212_vm14, %v471_v2, %v472_v4  ;;  %v482_v10 = vrot.slane %v481_v8, 1  ;;  %v701_v15 = vld [vmem:[#allocation3 + $0x38] sm:$0xff]  ;;  %v702_v20 = vld [vmem:[#allocation3 + $0x40] sm:$0xff]  ;;  %v700_v25 = vld [vmem:[#allocation3 + $0x30] sm:$0xff] }
  0xab   : > { %477 = vst.msk [vmem:[#allocation3 + $0x2] ss:$8 sm:$0x7] %vm4440_vm0, %v474_v9  ;;  %v491_v11 = vpop.permute.xlu1 %490 }
  0xac   : > { %v484_v17 = vsel %vm483_vm5, %v481_v8, %v482_v10  ;;  %v492_v18 = vrot.slane %v491_v11, 1  ;;  %v704_v19 = vld [vmem:[#allocation3 + $0x50] sm:$0x1]  ;;  %v705_v21 = vld [vmem:[#allocation3 + $0x58] sm:$0x1]  ;;  %vm6223_vm5 = vcmask 1039360  }
  0xad   : > { %487 = vst.msk [vmem:[#allocation3 + $0x3] ss:$8 sm:$0x7] %vm4440_vm0, %v484_v17  ;;  %v500_v22 = vpop.permute.xlu0 %499  ;;  %v710_v23 = vpack.c.bf16 %v704_v19, %v701_v15  ;;  %v711_v24 = vpack.c.bf16 %v705_v21, %v702_v20  ;;  %v703_v26 = vld [vmem:[#allocation3 + $0x48] sm:$0x1] }
  0xae   : > { %v494_v27 = vsel %vm493_vm6, %v491_v11, %v492_v18  ;;  %v501_v28 = vrot.slane %v500_v22, 1  ;;  %v709_v29 = vpack.c.bf16 %v703_v26, %v700_v25  ;;  %vm581_vm6 = vcmask 1031168   ;;  %v4172_v11 = vld [vmem:[%s6238_s4 + $0x8] sm:$0xff]   ;;  %v4174_v15 = vld [vmem:[%s6238_s4 + $0x18] ss:$0 sps:$4 sm:$0xff]   ;;  %s6396_s4 = smov 32  }
  0xaf   : > { %497 = vst.msk [vmem:[#allocation3 + $0x4] ss:$8 sm:$0x7] %vm4440_vm0, %v494_v27  ;;  %v509_v30 = vpop.permute.xlu1 %508  ;;  %v793_v31 = vand.u32 %v788_v16, %v710_v23  ;;  %v796_v32 = vand.u32 %v788_v16, %v711_v24 }
  0xb0   : > { %v503_v33 = vsel %vm502_vm7, %v500_v22, %v501_v28  ;;  %v510_v34 = vrot.slane %v509_v30, 1  ;;  %v790_v35 = vand.u32 %v788_v16, %v709_v29  ;;  %vm591_vm7 = vcmask 932864  }
  0xb1   : > { %506 = vst.msk [vmem:[#allocation3 + $0x5] ss:$8 sm:$0x7] %vm4440_vm0, %v503_v33  ;;  %810 = vmatprep.subr.bf16.mxu0 %v793_v31  ;;  %3962 = vmatprep.subr.bf16.mxu1 %v796_v32  ;;  %v518_v36 = vpop.permute.xlu0 %517  ;;  %v4294_v16 = vmov 1  }
  0xb2   : > { %v512_v37 = vsel %vm6213_vm8, %v509_v30, %v510_v34  ;;  %v519_v38 = vrot.slane %v518_v36, 1  ;;  %811 = vmatpush1.bf16.msra.mxu0 %v790_v35  ;;  %3963 = vmatpush3.bf16.msra.mxu1 %v796_v32 }
  0xb3   : > { %515 = vst.msk [vmem:[#allocation3 + $0x6] ss:$8 sm:$0x7] %vm4440_vm0, %v512_v37  ;;  %v527_v39 = vpop.permute.xlu1 %526  ;;  %4145 = vset.pattern.permute.xlu1 %v4294_v16 }
  0xb4   : > { %v521_v40 = vsel %vm6214_vm9, %v518_v36, %v519_v38  ;;  %v528_v41 = vrot.slane %v527_v39, 1  ;;  %1141 = vperm.xlu1 %4145, %v4471_v14  }
  0xb5   : > { %524 = vst.msk [vmem:[#allocation3 + $0x7] ss:$8 sm:$0x7] %vm4440_vm0, %v521_v40  ;;  %v536_v42 = vpop.permute.xlu0 %535 }
  0xb6   : > { %v530_v43 = vsel %vm529_vm10, %v527_v39, %v528_v41  ;;  %v537_v44 = vrot.slane %v536_v42, 1 }
  0xb7   : > { %533 = vst.msk [vmem:[#allocation3 + $0x18] ss:$8 sm:$0x7] %vm4440_vm0, %v530_v43  ;;  %v545_v45 = vpop.permute.xlu1 %544 }
  0xb8   : > { %v539_v46 = vsel %vm538_vm11, %v536_v42, %v537_v44  ;;  %v546_v47 = vrot.slane %v545_v45, 1  ;;  %4151 = vset.pattern.permute.xlu1 %v4290_v13 }
  0xb9   : > { %542 = vst.msk [vmem:[#allocation3 + $0x19] ss:$8 sm:$0x7] %vm4440_vm0, %v539_v46  ;;  %v554_v48 = vpop.permute.xlu0 %553 }
  0xba   : > { %v548_v49 = vsel %vm547_vm12, %v545_v45, %v546_v47  ;;  %v555_v50 = vrot.slane %v554_v48, 1 }
  0xbb   : > { %551 = vst.msk [vmem:[#allocation3 + $0x1a] ss:$8 sm:$0x7] %vm4440_vm0, %v548_v49  ;;  %v568_v51 = vpop.permute.xlu1 %567 }
  0xbc   : > { %v557_v52 = vsel %vm6224_vm15, %v554_v48, %v555_v50  ;;  %v569_v53 = vrot.slane %v568_v51, 1  ;;  %v570_v54 = vrot.slane %v568_v51, 2  ;;  %v695_v0 = vld [vmem:[#allocation3 + $0x8] sm:$0xff]  ;;  %v696_v2 = vld [vmem:[#allocation3 + $0x10] sm:$0xff]  ;;  %v694_v3 = vld [vmem:[#allocation3] sm:$0xff] }
  0xbd   : > { %560 = vst.msk [vmem:[#allocation3 + $0x1b] ss:$8 sm:$0x7] %vm4440_vm0, %v557_v52  ;;  %v578_v55 = vpop.permute.xlu0 %577 }
  0xbe   : > { %v572_v56 = vsel %vm6223_vm5, %v569_v53, %v570_v54  ;;  %v579_v57 = vrot.slane %v578_v55, 1  ;;  %v580_v58 = vrot.slane %v578_v55, 2 }
  0xbf   : > { %575 = vst.msk [vmem:[#allocation3 + $0x1d] ss:$8 sm:$0x7] %vm4440_vm0, %v572_v56  ;;  %v588_v59 = vpop.permute.xlu1 %587 }
  0xc0   : > { %v589_v60 = vrot.slane %v588_v59, 1  ;;  %v590_v61 = vrot.slane %v588_v59, 2  ;;  %v582_v62 = vsel %vm581_vm6, %v579_v57, %v580_v58 }
  0xc1   : > { %585 = vst.msk [vmem:[#allocation3 + $0x1e] ss:$8 sm:$0x7] %vm4440_vm0, %v582_v62 }
  0xc2   : > { %v592_v63 = vsel %vm591_vm7, %v589_v60, %v590_v61 }
  0xc3   : > { %595 = vst.msk [vmem:[#allocation3 + $0x1f] ss:$8 sm:$0x7] %vm4440_vm0, %v592_v63  ;;  %vm6215_vm0 = vmmov 0  }
  0xca   : > { %v698_v4 = vld [vmem:[#allocation3 + $0x20] sm:$0xff]  ;;  %v699_v6 = vld [vmem:[#allocation3 + $0x28] sm:$0xff]  ;;  %v697_v7 = vld [vmem:[#allocation3 + $0x18] sm:$0xff]  ;;  %v4594_v18 = vpop.permute.xlu0 %751 }
  0xcb   : > { %v707_v8 = vpack.c.bf16 %v698_v4, %v695_v0  ;;  %v708_v9 = vpack.c.bf16 %v699_v6, %v696_v2  ;;  %v706_v10 = vpack.c.bf16 %v697_v7, %v694_v3 }
  0xcc   : > { %v4592_v17 = vpop.permute.xlu1 %961 }
  0xcd   : > { %812 = vmatprep.subr.bf16.mxu0 %v707_v8  ;;  %3964 = vmatprep.subr.bf16.mxu1 %v708_v9 }
  0xce   : > { %813 = vmatpush1.bf16.msra.mxu0 %v706_v10  ;;  %3965 = vmatpush3.bf16.msra.mxu1 %v708_v9  ;;  %v4598_v24 = vpop.permute.xlu0 %746 }
  0xd0   : > { %v4596_v21 = vpop.permute.xlu1 %741 }
  0xd1   : > { %3860 = vmatmul.mubr.msk.bf16.vlgmr.msra.gmra.mxu0 %vm772_vm1, %v4461_v12  ;;  %3967 = vmatmul.mubr.msk.bf16.vlgmr.msra.gmra.mxu1 %vm772_vm1, %v4172_v11  ;;  %v4292_v12 = vmov 0.0  }
  0xd2   : > { %840 = vmatprep.mubr.bf16.mxu0 %v4290_v13  ;;  %3970 = vmatprep.mubr.msk.bf16.mxu1 %vm772_vm1, %v4173_v5  ;;  %1180 = vst [vmem:[#allocation2] sm:$0xff] %v4292_v12  ;;  %1183 = vst [vmem:[#allocation2 + $0x18] sm:$0xff] %v4292_v12  ;;  %v4604_v31 = vpop.permute.xlu0 %736 }
  0xd3   : > { %3974 = vmatprep.subr.bf16.mxu0 %v4292_v12  ;;  %1184 = vst [vmem:[#allocation2 + $0x20] sm:$0xf] %v4292_v12  ;;  %1185 = vst [vmem:[#allocation2 + $0x28] sm:$0xf] %v4292_v12 }
  0xd4   : > { %1186 = vst [vmem:[#allocation2 + $0x30] sm:$0xf] %v4292_v12  ;;  %1187 = vst [vmem:[#allocation2 + $0x38] sm:$0xf] %v4292_v12  ;;  %v4600_v29 = vpop.permute.xlu1 %731 }
  0xd6   : > { %v727_v44 = vpop.permute.xlu0 %726 }
  0xd8   : > { %v722_v38 = vpop.permute.xlu1 %721 }
  0xd9   : > { %3861 = vmatmul.mubr.msk.bf16.gmra.mxu0 %vm772_vm1, %v4172_v11  ;;  %3971 = vmatmul.mubr.msk.bf16.gmra.mxu1 %vm772_vm1, %v4174_v15 }
  0xda   : > { %850 = vmatprep.mubr.bf16.mxu0 %v4290_v13  ;;  %1082 = vmatprep.mubr.bf16.mxu1 %v4290_v13 }
  0xe1   : > { %3862 = vmatmul.mubr.msk.bf16.gmra.mxu0 %vm772_vm1, %v4173_v5 }
  0xe2   : > { %860 = vmatprep.mubr.bf16.mxu0 %v4290_v13 }
  0xe9   : > { %3863 = vmatmul.mubr.msk.bf16.gmra.mxu0 %vm772_vm1, %v4174_v15 }
  0xea   : > { %3982 = vmatprep.mubr.msk.bf16.mxu0 %vm6215_vm0, %v4292_v12 }
 0x191   : > { %v832_v19 = vpop.f32.mrf.mxu0  ;;  %v3968_v20 = vpop.f32.mrf.mxu1 }
 0x192   : > { %v912_v46 = vadd.f32 %v3968_v20, %v4600_v29  ;;  %v4623_v4 = vadd.f32 %v832_v19, %v722_v38 }
 0x193   : > { %v834_v22 = vpop.f32.mrf.mxu0  ;;  %v903_v23 = vpop.f32.mrf.mxu1 }
 0x194   : > { %v904_v49 = vadd.f32 %v903_v23, %v722_v38  ;;  %v972_v56 = vmul.f32 %v4592_v17, %v912_v46  ;;  %vm942_vm7 = vcmp.ge.f32.partialorder %v912_v46, 0.0  ;;  %v4625_v6 = vadd.f32 %v834_v22, %v722_v38 }
 0x195   : > { %v836_v25 = vpop.f32.mrf.mxu0  ;;  %v3969_v26 = vpop.f32.mrf.mxu1 }
 0x196   : > { %v915_v43 = vadd.f32 %v3969_v26, %v4604_v31  ;;  %v966_v58 = vmul.f32 %v4592_v17, %v904_v49  ;;  %v993_v3 = vsel %vm942_vm7, %v912_v46, %v972_v56  ;;  %v4627_v7 = vadd.f32 %v836_v25, %v727_v44 }
 0x197   : > { %v838_v27 = vpop.f32.mrf.mxu0  ;;  %v906_v28 = vpop.f32.mrf.mxu1 }
 0x198   : > { %v907_v52 = vadd.f32 %v906_v28, %v727_v44  ;;  %v975_v54 = vmul.f32 %v4592_v17, %v915_v43  ;;  %vm945_vm6 = vcmp.ge.f32.partialorder %v915_v43, 0.0  ;;  %v4629_v10 = vadd.f32 %v838_v27, %v727_v44 }
 0x199   : > { %v4602_v14 = vpop.f32.mrf.mxu0  ;;  %v3972_v30 = vpop.f32.mrf.mxu1 }
 0x19a   : > { %v928_v32 = vadd.f32 %v3972_v30, %v4594_v18  ;;  %v969_v61 = vmul.f32 %v4592_v17, %v907_v52  ;;  %v996_v0 = vsel %vm945_vm6, %v915_v43, %v975_v54  ;;  %vm939_vm14 = vcmp.ge.f32.partialorder %v907_v52, 0.0 }
 0x19b   : > { %v4607_v33 = vpop.f32.mrf.mxu0  ;;  %v919_v34 = vpop.f32.mrf.mxu1  ;;  %v1013_v15 = vpack.c.bf16 %v996_v0, %v993_v3  ;;  %v964_v54 = vmul.f32 %v4592_v17, %v4623_v4 }
 0x19c   : > { %vm954_vm1 = vcmp.ge.f32.partialorder %v928_v32, 0.0  ;;  %v984_v35 = vmul.f32 %v4592_v17, %v928_v32  ;;  %v920_v39 = vadd.f32 %v919_v34, %v4596_v21  ;;  %v990_v16 = vsel %vm939_vm14, %v907_v52, %v969_v61 }
 0x19d   : > { %v846_v36 = vpop.f32.mrf.mxu0  ;;  %v3973_v37 = vpop.f32.mrf.mxu1  ;;  %v845_v27 = vadd.f32 %v4607_v33, %v4600_v29 }
 0x19e   : > { %v1005_v40 = vsel %vm954_vm1, %v928_v32, %v984_v35  ;;  %v978_v50 = vmul.f32 %v4592_v17, %v920_v39  ;;  %vm948_vm11 = vcmp.ge.f32.partialorder %v920_v39, 0.0  ;;  %vm936_vm1 = vcmp.ge.f32.partialorder %v904_v49, 0.0 }
 0x19f   : > { %v848_v41 = vpop.f32.mrf.mxu0  ;;  %v922_v42 = vpop.f32.mrf.mxu1  ;;  %v1019_v45 = vpack.c.bf16 %v1005_v40, %v1005_v40  ;;  %v987_v9 = vsel %vm936_vm1, %v904_v49, %v966_v58  ;;  %v847_v28 = vadd.f32 %v846_v36, %v4604_v31  ;;  %v4175_v36 = vld [vmem:[%s6185_s6] sm:$0x3f]   ;;  %v843_v40 = vadd.f32 %v4602_v14, %v4600_v29 }
 0x1a0   : > { %v923_v47 = vadd.f32 %v922_v42, %v4598_v24  ;;  %v999_v59 = vsel %vm948_vm11, %v920_v39, %v978_v50  ;;  %vm1037_vm11 = vcmask 457728   ;;  %v849_v19 = vadd.f32 %v848_v41, %v4604_v31 }
 0x1a1   : > { %v852_v48 = vpop.f32.mrf.mxu0  ;;  %v1048_v51 = vsel %vm6221_vm13, %v1019_v45, 0  ;;  %v1010_v37 = vpack.c.bf16 %v990_v16, %v987_v9  ;;  %vm941_vm8 = vcmp.ge.f32.partialorder %v845_v27, 0.0  ;;  %v971_v43 = vmul.f32 %v4592_v17, %v845_v27 }
 0x1a2   : > { %vm951_vm12 = vcmp.ge.f32.partialorder %v923_v47, 0.0  ;;  %3975 = vmatpush3.bf16.msra.mxu0 %v1048_v51  ;;  %v981_v55 = vmul.f32 %v4592_v17, %v923_v47  ;;  %v853_v30 = vadd.f32 %v852_v48, %v4596_v21  ;;  %v974_v31 = vmul.f32 %v4592_v17, %v849_v19 }
 0x1a3   : > { %v854_v53 = vpop.f32.mrf.mxu0  ;;  %3976 = vmatprep.subr.bf16.mxu0 %v4292_v12  ;;  %v973_v45 = vmul.f32 %v4592_v17, %v847_v28  ;;  %v968_v48 = vmul.f32 %v4592_v17, %v4629_v10  ;;  %v970_v50 = vmul.f32 %v4592_v17, %v843_v40 }
 0x1a4   : > { %v1002_v60 = vsel %vm951_vm12, %v923_v47, %v981_v55  ;;  %v855_v11 = vadd.f32 %v854_v53, %v4596_v21  ;;  %v976_v41 = vmul.f32 %v4592_v17, %v853_v30  ;;  %vm946_vm9 = vcmp.ge.f32.partialorder %v853_v30, 0.0 }
 0x1a5   : > { %v856_v57 = vpop.f32.mrf.mxu0  ;;  %v1016_v62 = vpack.c.bf16 %v1002_v60, %v999_v59  ;;  %v965_v47 = vmul.f32 %v4592_v17, %v4625_v6  ;;  %v992_v53 = vsel %vm941_vm8, %v845_v27, %v971_v43  ;;  %v967_v55 = vmul.f32 %v4592_v17, %v4627_v7 }
 0x1a6   : > { %v857_v20 = vadd.f32 %v856_v57, %v4598_v24  ;;  %vm947_vm7 = vcmp.ge.f32.partialorder %v855_v11, 0.0  ;;  %v997_v51 = vsel %vm946_vm9, %v853_v30, %v976_v41  ;;  %vm937_vm9 = vcmp.ge.f32.partialorder %v4627_v7, 0.0 }
 0x1a7   : > { %v858_v63 = vpop.f32.mrf.mxu0  ;;  %3977 = vmatpush3.bf16.msra.mxu0 %v1016_v62  ;;  %v1166_v27 = vand.u32 127, %v453_v1 }
 0x1a8   : > { %v859_v2 = vadd.f32 %v858_v63, %v4598_v24  ;;  %3978 = vmatprep.subr.bf16.mxu0 %v4292_v12  ;;  %v977_v24 = vmul.f32 %v4592_v17, %v855_v11  ;;  %vm949_vm1 = vcmp.ge.f32.partialorder %v857_v20, 0.0  ;;  %v988_v63 = vsel %vm937_vm9, %v4627_v7, %v967_v55  ;;  %v4706_v7 = vld [vmem:[%s6182_s3] ss:$2 sm:$0xf] }
 0x1a9   : > { %v862_v8 = vpop.f32.mrf.mxu0  ;;  %v1168_v30 = vadd.s32 256, %v1166_v27 }
 0x1aa   : > { %v863_v5 = vadd.f32 %v862_v8, %v4594_v18  ;;  %v980_v23 = vmul.f32 %v4592_v17, %v859_v2  ;;  %vm950_vm14 = vcmp.ge.f32.partialorder %v859_v2, 0.0  ;;  %v998_v44 = vsel %vm947_vm7, %v855_v11, %v977_v24  ;;  %v1212_v8 = vld [vmem:[#allocation2 + $0x20] sm:$0xf] }
 0x1ab   : > { %v864_v22 = vpop.f32.mrf.mxu0  ;;  %3979 = vmatpush3.bf16.msra.mxu0 %v1013_v15  ;;  %vm938_vm7 = vcmp.ge.f32.partialorder %v4629_v10, 0.0  ;;  %v1173_v24 = vstv %s3875_s19 }
 0x1ac   : > { %vm952_vm12 = vcmp.ge.f32.partialorder %v863_v5, 0.0  ;;  %v982_v25 = vmul.f32 %v4592_v17, %v863_v5  ;;  %v865_v26 = vadd.f32 %v864_v22, %v4594_v18  ;;  %3980 = vmatprep.subr.bf16.mxu0 %v4292_v12  ;;  %v979_v18 = vmul.f32 %v4592_v17, %v857_v20 }
 0x1ad   : > { %v866_v32 = vpop.f32.mrf.mxu0  ;;  %v1001_v39 = vsel %vm950_vm14, %v859_v2, %v980_v23  ;;  %vm943_vm14 = vcmp.ge.f32.partialorder %v847_v28, 0.0  ;;  %v989_v59 = vsel %vm938_vm7, %v4629_v10, %v968_v48  ;;  %v4691_v2 = vshrl.u32 %v453_v1, 7 }
 0x1ae   : > { %v1003_v34 = vsel %vm952_vm12, %v863_v5, %v982_v25  ;;  %vm953_vm6 = vcmp.ge.f32.partialorder %v865_v26, 0.0  ;;  %v983_v35 = vmul.f32 %v4592_v17, %v865_v26  ;;  %vm944_vm12 = vcmp.ge.f32.partialorder %v849_v19, 0.0 }
 0x1af   : > { %v1017_v33 = vpack.c.bf16 %v1003_v34, %v1003_v34  ;;  %v867_v38 = vpop.f32.mrf.mxu0  ;;  %3981 = vmatpush3.bf16.msra.mxu0 %v1010_v37  ;;  %v1000_v46 = vsel %vm949_vm1, %v857_v20, %v979_v18  ;;  %v1015_v14 = vpack.c.bf16 %v1001_v39, %v998_v44  ;;  %v995_v49 = vsel %vm944_vm12, %v849_v19, %v974_v31 }
 0x1b0   : > { %v1004_v21 = vsel %vm953_vm6, %v865_v26, %v983_v35  ;;  %3986 = vmatprep.subr.bf16.mxu0 %v4292_v12  ;;  %vm935_vm6 = vcmp.ge.f32.partialorder %v4625_v6, 0.0  ;;  %vm940_vm1 = vcmp.ge.f32.partialorder %v843_v40, 0.0  ;;  %v1014_v52 = vpack.c.bf16 %v1000_v46, %v997_v51  ;;  %v1030_v38 = vpop.permute.xlu0 %1029 }
 0x1b1   : > { %v1018_v42 = vpack.c.bf16 %v1004_v21, %v1004_v21  ;;  %v1042_v29 = vsel %vm6221_vm13, %v1017_v33, 0  ;;  %v994_v56 = vsel %vm943_vm14, %v847_v28, %v973_v45  ;;  %v1012_v57 = vpack.c.bf16 %v995_v49, %v992_v53  ;;  %v4730_v28 = vpop.permute.xlu1 %1024 }
 0x1b2   : > { %3983 = vmatmul.mubr.msk.bf16.vlgmr.msra.gmra.mxu0 %vm1037_vm11, %v4175_v36  ;;  %vm934_vm12 = vcmp.ge.f32.partialorder %v4623_v4, 0.0  ;;  %v986_v58 = vsel %vm935_vm6, %v4625_v6, %v965_v47  ;;  %v991_v60 = vsel %vm940_vm1, %v843_v40, %v970_v50  ;;  %v4694_v3 = vsub.s32 0, %v4691_v2 }
 0x1b3   : > { %3870 = vmatprep.subr.msk.bf16.mxu1 %vm6221_vm13, %v1018_v42  ;;  %4000 = vmatprep.mubr.msk.bf16.mxu0 %vm6215_vm0, %v4292_v12  ;;  %v1011_v61 = vpack.c.bf16 %v994_v56, %v991_v60  ;;  %v1009_v62 = vpack.c.bf16 %v989_v59, %v986_v58  ;;  %v985_v17 = vsel %vm934_vm12, %v4623_v4, %v964_v54  ;;  %v4699_v4 = vld [vmem:[%s6182_s3 + $0x1] ss:$2 sm:$0xf]  ;;  %v1331_v19 = vrot.slane %v1212_v8, 4 }
 0x1b4   : > { %1059 = vmatpush1.bf16.msra.mxu1 %v1042_v29  ;;  %v1008_v0 = vpack.c.bf16 %v988_v63, %v985_v17  ;;  %v1252_v6 = vrot.slane %v4699_v4, %v4694_v3  ;;  %v1221_v9 = vrot.slane %v4706_v7, %v4694_v3  ;;  %v4720_v22 = vrot.slane %v4292_v12, 4 }
 0x1b5   : > { %1060 = vmatprep.subr.bf16.mxu1 %v1015_v14  ;;  %v1169_v32 = vstv %s3874_s20  ;;  %v4732_v35 = vpop.permute.xlu1 %1141  ;;  %vm1202_vm7 = vcmask 523264   ;;  %v4745_v42 = vsub.s32 3, %v4691_v2  ;;  %vm1206_vm12 = vcmask 519168   ;;  %s3720_s20 = sadd.s32 (%p4412_p5), %s4248_s23, %s4052_s21 }
 0x1b6   : > { %v1273_v10 = vmul.f32 %v1252_v6, %v1212_v8  ;;  %v4710_v11 = vmul.f32 0.0, %v1221_v9  ;;  %v4712_v5 = vmul.f32 %v1221_v9, %v1212_v8  ;;  %v1269_v23 = vmul.f32 0.0, %v1252_v6  ;;  %s3919_s14 = sshll.u32 (%p4412_p5), %s3720_s20, 3 }
 0x1b7   : > { %v1332_v25 = vsel %vm6221_vm13, %v4720_v22, %v1331_v19  ;;  %vm1172_vm8 = vcmp.ge.s32.totalorder %v1168_v30, %v1169_v32  ;;  %v1264_v45 = vrot.slane %v4699_v4, %v4745_v42  ;;  %v1233_v48 = vrot.slane %v4706_v7, %v4745_v42 }
 0x1b8   : > { %1061 = vmatpush1.bf16.msra.mxu1 %v1014_v52  ;;  %1390 = vrot.lane.b32.xlu0 %v1273_v10, %s6219_s17  ;;  %v1416_v15 = vrot.slane %v4710_v11, 4  ;;  %v1420_v16 = vrot.slane %v4712_v5, 4  ;;  %v4146_v26 = vpack.i.bf16 %v4720_v22, %v1332_v25  ;;  %v1167_v51 = vadd.s32 128, %v1166_v27 }
 0x1b9   : > { %1062 = vmatprep.subr.bf16.mxu1 %v1012_v57  ;;  %vm1170_vm9 = vcmp.ge.s32.totalorder %v1166_v27, %v1169_v32  ;;  %v4791_v19 = vsub.s32 1, %v4691_v2 }
 0x1ba   : > { %1428 = vrot.lane.b32.xlu1 %v1416_v15, %s6239_s30  ;;  %v1421_v20 = vsel %vm6221_vm13, %v1416_v15, %v1420_v16 }
 0x1bc   : > { %1063 = vmatpush1.bf16.msra.mxu1 %v1011_v61  ;;  %1436 = vrot.lane.b32.xlu0 %v1421_v20, %s6239_s30 }
 0x1bd   : > { %1064 = vmatprep.subr.bf16.mxu1 %v1009_v62 }
 0x1be   : > { %1382 = vrot.lane.b32.xlu1 %v1269_v23, %s6219_s17 }
 0x1c0   : > { %1065 = vmatpush1.bf16.msra.mxu1 %v1008_v0  ;;  %4147 = vrot.lane.b32.xlu0 %v4146_v26, %s6240_s29 }
 0x1c3   : > { %3871 = vmatmul.mubr.msk.bf16.vlgmr.msra.gmra.mxu1 %vm1037_vm11, %v4175_v36  ;;  %vm1176_vm11 = vcmp.lt.s32.totalorder %v1168_v30, %v1173_v24  ;;  %v1256_v30 = vrot.slane %v4699_v4, %v4791_v19 }
 0x1c4   : > { %1717 = vmatprep.mubr.bf16.mxu1 %v4290_v13  ;;  %vm4735_vm6 = vmand %vm1172_vm8, %vm1176_vm11  ;;  %vm1174_vm8 = vcmp.lt.s32.totalorder %v1166_v27, %v1173_v24 }
 0x1c5   : > { %vm4767_vm0 = vmand %vm1170_vm9, %vm1174_vm8  ;;  %vm6225_vm8 = vcmask 523268  }
 0x272   : > { %v1127_v34 = vpop.f32.mrf.mxu0 }
 0x273   : > { %v1128_v37 = vadd.f32 %v1127_v34, %v4730_v28 }
 0x274   : > { %v3984_v18 = vpop.f32.mrf.mxu0 }
 0x275   : > { %vm1136_vm14 = vcmp.ge.f32.partialorder %v1128_v37, 0.0  ;;  %v1146_v1 = vmul.f32 %v4732_v35, %v1128_v37 }
 0x276   : > { %v1130_v31 = vpop.f32.mrf.mxu0 }
 0x277   : > { %v1152_v21 = vsel %vm1136_vm14, %v1128_v37, %v1146_v1  ;;  %v1131_v36 = vadd.f32 %v1130_v31, %v1030_v38  ;;  %vm1171_vm14 = vcmp.ge.s32.totalorder %v1167_v51, %v1169_v32  ;;  %v1225_v1 = vrot.slane %v4706_v7, %v4791_v19 }
 0x278   : > { %v1196_v39 = vsel %vm4735_vm6, %v1152_v21, 0.0  ;;  %v3985_v40 = vpop.f32.mrf.mxu0 }
 0x279   : > { %1203 = vst.msk [vmem:[#allocation2 + $0x18] sm:$0xff] %vm1202_vm7, %v1196_v39  ;;  %vm1139_vm1 = vcmp.ge.f32.partialorder %v1131_v36, 0.0  ;;  %v1149_v41 = vmul.f32 %v4732_v35, %v1131_v36 }
 0x27b   : > { %v1155_v43 = vsel %vm1139_vm1, %v1131_v36, %v1149_v41  ;;  %vm1175_vm1 = vcmp.lt.s32.totalorder %v1167_v51, %v1173_v24 }
 0x27c   : > { %v1199_v44 = vsel %vm4735_vm6, %v1155_v43, 0.0  ;;  %vm4777_vm3 = vmand %vm1171_vm14, %vm1175_vm1  ;;  %vm6252_vm14 = vcmask 908288  }
 0x27d   : > { %1207 = vst.msk [vmem:[#allocation2 + $0x38] sm:$0xf] %vm1206_vm12, %v1199_v44  ;;  %vm6253_vm1 = vmmov %vm6252_vm14 }
 0x280   : > { %v1211_v46 = vld [vmem:[#allocation2 + $0x18] sm:$0xff] }
 0x281   : > { %v4752_v29 = vrot.slane %v1211_v46, 4  ;;  %1464 = vst.msk [vmem:[#allocation3 + $0xa0] sm:$0xff] %vm1202_vm7, %v1211_v46  ;;  %v1272_v14 = vmul.f32 %v1264_v45, %v1211_v46  ;;  %v4760_v52 = vmul.f32 %v1233_v48, %v1211_v46 }
 0x283   : > { %v1084_v47 = vpop.f32.mrf.mxu1  ;;  %1537 = vrot.lane.b32.xlu1 %v4752_v29, %s6243_s25  ;;  %1565 = vrot.lane.b32.xlu0 %v1272_v14, %s6244_s16  ;;  %v1470_v58 = vrot.slane %v1272_v14, 4  ;;  %v1419_v9 = vrot.slane %v4760_v52, 4 }
 0x284   : > { %v1215_v50 = vld [vmem:[#allocation2 + $0x38] sm:$0xf]  ;;  %v1085_v17 = vadd.f32 %v1084_v47, %v4730_v28 }
 0x285   : > { %v1086_v49 = vpop.f32.mrf.mxu1  ;;  %1467 = vst.msk [vmem:[#allocation3 + $0xb8] sm:$0xf] %vm1206_vm12, %v1215_v50  ;;  %v1276_v59 = vmul.f32 %v1264_v45, %v1215_v50  ;;  %v4784_v10 = vmul.f32 %v1233_v48, %v1215_v50  ;;  %v1337_v15 = vrot.slane %v1215_v50, 4 }
 0x286   : > { %v1144_v16 = vmul.f32 %v4732_v35, %v1085_v17  ;;  %vm1134_vm9 = vcmp.ge.f32.partialorder %v1085_v17, 0.0  ;;  %v1087_v26 = vadd.f32 %v1086_v49, %v4730_v28 }
 0x287   : > { %v1088_v53 = vpop.f32.mrf.mxu1  ;;  %1388 = vrot.lane.b32.xlu1 %v1272_v14, %s6219_s17  ;;  %1509 = vrot.lane.b32.xlu0 %v4760_v52, %s6245_s27  ;;  %v1338_v20 = vsel %vm6221_vm13, %v4752_v29, %v1337_v15  ;;  %v1475_v23 = vrot.slane %v1276_v59, 4  ;;  %v1426_v37 = vrot.slane %v4784_v10, 4 }
 0x288   : > { %v1089_v54 = vadd.f32 %v1088_v53, %v1030_v38  ;;  %v4795_v25 = vsel %vm1134_vm9, %v1085_v17, %v1144_v16  ;;  %v1145_v28 = vmul.f32 %v4732_v35, %v1087_v26  ;;  %vm6254_vm9 = vcmask 924672  }
 0x289   : > { %v1090_v55 = vpop.f32.mrf.mxu1  ;;  %v1194_v24 = vsel %vm4767_vm0, %v4795_v25, 0.0  ;;  %v1476_v34 = vsel %vm6221_vm13, %v1470_v58, %v1475_v23  ;;  %v1427_v31 = vsel %vm6221_vm13, %v1419_v9, %v1426_v37 }
 0x28a   : > { %vm1137_vm11 = vcmp.ge.f32.partialorder %v1089_v54, 0.0  ;;  %v1147_v56 = vmul.f32 %v4732_v35, %v1089_v54  ;;  %v1091_v57 = vadd.f32 %v1090_v55, %v1030_v38  ;;  %v1270_v18 = vmul.f32 %v1256_v30, %v1194_v24 }
 0x28b   : > { %1481 = vrot.lane.b32.xlu0 %v1470_v58, %s6248_s15  ;;  %1571 = vrot.lane.b32.xlu1 %v1276_v59, %s6244_s16  ;;  %v4813_v38 = vsub.s32 2, %v4691_v2  ;;  %v1328_v36 = vrot.slane %v1194_v24, 4 }
 0x28c   : > { %v1153_v61 = vsel %vm1137_vm11, %v1089_v54, %v1147_v56  ;;  %vm1138_vm4 = vcmp.ge.f32.partialorder %v1091_v57, 0.0  ;;  %v1148_v62 = vmul.f32 %v4732_v35, %v1091_v57  ;;  %v1239_v35 = vmul.f32 %v1225_v1, %v1194_v24 }
 0x28d   : > { %v1197_v63 = vsel %vm4767_vm0, %v1153_v61, 0.0  ;;  %v1260_v39 = vrot.slane %v4699_v4, %v4813_v38  ;;  %v1229_v41 = vrot.slane %v4706_v7, %v4813_v38  ;;  %v1468_v44 = vrot.slane %v1270_v18, 4 }
 0x28e   : > { %1204 = vst [vmem:[#allocation2 + $0x28] sm:$0xf] %v1197_v63  ;;  %v1154_v6 = vsel %vm1138_vm4, %v1091_v57, %v1148_v62  ;;  %vm1135_vm4 = vcmp.ge.f32.partialorder %v1087_v26, 0.0  ;;  %v1417_v45 = vrot.slane %v1239_v35, 4  ;;  %v4874_v63 = vpop.permute.xlu0 %1390  ;;  %vm1675_vm11 = vcmask 1045504  }
 0x28f   : > { %v1198_v8 = vsel %vm4777_vm3, %v1154_v6, 0.0  ;;  %1434 = vrot.lane.b32.xlu0 %v1419_v9, %s6239_s30  ;;  %1515 = vrot.lane.b32.xlu1 %v4784_v10, %s6245_s27  ;;  %v4816_v21 = vsel %vm1135_vm4, %v1087_v26, %v1145_v28  ;;  %v1655_v6 = vld [vmem:[%s6188_s9 + $0x8] sm:$0xf]  ;;  %vm6255_vm4 = vmmov %vm6254_vm9 }
 0x290   : > { %1205 = vst [vmem:[#allocation2 + $0x30] sm:$0xf] %v1198_v8  ;;  %v1195_v40 = vsel %vm4777_vm3, %v4816_v21, 0.0  ;;  %v4295_v8 = vmov 2  }
 0x291   : > { %v1271_v2 = vmul.f32 %v1260_v39, %v1195_v40  ;;  %v1240_v43 = vmul.f32 %v1229_v41, %v1195_v40  ;;  %v1329_v4 = vrot.slane %v1195_v40, 4 }
 0x293   : > { %1353 = vrot.lane.b32.xlu0 %v1338_v20, %s6240_s29  ;;  %1396 = vrot.lane.b32.xlu1 %v1276_v59, %s6219_s17  ;;  %v1469_v47 = vrot.slane %v1271_v2, 4  ;;  %v1418_v49 = vrot.slane %v1240_v43, 4 }
 0x295   : > { %v1213_v27 = vld [vmem:[#allocation2 + $0x28] sm:$0xf] }
 0x296   : > { %1465 = vst [vmem:[#allocation3 + $0xa8] sm:$0xf] %v1213_v27  ;;  %v1243_v7 = vmul.f32 %v1225_v1, %v1213_v27  ;;  %v1274_v46 = vmul.f32 %v1256_v30, %v1213_v27  ;;  %v1333_v14 = vrot.slane %v1213_v27, 4 }
 0x297   : > { %v1214_v32 = vld [vmem:[#allocation2 + $0x30] sm:$0xf]  ;;  %1487 = vrot.lane.b32.xlu0 %v1476_v34, %s6248_s15  ;;  %1543 = vrot.lane.b32.xlu1 %v1338_v20, %s6243_s25 }
 0x298   : > { %1466 = vst [vmem:[#allocation3 + $0xb0] sm:$0xf] %v1214_v32  ;;  %v1334_v48 = vsel %vm6221_vm13, %v1328_v36, %v1333_v14  ;;  %v1275_v50 = vmul.f32 %v1260_v39, %v1214_v32  ;;  %v1471_v51 = vrot.slane %v1274_v46, 4  ;;  %v1244_v53 = vmul.f32 %v1229_v41, %v1214_v32 }
 0x299   : > { %v1335_v55 = vrot.slane %v1214_v32, 4  ;;  %v1422_v59 = vrot.slane %v1243_v7, 4 }
 0x29a   : > { %v1472_v54 = vsel %vm6221_vm13, %v1468_v44, %v1471_v51  ;;  %v1473_v57 = vrot.slane %v1275_v50, 4  ;;  %v1424_v62 = vrot.slane %v1244_v53, 4 }
 0x29b   : > { %1561 = vrot.lane.b32.xlu0 %v1270_v18, %s6244_s16  ;;  %1442 = vrot.lane.b32.xlu1 %v1427_v31, %s6239_s30  ;;  %v1336_v56 = vsel %vm6221_vm13, %v1329_v4, %v1335_v55  ;;  %v1423_v61 = vsel %vm6221_vm13, %v1417_v45, %v1422_v59 }
 0x29c   : > { %v1474_v58 = vsel %vm6221_vm13, %v1469_v47, %v1473_v57  ;;  %v1425_v17 = vsel %vm6221_vm13, %v1418_v49, %v1424_v62  ;;  %vm6257_vm13 = vcmask 130048  }
 0x29f   : > { %1505 = vrot.lane.b32.xlu0 %v1239_v35, %s6245_s27  ;;  %1533 = vrot.lane.b32.xlu1 %v1328_v36, %s6243_s25 }
 0x2a3   : > { %1384 = vrot.lane.b32.xlu0 %v1270_v18, %s6219_s17  ;;  %1563 = vrot.lane.b32.xlu1 %v1271_v2, %s6244_s16 }
 0x2a7   : > { %1287 = vrot.lane.b32.xlu0 %v1239_v35, %s6251_s13  ;;  %1507 = vrot.lane.b32.xlu1 %v1240_v43, %s6245_s27 }
 0x2ab   : > { %1535 = vrot.lane.b32.xlu0 %v1329_v4, %s6243_s25  ;;  %1477 = vrot.lane.b32.xlu1 %v1468_v44, %s6248_s15 }
 0x2af   : > { %1430 = vrot.lane.b32.xlu0 %v1417_v45, %s6239_s30  ;;  %1386 = vrot.lane.b32.xlu1 %v1271_v2, %s6219_s17 }
 0x2b3   : > { %1289 = vrot.lane.b32.xlu1 %v1240_v43, %s6251_s13  ;;  %1511 = vrot.lane.b32.xlu0 %v1243_v7, %s6245_s27 }
 0x2b7   : > { %1567 = vrot.lane.b32.xlu1 %v1274_v46, %s6244_s16  ;;  %1392 = vrot.lane.b32.xlu0 %v1274_v46, %s6219_s17 }
 0x2bb   : > { %1479 = vrot.lane.b32.xlu1 %v1469_v47, %s6248_s15  ;;  %1539 = vrot.lane.b32.xlu0 %v1334_v48, %s6243_s25 }
 0x2bf   : > { %1432 = vrot.lane.b32.xlu1 %v1418_v49, %s6239_s30  ;;  %1349 = vrot.lane.b32.xlu0 %v1334_v48, %s6240_s29 }
 0x2c3   : > { %1394 = vrot.lane.b32.xlu1 %v1275_v50, %s6219_s17  ;;  %1569 = vrot.lane.b32.xlu0 %v1275_v50, %s6244_s16  ;;  %v1611_v50 = vld [vmem:[#allocation3 + $0xa0] sm:$0xff]  ;;  %s4051_s17 = smul.u32 56, %s422_s2 }
 0x2c5   : > { %s6129_s28 = scalar_lea.vmem [#allocation4], %s4051_s17 }
 0x2c7   : > { %1483 = vrot.lane.b32.xlu1 %v1472_v54, %s6248_s15  ;;  %1513 = vrot.lane.b32.xlu0 %v1244_v53, %s6245_s27 }
 0x2cb   : > { %1351 = vrot.lane.b32.xlu1 %v1336_v56, %s6240_s29  ;;  %1541 = vrot.lane.b32.xlu0 %v1336_v56, %s6243_s25 }
 0x2cf   : > { %1485 = vrot.lane.b32.xlu1 %v1474_v58, %s6248_s15  ;;  %1295 = vrot.lane.b32.xlu0 %v1243_v7, %s6251_s13 }
 0x2d3   : > { %1297 = vrot.lane.b32.xlu1 %v1244_v53, %s6251_s13  ;;  %1438 = vrot.lane.b32.xlu0 %v1423_v61, %s6239_s30 }
 0x2d7   : > { %1440 = vrot.lane.b32.xlu1 %v1425_v17, %s6239_s30  ;;  %1341 = vrot.lane.b32.xlu0 %v1328_v36, %s6240_s29 }
 0x2db   : > { %1343 = vrot.lane.b32.xlu1 %v1329_v4, %s6240_s29  ;;  %1285 = vrot.lane.b32.xlu0 %v4710_v11, %s6251_s13  ;;  %v1654_v11 = vld [vmem:[%s6188_s9] sm:$0xff] }
 0x2df   : > { %1293 = vrot.lane.b32.xlu1 %v4712_v5, %s6251_s13  ;;  %1291 = vrot.lane.b32.xlu0 %v4760_v52, %s6251_s13  ;;  %v4882_v5 = vpop.permute.xlu1 %1428  ;;  %v4884_v52 = vpop.permute.xlu0 %1436 }
 0x2e3   : > { %1299 = vrot.lane.b32.xlu1 %v4784_v10, %s6251_s13  ;;  %1345 = vrot.lane.b32.xlu0 %v4752_v29, %s6240_s29  ;;  %v4889_v29 = vld [vmem:[%s6179_s0] ss:$0 sm:$0xff]  ;;  %v4892_v9 = vpop.permute.xlu1 %1382  ;;  %v4894_v10 = vpop.permute.xlu0 %4147 }
 0x2e7   : > { %1663 = vperm.xlu0 %4143, %v1655_v6   ;;  %1658 = vperm.xlu1 %4151, %v1654_v11  }
 0x2eb   : > { %4152 = vset.pattern.permute.xlu1 %v4295_v8 }
 0x2ec   : > { %1782 = vperm.xlu1 %4152, %v4889_v29  }
 0x2f0   : > { %4158 = vset.pattern.permute.xlu1 %v4290_v13 }
 0x2f5   : > { %v1538_v15 = vpop.permute.xlu1 %1537  ;;  %v4897_v16 = vpop.permute.xlu0 %1565 }
 0x2f6   : > { %1557 = vst.msk [vmem:[#allocation3 + $0x100] sm:$0xf0] %vm6225_vm8, %v1538_v15 }
 0x2f7   : > { %1585 = vst.msk [vmem:[#allocation3 + $0x130] sm:$0xff] %vm1202_vm7, %v4897_v16 }
 0x2f9   : > { %v1389_v20 = vpop.permute.xlu1 %1388  ;;  %v4902_v23 = vpop.permute.xlu0 %1509 }
 0x2fa   : > { %1529 = vst.msk [vmem:[#allocation3 + $0xe8] sm:$0xff] %vm1202_vm7, %v4902_v23 }
 0x2fd   : > { %v4906_v26 = vpop.permute.xlu1 %1571  ;;  %v4908_v27 = vpop.permute.xlu0 %1481 }
 0x2fe   : > { %1588 = vst.msk [vmem:[#allocation3 + $0x148] sm:$0xf] %vm1206_vm12, %v4906_v26  ;;  %v1629_v37 = vld [vmem:[#allocation3 + $0x130] sm:$0xff] }
 0x2ff   : > { %1501 = vst.msk [vmem:[#allocation3 + $0xb8] sm:$0xf0] %vm6225_vm8, %v4908_v27 }
 0x301   : > { %v4914_v30 = vpop.permute.xlu1 %1515  ;;  %v4916_v32 = vpop.permute.xlu0 %1434  ;;  %v1620_v46 = vld [vmem:[#allocation3 + $0xe8] sm:$0xff] }
 0x302   : > { %1532 = vst.msk [vmem:[#allocation3 + $0x100] sm:$0xf] %vm1206_vm12, %v4914_v30 }
 0x305   : > { %v4920_v24 = vpop.permute.xlu1 %1396  ;;  %v4922_v34 = vpop.permute.xlu0 %1353  ;;  %v1632_v28 = vld [vmem:[#allocation3 + $0x148] sm:$0xf] }
 0x306   : > { %v1653_v18 = vpack.c.bf16 %v1632_v28, %v1629_v37  ;;  %v1614_v47 = vld [vmem:[#allocation3 + $0xb8] sm:$0xff] }
 0x307   : > { %v1644_v51 = vpack.c.bf16 %v1614_v47, %v1611_v50 }
 0x308   : > { %v1683_v1 = vsel %vm1675_vm11, %v1653_v18, 0 }
 0x309   : > { %v4925_v31 = vpop.permute.xlu1 %1543  ;;  %3987 = vmatpush3.bf16.msra.mxu0 %v1683_v1  ;;  %v4927_v35 = vpop.permute.xlu0 %1487  ;;  %v1623_v41 = vld [vmem:[#allocation3 + $0x100] sm:$0xff] }
 0x30a   : > { %1560 = vst.msk [vmem:[#allocation3 + $0x118] sm:$0xff] %vm1202_vm7, %v4925_v31  ;;  %1504 = vst.msk [vmem:[#allocation3 + $0xd0] sm:$0xff] %vm1202_vm7, %v4927_v35  ;;  %3988 = vmatprep.subr.bf16.mxu0 %v4292_v12 }
 0x30d   : > { %v4934_v36 = vpop.permute.xlu1 %1442  ;;  %v4936_v39 = vpop.permute.xlu0 %1561 }
 0x311   : > { %v1534_v40 = vpop.permute.xlu1 %1533  ;;  %v4938_v2 = vpop.permute.xlu0 %1505  ;;  %v1626_v43 = vld [vmem:[#allocation3 + $0x118] sm:$0xff]  ;;  %v1617_v44 = vld [vmem:[#allocation3 + $0xd0] sm:$0xff] }
 0x312   : > { %v1650_v4 = vpack.c.bf16 %v1626_v43, %v1623_v41  ;;  %v1647_v14 = vpack.c.bf16 %v1620_v46, %v1617_v44 }
 0x314   : > { %3989 = vmatpush3.bf16.msra.mxu0 %v1650_v4 }
 0x315   : > { %v4940_v45 = vpop.permute.xlu1 %1563  ;;  %v4942_v7 = vpop.permute.xlu0 %1384  ;;  %3990 = vmatprep.subr.bf16.mxu0 %v4292_v12 }
 0x316   : > { %v1574_v50 = vsel %vm6253_vm1, %v4940_v45, %v4897_v16 }
 0x318   : > { %3991 = vmatpush3.bf16.msra.mxu0 %v1647_v14 }
 0x319   : > { %v4945_v48 = vpop.permute.xlu1 %1507  ;;  %v4947_v49 = vpop.permute.xlu0 %1287  ;;  %3992 = vmatprep.subr.bf16.mxu0 %v4292_v12 }
 0x31c   : > { %3993 = vmatpush3.bf16.msra.mxu0 %v1644_v51 }
 0x31d   : > { %v1478_v53 = vpop.permute.xlu1 %1477  ;;  %v1536_v54 = vpop.permute.xlu0 %1535  ;;  %3994 = vmatprep.subr.bf16.mxu0 %v4292_v12 }
 0x31e   : > { %v1545_v55 = vsel %vm611_vm2, %v1534_v40, %v1536_v54  ;;  %v1546_v56 = vsel %vm611_vm2, %v1536_v54, %v1538_v15 }
 0x31f   : > { %1555 = vst [vmem:[#allocation3 + $0xf0] sm:$0xf0] %v1545_v55  ;;  %1556 = vst [vmem:[#allocation3 + $0xf8] sm:$0xf0] %v1546_v56 }
 0x321   : > { %v4953_v57 = vpop.permute.xlu1 %1386  ;;  %v1431_v58 = vpop.permute.xlu0 %1430 }
 0x322   : > { %v1400_v59 = vsel %vm529_vm10, %v4953_v57, %v1389_v20  ;;  %v1444_v61 = vsel %vm6224_vm15, %v4882_v5, %v1431_v58 }
 0x323   : > { %1412 = vst.msk [vmem:[#allocation3 + $0x58] sm:$0xff] %vm1202_vm7, %v1400_v59  ;;  %1456 = vst [vmem:[#allocation3 + $0x60] sm:$0xf0] %v1444_v61 }
 0x325   : > { %v4960_v62 = vpop.permute.xlu1 %1289  ;;  %v1512_v12 = vpop.permute.xlu0 %1511 }
 0x329   : > { %v1568_v17 = vpop.permute.xlu1 %1567  ;;  %v1393_v6 = vpop.permute.xlu0 %1392 }
 0x32a   : > { %v1401_v11 = vsel %vm529_vm10, %v4874_v63, %v1393_v6 }
 0x32b   : > { %1413 = vst [vmem:[#allocation3 + $0x60] sm:$0xf] %v1401_v11 }
 0x32d   : > { %v1480_v8 = vpop.permute.xlu1 %1479  ;;  %v1540_v15 = vpop.permute.xlu0 %1539 }
 0x32e   : > { %v1489_v37 = vsel %vm6223_vm5, %v1478_v53, %v1480_v8  ;;  %v1490_v20 = vsel %vm6223_vm5, %v1480_v8, %v4908_v27 }
 0x32f   : > { %1499 = vst [vmem:[#allocation3 + $0xa8] sm:$0xf0] %v1489_v37  ;;  %1500 = vst [vmem:[#allocation3 + $0xb0] sm:$0xf0] %v1490_v20 }
 0x331   : > { %v1433_v5 = vpop.permute.xlu1 %1432  ;;  %v4967_v28 = vpop.permute.xlu0 %1349 }
 0x332   : > { %v1445_v18 = vsel %vm6224_vm15, %v1431_v58, %v1433_v5  ;;  %v1446_v1 = vsel %vm6224_vm15, %v1433_v5, %v4916_v32  ;;  %v4150_v5 = vunpack.i.h.bf16 %v4894_v10 }
 0x333   : > { %1457 = vst [vmem:[#allocation3 + $0x68] sm:$0xf0] %v1445_v18  ;;  %1458 = vst.msk [vmem:[#allocation3 + $0x70] sm:$0xf0] %vm6225_vm8, %v1446_v1 }
 0x335   : > { %v1395_v63 = vpop.permute.xlu1 %1394  ;;  %v1570_v40 = vpop.permute.xlu0 %1569 }
 0x336   : > { %v1402_v41 = vsel %vm529_vm10, %v1393_v6, %v1395_v63  ;;  %v1403_v27 = vsel %vm529_vm10, %v1395_v63, %v4920_v24  ;;  %v1575_v43 = vsel %vm6252_vm14, %v1568_v17, %v1570_v40  ;;  %v1576_v4 = vsel %vm6253_vm1, %v1570_v40, %v4906_v26  ;;  %vm6256_vm14 = vmmov %vm6253_vm1  ;;  %v1613_v20 = vld [vmem:[#allocation3 + $0xb0] sm:$0xff]  ;;  %v1612_v63 = vld [vmem:[#allocation3 + $0xa8] sm:$0xff] }
 0x337   : > { %1414 = vst [vmem:[#allocation3 + $0x68] sm:$0xf] %v1402_v41  ;;  %1415 = vst.msk [vmem:[#allocation3 + $0x70] sm:$0xf] %vm1206_vm12, %v1403_v27  ;;  %v1573_v26 = vsel %vm6256_vm14, %v4936_v39, %v4940_v45  ;;  %vm6260_vm14 = vcmask 130048   ;;  %vm4296_vm1 = vmmov 1  }
 0x338   : > { %1586 = vst [vmem:[#allocation3 + $0x138] sm:$0xf] %v1575_v43  ;;  %1587 = vst [vmem:[#allocation3 + $0x140] sm:$0xf] %v1576_v4 }
 0x339   : > { %v1484_v32 = vpop.permute.xlu1 %1483  ;;  %v1514_v44 = vpop.permute.xlu0 %1513 }
 0x33a   : > { %v1519_v46 = vsel %vm6254_vm9, %v1512_v12, %v1514_v44  ;;  %v1520_v14 = vsel %vm6255_vm4, %v1514_v44, %v4914_v30  ;;  %vm6259_vm9 = vcmask 138240  }
 0x33b   : > { %1530 = vst [vmem:[#allocation3 + $0xf0] sm:$0xf] %v1519_v46  ;;  %1531 = vst [vmem:[#allocation3 + $0xf8] sm:$0xf] %v1520_v14 }
 0x33d   : > { %v1352_v24 = vpop.permute.xlu1 %1351  ;;  %v1542_v47 = vpop.permute.xlu0 %1541 }
 0x33e   : > { %v1360_v51 = vsel %vm6257_vm13, %v1352_v24, %v4922_v34  ;;  %v1547_v39 = vsel %vm611_vm2, %v1540_v15, %v1542_v47  ;;  %v1548_v16 = vsel %vm611_vm2, %v1542_v47, %v4925_v31  ;;  %vm6258_vm13 = vmmov %vm6255_vm4  ;;  %v1604_v43 = vld [vmem:[#allocation3 + $0x68] sm:$0xff] }
 0x33f   : > { %v1631_v53 = vld [vmem:[#allocation3 + $0x140] sm:$0xf]  ;;  %v1630_v54 = vld [vmem:[#allocation3 + $0x138] sm:$0xf]  ;;  %1373 = vst.msk [vmem:[#allocation3 + $0x40] sm:$0xff] %vm1202_vm7, %v1360_v51  ;;  %v1518_v6 = vsel %vm6258_vm13, %v4945_v48, %v4902_v23  ;;  %vm5015_vm13 = vmpackc.low %vm4296_vm1, %vm4777_vm3 }
 0x340   : > { %v1652_v30 = vpack.c.bf16 %v1631_v53, %v1574_v50  ;;  %v1651_v55 = vpack.c.bf16 %v1630_v54, %v1573_v26  ;;  %v1603_v26 = vld [vmem:[#allocation3 + $0x60] sm:$0xff] }
 0x341   : > { %v1486_v56 = vpop.permute.xlu1 %1485  ;;  %v1296_v58 = vpop.permute.xlu0 %1295 }
 0x342   : > { %3878 = vmatprep.subr.msk.bf16.mxu1 %vm1675_vm11, %v1652_v30  ;;  %v1677_v59 = vsel %vm1675_vm11, %v1651_v55, 0  ;;  %v1492_v34 = vsel %vm6223_vm5, %v1486_v56, %v4927_v35  ;;  %v1622_v45 = vld [vmem:[#allocation3 + $0xf8] sm:$0xff]  ;;  %v1621_v61 = vld [vmem:[#allocation3 + $0xf0] sm:$0xff]  ;;  %v1491_v11 = vsel %vm6223_vm5, %v1484_v32, %v1486_v56  ;;  %v1517_v35 = vsel %vm6255_vm4, %v4938_v2, %v4945_v48 }
 0x343   : > { %1688 = vmatpush1.bf16.msra.mxu1 %v1677_v59  ;;  %v1649_v12 = vpack.c.bf16 %v1548_v16, %v1622_v45  ;;  %v1648_v17 = vpack.c.bf16 %v1547_v39, %v1621_v61  ;;  %v1646_v15 = vpack.c.bf16 %v1518_v6, %v1492_v34  ;;  %v1645_v18 = vpack.c.bf16 %v1517_v35, %v1491_v11  ;;  %v5079_v35 = vld [vmem:[%s6182_s3] ss:$2 sm:$0xf] }
 0x344   : > { %v4187_v48 = vpack.c.bf16 %v1613_v20, %v4816_v21  ;;  %v4190_v21 = vpack.c.bf16 %v1612_v63, %v4795_v25  ;;  %v1398_v59 = vsel %vm529_vm10, %v4892_v9, %v4942_v7  ;;  %v1602_v9 = vld [vmem:[#allocation3 + $0x58] sm:$0xff] }
 0x345   : > { %v1298_v8 = vpop.permute.xlu1 %1297  ;;  %v1439_v37 = vpop.permute.xlu0 %1438  ;;  %1689 = vmatprep.subr.bf16.mxu1 %v1649_v12  ;;  %v5054_v12 = vld [vmem:[#allocation2] sm:$0xff] }
 0x346   : > { %v1305_v31 = vsel %vm6259_vm9, %v1296_v58, %v1298_v8  ;;  %vm6263_vm9 = vmmov %vm6260_vm14 }
 0x347   : > { %1690 = vmatpush1.bf16.msra.mxu1 %v1648_v17  ;;  %1317 = vst [vmem:[#allocation3 + $0x20] sm:$0xf] %v1305_v31  ;;  %v1359_v46 = vsel %vm6263_vm9, %v4967_v28, %v1352_v24  ;;  %vm6264_vm4 = vmmov %vm6263_vm9  ;;  %v1399_v24 = vsel %vm529_vm10, %v4942_v7, %v4953_v57  ;;  %vm6268_vm9 = vcmask 138240  }
 0x348   : > { %1691 = vmatprep.subr.bf16.mxu1 %v1646_v15  ;;  %v1637_v30 = vpack.c.bf16 %v1399_v24, %v1359_v46 }
 0x349   : > { %v1441_v23 = vpop.permute.xlu1 %1440  ;;  %v1342_v1 = vpop.permute.xlu0 %1341 }
 0x34a   : > { %v1448_v40 = vsel %vm6224_vm15, %v1439_v37, %v1441_v23  ;;  %v1449_v41 = vsel %vm6224_vm15, %v1441_v23, %v4934_v36  ;;  %v1355_v27 = vsel %vm6260_vm14, %v4150_v5, %v1342_v1  ;;  %v1447_v36 = vsel %vm6224_vm15, %v4884_v52, %v1439_v37  ;;  %vm5029_vm14 = vmpackc.low %vm4296_vm1, %vm4767_vm0  ;;  %v4176_v37 = vld [vmem:[%s6187_s8] sm:$0x3f]  }
 0x34b   : > { %1692 = vmatpush1.bf16.msra.mxu1 %v1645_v18  ;;  %1461 = vst.msk [vmem:[#allocation3 + $0x88] sm:$0xff] %vm1202_vm7, %v1449_v41  ;;  %1367 = vst [vmem:[#allocation3 + $0x18] sm:$0xf0] %v1355_v27  ;;  %v1640_v44 = vpack.c.bf16 %v1448_v40, %v1604_v43  ;;  %v4149_v52 = vunpack.i.l.bf16 %v4894_v10  ;;  %v1639_v50 = vpack.c.bf16 %v1447_v36, %v1603_v26  ;;  %v1605_v10 = vld [vmem:[#allocation3 + $0x70] sm:$0xff]  ;;  %v1813_v18 = vld [vmem:[#allocation2 + $0x20] sm:$0xf] }
 0x34c   : > { %4188 = vmatprep.subr.msk.bf16.mxu1 %vm5015_vm13, %v4187_v48  ;;  %vm6267_vm1 = vmmov %vm6264_vm4  ;;  %v1822_v23 = vrot.slane %v5079_v35, %v4694_v3  ;;  %v1931_v48 = vrot.slane %v1813_v18, 4 }
 0x34d   : > { %v1344_v4 = vpop.permute.xlu1 %1343  ;;  %v1286_v32 = vpop.permute.xlu0 %1285  ;;  %v1358_v51 = vsel %vm6267_vm1, %v4149_v52, %v4967_v28  ;;  %v1599_v28 = vld [vmem:[#allocation3 + $0x40] sm:$0xff] }
 0x34e   : > { %v1356_v14 = vsel %vm6264_vm4, %v1342_v1, %v1344_v4  ;;  %vm6269_vm4 = vmmov %vm6268_vm9  ;;  %v1636_v39 = vpack.c.bf16 %v1398_v59, %v1358_v51  ;;  %v1638_v17 = vpack.c.bf16 %v1602_v9, %v1599_v28  ;;  %v5086_v63 = vmul.f32 %v5054_v12, %v1822_v23 }
 0x34f   : > { %4191 = vmatpush1.bf16.msk.msra.mxu1 %vm5029_vm14, %v4190_v21  ;;  %1368 = vst [vmem:[#allocation3 + $0x20] sm:$0xf0] %v1356_v14  ;;  %vm6270_vm1 = vmmov %vm6269_vm4  ;;  %v5088_v40 = vmul.f32 %v1822_v23, %v1813_v18 }
 0x350   : > { %1695 = vmatprep.subr.bf16.mxu1 %v1640_v44  ;;  %v1302_v34 = vsel %vm6270_vm1, %v4947_v49, %v4960_v62  ;;  %v2015_v41 = vrot.slane %v5086_v63, 4 }
 0x351   : > { %v1294_v53 = vpop.permute.xlu1 %1293  ;;  %v1292_v54 = vpop.permute.xlu0 %1291  ;;  %v2019_v27 = vrot.slane %v5088_v40, 4 }
 0x352   : > { %v1304_v25 = vsel %vm6268_vm9, %v1294_v53, %v1296_v58  ;;  %v1303_v55 = vsel %vm6269_vm4, %v4960_v62, %v1292_v54  ;;  %v1608_v56 = vld [vmem:[#allocation3 + $0x88] sm:$0xff]  ;;  %vm6271_vm9 = vmmov %vm6270_vm1  ;;  %vm6272_vm4 = vcmask 130048   ;;  %v1301_v62 = vsel %vm6270_vm1, %v1286_v32, %v4947_v49  ;;  %v5074_v49 = vld [vmem:[%s6182_s3 + $0x1] ss:$2 sm:$0xf]  ;;  %2027 = vrot.lane.b32.xlu1 %v2015_v41, %s6239_s30 }
 0x353   : > { %1696 = vmatpush1.bf16.msra.mxu1 %v1639_v50  ;;  %1316 = vst [vmem:[#allocation3 + $0x18] sm:$0xf] %v1304_v25  ;;  %1315 = vst.msk [vmem:[#allocation3 + $0x10] sm:$0xff] %vm1202_vm7, %v1303_v55  ;;  %v1641_v57 = vpack.c.bf16 %v1608_v56, %v1605_v10  ;;  %v1852_v5 = vrot.slane %v5074_v49, %v4694_v3  ;;  %vm6275_vm1 = vcmask 1043456  }
 0x354   : > { %1697 = vmatprep.subr.bf16.mxu1 %v1637_v30  ;;  %v2020_v43 = vsel %vm6275_vm1, %v2015_v41, %v2019_v27 }
 0x355   : > { %v1300_v16 = vpop.permute.xlu1 %1299  ;;  %3995 = vmatpush3.bf16.msra.mxu0 %v1641_v57  ;;  %v1346_v58 = vpop.permute.xlu0 %1345  ;;  %v1873_v1 = vmul.f32 %v1852_v5, %v1813_v18  ;;  %v1869_v36 = vmul.f32 %v5054_v12, %v1852_v5 }
 0x356   : > { %v1306_v45 = vsel %vm6271_vm9, %v1298_v8, %v1300_v16  ;;  %v1357_v61 = vsel %vm6272_vm4, %v1344_v4, %v1346_v58  ;;  %3996 = vmatprep.subr.bf16.mxu0 %v5054_v12  ;;  %v1595_v7 = vld [vmem:[#allocation3 + $0x20] sm:$0xff]  ;;  %vm6222_vm9 = vcmask 883712   ;;  %vm6273_vm4 = vmmov 0  }
 0x357   : > { %1698 = vmatpush1.bf16.msra.mxu1 %v1636_v39  ;;  %1318 = vst.msk [vmem:[#allocation3 + $0x28] sm:$0xf] %vm1206_vm12, %v1306_v45  ;;  %v1634_v6 = vpack.c.bf16 %v1595_v7, %v1302_v34  ;;  %1989 = vrot.lane.b32.xlu0 %v1873_v1, %s6274_s1  ;;  %v1864_v7 = vrot.slane %v5074_v49, %v4745_v42 }
 0x358   : > { %1370 = vst.msk [vmem:[#allocation3 + $0x28] sm:$0xf0] %vm6225_vm8, %v1357_v61  ;;  %1981 = vrot.lane.b32.xlu1 %v1869_v36, %s6274_s1 }
 0x359   : > { %3997 = vmatpush3.bf16.msra.mxu0 %v1638_v17  ;;  %1699 = vmatprep.subr.bf16.mxu1 %v1634_v6 }
 0x35a   : > { %v1594_v11 = vld [vmem:[#allocation3 + $0x18] sm:$0xff]  ;;  %3998 = vmatprep.subr.bf16.mxu0 %v5054_v12  ;;  %v1593_v15 = vld [vmem:[#allocation3 + $0x10] sm:$0xff] }
 0x35b   : > { %v1633_v8 = vpack.c.bf16 %v1594_v11, %v1301_v62  ;;  %2035 = vrot.lane.b32.xlu0 %v2020_v43, %s6239_s30 }
 0x35d   : > { %1700 = vmatpush1.bf16.msra.mxu1 %v1633_v8  ;;  %v1834_v8 = vrot.slane %v5079_v35, %v4745_v42 }
 0x35f   : > { %v1596_v31 = vld [vmem:[#allocation3 + $0x28] sm:$0xff] }
 0x360   : > { %v1635_v20 = vpack.c.bf16 %v1596_v31, %v1593_v15  ;;  %3879 = vmatmul.mubr.msk.bf16.vlgmr.msra.gmra.mxu1 %vm6222_vm9, %v4176_v37 }
 0x361   : > { %2316 = vmatprep.mubr.bf16.mxu1 %v4290_v13 }
 0x362   : > { %3999 = vmatpush3.bf16.msra.mxu0 %v1635_v20  ;;  %v5102_v44 = vpop.permute.xlu1 %1658  ;;  %v1664_v21 = vpop.permute.xlu0 %1663 }
 0x363   : > { %4004 = vmatprep.subr.bf16.mxu0 %v5054_v12 }
 0x365   : > { %4001 = vmatmul.mubr.msk.bf16.vlgmr.msra.gmra.mxu0 %vm6222_vm9, %v4176_v37  ;;  %vm6276_vm9 = vmmov %vm6275_vm1 }
 0x366   : > { %4018 = vmatprep.mubr.msk.bf16.mxu0 %vm6273_vm4, %v5054_v12  ;;  %v1932_v4 = vsel %vm6276_vm9, %v4720_v22, %v1931_v48 }
 0x367   : > { %v4153_v32 = vpack.i.bf16 %v4720_v22, %v1932_v4  ;;  %v5107_v51 = vpop.permute.xlu1 %1782 }
 0x369   : > { %4154 = vrot.lane.b32.xlu0 %v4153_v32, %s6240_s29  ;;  %v1856_v32 = vrot.slane %v5074_v49, %v4791_v19 }
 0x420   : > { %v1719_v46 = vpop.f32.mrf.mxu1 }
 0x421   : > { %v1720_v18 = vadd.f32 %v1719_v46, %v5102_v44 }
 0x422   : > { %v5104_v14 = vpop.f32.mrf.mxu1 }
 0x423   : > { %v1785_v27 = vmul.f32 %v5107_v51, %v1720_v18  ;;  %v1722_v36 = vadd.f32 %v5104_v14, %v5102_v44  ;;  %v1826_v14 = vrot.slane %v5079_v35, %v4791_v19 }
 0x424   : > { %v1723_v26 = vpop.f32.mrf.mxu1 }
 0x425   : > { %v1762_v52 = vpop.f32.mrf.mxu0  ;;  %v1724_v50 = vadd.f32 %v1723_v26, %v1664_v21  ;;  %v1786_v26 = vmul.f32 %v5107_v51, %v1722_v36 }
 0x426   : > { %v1763_v24 = vadd.f32 %v1762_v52, %v5102_v44  ;;  %v1725_v54 = vpop.f32.mrf.mxu1 }
 0x427   : > { %v4002_v53 = vpop.f32.mrf.mxu0  ;;  %vm1773_vm1 = vcmp.ge.f32.partialorder %v1724_v50, 0.0  ;;  %v1788_v30 = vmul.f32 %v5107_v51, %v1724_v50  ;;  %v1726_v25 = vadd.f32 %v1725_v54, %v1664_v21 }
 0x428   : > { %vm1772_vm9 = vcmp.ge.f32.partialorder %v1763_v24, 0.0  ;;  %v1787_v22 = vmul.f32 %v5107_v51, %v1763_v24 }
 0x429   : > { %v1765_v55 = vpop.f32.mrf.mxu0  ;;  %v1794_v56 = vsel %vm1773_vm1, %v1724_v50, %v1788_v30  ;;  %vm1774_vm5 = vcmp.ge.f32.partialorder %v1726_v25, 0.0  ;;  %v1789_v39 = vmul.f32 %v5107_v51, %v1726_v25  ;;  %vm1771_vm1 = vcmp.ge.f32.partialorder %v1722_v36, 0.0 }
 0x42a   : > { %v1793_v10 = vsel %vm1772_vm9, %v1763_v24, %v1787_v22  ;;  %v1766_v59 = vadd.f32 %v1765_v55, %v1664_v21  ;;  %v1800_v28 = vsel %vm4767_vm0, %v1794_v56, 0.0  ;;  %v5176_v50 = vsel %vm1771_vm1, %v1722_v36, %v1786_v26 }
 0x42b   : > { %v1799_v57 = vsel %vm4735_vm6, %v1793_v10, 0.0  ;;  %v4003_v16 = vpop.f32.mrf.mxu0  ;;  %1806 = vst [vmem:[#allocation2 + $0x28] sm:$0xf] %v1800_v28  ;;  %v1795_v34 = vsel %vm1774_vm5, %v1726_v25, %v1789_v39  ;;  %vm6277_vm5 = vcmask 1043456   ;;  %v1798_v22 = vsel %vm4777_vm3, %v5176_v50, 0.0 }
 0x42c   : > { %1805 = vst.msk [vmem:[#allocation2 + $0x18] sm:$0xff] %vm1202_vm7, %v1799_v57  ;;  %vm1775_vm15 = vcmp.ge.f32.partialorder %v1766_v59, 0.0  ;;  %v1790_v58 = vmul.f32 %v5107_v51, %v1766_v59  ;;  %v1801_v45 = vsel %vm4777_vm3, %v1795_v34, 0.0  ;;  %vm6278_vm9 = vmmov %vm6277_vm5  ;;  %v1860_v51 = vrot.slane %v5074_v49, %v4813_v38 }
 0x42d   : > { %1807 = vst [vmem:[#allocation2 + $0x30] sm:$0xf] %v1801_v45  ;;  %v1830_v25 = vrot.slane %v5079_v35, %v4813_v38  ;;  %v1929_v10 = vrot.slane %v1798_v22, 4  ;;  %vm6281_vm1 = vmmov %vm6277_vm5 }
 0x42e   : > { %v1796_v61 = vsel %vm1775_vm15, %v1766_v59, %v1790_v58  ;;  %vm1770_vm15 = vcmp.ge.f32.partialorder %v1720_v18, 0.0  ;;  %v1871_v30 = vmul.f32 %v1860_v51, %v1798_v22 }
 0x42f   : > { %v1802_v9 = vsel %vm4735_vm6, %v1796_v61, 0.0  ;;  %v5159_v4 = vsel %vm1770_vm15, %v1720_v18, %v1785_v27  ;;  %vm6279_vm15 = vmmov %vm6277_vm5  ;;  %v1841_v55 = vmul.f32 %v1830_v25, %v1798_v22  ;;  %v4297_v18 = vmov 3  }
 0x430   : > { %1808 = vst.msk [vmem:[#allocation2 + $0x38] sm:$0xf] %vm1206_vm12, %v1802_v9  ;;  %v1797_v46 = vsel %vm4767_vm0, %v5159_v4, 0.0  ;;  %v2068_v28 = vrot.slane %v1871_v30, 4 }
 0x431   : > { %v1870_v44 = vmul.f32 %v1856_v32, %v1797_v46  ;;  %v1928_v53 = vrot.slane %v1797_v46, 4  ;;  %v1840_v54 = vmul.f32 %v1826_v14, %v1797_v46  ;;  %v2017_v16 = vrot.slane %v1841_v55, 4 }
 0x432   : > { %v5125_v6 = vld [vmem:[#allocation2 + $0x28] sm:$0xf] }
 0x433   : > { %v1812_v17 = vld [vmem:[#allocation2 + $0x18] sm:$0xff]  ;;  %2064 = vst [vmem:[#allocation3 + $0xa8] sm:$0xf] %v5125_v6  ;;  %v2067_v49 = vrot.slane %v1870_v44, 4  ;;  %v2016_v56 = vrot.slane %v1840_v54, 4  ;;  %v1844_v35 = vmul.f32 %v1826_v14, %v5125_v6  ;;  %v1874_v59 = vmul.f32 %v1856_v32, %v5125_v6 }
 0x434   : > { %v5127_v62 = vrot.slane %v1812_v17, 4  ;;  %2063 = vst.msk [vmem:[#allocation3 + $0xa0] sm:$0xff] %vm1202_vm7, %v1812_v17  ;;  %v1872_v11 = vmul.f32 %v1864_v7, %v1812_v17  ;;  %v5136_v37 = vld [vmem:[#allocation2 + $0x30] sm:$0xf]  ;;  %v5139_v31 = vmul.f32 %v1834_v8, %v1812_v17  ;;  %v1933_v57 = vrot.slane %v5125_v6, 4 }
 0x435   : > { %2065 = vst [vmem:[#allocation3 + $0xb0] sm:$0xf] %v5136_v37  ;;  %v1875_v58 = vmul.f32 %v1860_v51, %v5136_v37  ;;  %v2070_v34 = vrot.slane %v1874_v59, 4  ;;  %v1845_v45 = vmul.f32 %v1830_v25, %v5136_v37  ;;  %v1935_v9 = vrot.slane %v5136_v37, 4 }
 0x436   : > { %2136 = vrot.lane.b32.xlu1 %v5127_v62, %s6243_s25  ;;  %2164 = vrot.lane.b32.xlu0 %v1872_v11, %s6244_s16  ;;  %v2069_v20 = vrot.slane %v1872_v11, 4  ;;  %v2018_v23 = vrot.slane %v5139_v31, 4  ;;  %v1934_v39 = vsel %vm6277_vm5, %v1928_v53, %v1933_v57 }
 0x437   : > { %v1816_v15 = vld [vmem:[#allocation2 + $0x38] sm:$0xf]  ;;  %v2072_v17 = vrot.slane %v1875_v58, 4  ;;  %v2023_v37 = vrot.slane %v1845_v45, 4 }
 0x438   : > { %2066 = vst.msk [vmem:[#allocation3 + $0xb8] sm:$0xf] %vm1206_vm12, %v1816_v15  ;;  %v1876_v5 = vmul.f32 %v1864_v7, %v1816_v15  ;;  %v5149_v1 = vmul.f32 %v1834_v8, %v1816_v15  ;;  %v1937_v41 = vrot.slane %v1816_v15, 4  ;;  %v1936_v7 = vsel %vm6281_vm1, %v1929_v10, %v1935_v9 }
 0x43a   : > { %1987 = vrot.lane.b32.xlu1 %v1872_v11, %s6274_s1  ;;  %2108 = vrot.lane.b32.xlu0 %v5139_v31, %s6245_s27  ;;  %v1938_v48 = vsel %vm6277_vm5, %v5127_v62, %v1937_v41  ;;  %v2074_v43 = vrot.slane %v1876_v5, 4  ;;  %v2025_v52 = vrot.slane %v5149_v1, 4  ;;  %v2021_v11 = vrot.slane %v1844_v35, 4 }
 0x43c   : > { %v2075_v21 = vsel %vm6278_vm9, %v2069_v20, %v2074_v43  ;;  %v2026_v24 = vsel %vm6279_vm15, %v2018_v23, %v2025_v52  ;;  %vm6280_vm9 = vmmov %vm6277_vm5 }
 0x43d   : > { %v2071_v61 = vsel %vm6280_vm9, %v2067_v49, %v2070_v34  ;;  %vm6282_vm15 = vmmov %vm6281_vm1 }
 0x43e   : > { %2080 = vrot.lane.b32.xlu0 %v2069_v20, %s6248_s15  ;;  %2170 = vrot.lane.b32.xlu1 %v1876_v5, %s6244_s16  ;;  %v2073_v6 = vsel %vm6282_vm15, %v2068_v28, %v2072_v17  ;;  %vm6283_vm5 = vmmov %vm6281_vm1  ;;  %v5240_v20 = vpop.permute.xlu0 %1989  ;;  %vm6286_vm15 = vcmask 1039360  }
 0x43f   : > { %v2022_v8 = vsel %vm6283_vm5, %v2016_v56, %v2021_v11  ;;  %vm6284_vm9 = vmmov %vm6281_vm1  ;;  %vm6285_vm1 = vcmask 7168  }
 0x440   : > { %v2024_v15 = vsel %vm6284_vm9, %v2017_v16, %v2023_v37  ;;  %vm6287_vm5 = vmmov %vm6286_vm15 }
 0x441   : > { %vm6288_vm9 = vmmov %vm6285_vm1 }
 0x442   : > { %2033 = vrot.lane.b32.xlu0 %v2018_v23, %s6239_s30  ;;  %2114 = vrot.lane.b32.xlu1 %v5149_v1, %s6245_s27 }
 0x446   : > { %1953 = vrot.lane.b32.xlu0 %v1938_v48, %s6240_s29  ;;  %1995 = vrot.lane.b32.xlu1 %v1876_v5, %s6274_s1  ;;  %v3886_v5 = vld [vmem:[%s6188_s9 + $0x18] sm:$0xf] }
 0x44a   : > { %2086 = vrot.lane.b32.xlu0 %v2075_v21, %s6248_s15  ;;  %2142 = vrot.lane.b32.xlu1 %v1938_v48, %s6243_s25 }
 0x44e   : > { %2041 = vrot.lane.b32.xlu1 %v2026_v24, %s6239_s30  ;;  %2160 = vrot.lane.b32.xlu0 %v1870_v44, %s6244_s16 }
 0x452   : > { %2132 = vrot.lane.b32.xlu1 %v1928_v53, %s6243_s25  ;;  %2104 = vrot.lane.b32.xlu0 %v1840_v54, %s6245_s27 }
 0x456   : > { %2162 = vrot.lane.b32.xlu1 %v1871_v30, %s6244_s16  ;;  %1983 = vrot.lane.b32.xlu0 %v1870_v44, %s6274_s1 }
 0x45a   : > { %2106 = vrot.lane.b32.xlu1 %v1841_v55, %s6245_s27  ;;  %1887 = vrot.lane.b32.xlu0 %v1840_v54, %s6251_s13 }
 0x45e   : > { %2076 = vrot.lane.b32.xlu1 %v2067_v49, %s6248_s15  ;;  %2134 = vrot.lane.b32.xlu0 %v1929_v10, %s6243_s25 }
 0x462   : > { %1985 = vrot.lane.b32.xlu1 %v1871_v30, %s6274_s1  ;;  %2029 = vrot.lane.b32.xlu0 %v2016_v56, %s6239_s30 }
 0x466   : > { %1889 = vrot.lane.b32.xlu1 %v1841_v55, %s6251_s13  ;;  %2110 = vrot.lane.b32.xlu0 %v1844_v35, %s6245_s27 }
 0x46a   : > { %2166 = vrot.lane.b32.xlu1 %v1874_v59, %s6244_s16  ;;  %1991 = vrot.lane.b32.xlu0 %v1874_v59, %s6274_s1 }
 0x46e   : > { %2078 = vrot.lane.b32.xlu1 %v2068_v28, %s6248_s15  ;;  %2138 = vrot.lane.b32.xlu0 %v1934_v39, %s6243_s25 }
 0x472   : > { %2031 = vrot.lane.b32.xlu1 %v2017_v16, %s6239_s30  ;;  %1949 = vrot.lane.b32.xlu0 %v1934_v39, %s6240_s29 }
 0x476   : > { %1993 = vrot.lane.b32.xlu1 %v1875_v58, %s6274_s1  ;;  %2168 = vrot.lane.b32.xlu0 %v1875_v58, %s6244_s16  ;;  %v2211_v58 = vld [vmem:[#allocation3 + $0xa0] sm:$0xff] }
 0x47a   : > { %2082 = vrot.lane.b32.xlu1 %v2071_v61, %s6248_s15  ;;  %2112 = vrot.lane.b32.xlu0 %v1845_v45, %s6245_s27 }
 0x47e   : > { %1951 = vrot.lane.b32.xlu1 %v1936_v7, %s6240_s29  ;;  %2140 = vrot.lane.b32.xlu0 %v1936_v7, %s6243_s25 }
 0x482   : > { %2084 = vrot.lane.b32.xlu1 %v2073_v6, %s6248_s15  ;;  %1895 = vrot.lane.b32.xlu0 %v1844_v35, %s6251_s13 }
 0x486   : > { %1897 = vrot.lane.b32.xlu1 %v1845_v45, %s6251_s13  ;;  %2037 = vrot.lane.b32.xlu0 %v2022_v8, %s6239_s30 }
 0x48a   : > { %2039 = vrot.lane.b32.xlu1 %v2024_v15, %s6239_s30  ;;  %1941 = vrot.lane.b32.xlu0 %v1928_v53, %s6240_s29 }
 0x48e   : > { %1943 = vrot.lane.b32.xlu1 %v1929_v10, %s6240_s29  ;;  %1885 = vrot.lane.b32.xlu0 %v5086_v63, %s6251_s13  ;;  %v3885_v63 = vld [vmem:[%s6188_s9 + $0x10] sm:$0xff] }
 0x492   : > { %1893 = vrot.lane.b32.xlu1 %v5088_v40, %s6251_s13  ;;  %1891 = vrot.lane.b32.xlu0 %v5139_v31, %s6251_s13  ;;  %v5248_v40 = vpop.permute.xlu1 %2027  ;;  %v5250_v31 = vpop.permute.xlu0 %2035 }
 0x496   : > { %1899 = vrot.lane.b32.xlu1 %v5149_v1, %s6251_s13  ;;  %1945 = vrot.lane.b32.xlu0 %v5127_v62, %s6240_s29  ;;  %v5253_v62 = vpop.permute.xlu1 %1981  ;;  %v5255_v23 = vpop.permute.xlu0 %4154 }
 0x49a   : > { %2264 = vperm.xlu0 %4143, %v3886_v5   ;;  %2259 = vperm.xlu1 %4158, %v3885_v63  }
 0x49e   : > { %4159 = vset.pattern.permute.xlu1 %v4297_v18 }
 0x49f   : > { %2381 = vperm.xlu1 %4159, %v4889_v29  }
 0x4a3   : > { %4165 = vset.pattern.permute.xlu1 %v4290_v13 }
 0x4a8   : > { %v2137_v1 = vpop.permute.xlu1 %2136  ;;  %v5258_v41 = vpop.permute.xlu0 %2164 }
 0x4a9   : > { %2156 = vst.msk [vmem:[#allocation3 + $0x100] sm:$0xf0] %vm6225_vm8, %v2137_v1 }
 0x4aa   : > { %2184 = vst.msk [vmem:[#allocation3 + $0x130] sm:$0xff] %vm1202_vm7, %v5258_v41 }
 0x4ac   : > { %v1988_v27 = vpop.permute.xlu1 %1987  ;;  %v5263_v48 = vpop.permute.xlu0 %2108 }
 0x4ad   : > { %2128 = vst.msk [vmem:[#allocation3 + $0xe8] sm:$0xff] %vm1202_vm7, %v5263_v48 }
 0x4b0   : > { %v5267_v29 = vpop.permute.xlu1 %2170  ;;  %v5269_v43 = vpop.permute.xlu0 %2080 }
 0x4b1   : > { %2187 = vst.msk [vmem:[#allocation3 + $0x148] sm:$0xf] %vm1206_vm12, %v5267_v29  ;;  %v2229_v52 = vld [vmem:[#allocation3 + $0x130] sm:$0xff] }
 0x4b2   : > { %2100 = vst.msk [vmem:[#allocation3 + $0xb8] sm:$0xf0] %vm6225_vm8, %v5269_v43 }
 0x4b4   : > { %v5275_v36 = vpop.permute.xlu1 %2114  ;;  %v5277_v32 = vpop.permute.xlu0 %2033  ;;  %v2220_v59 = vld [vmem:[#allocation3 + $0xe8] sm:$0xff] }
 0x4b5   : > { %2131 = vst.msk [vmem:[#allocation3 + $0x100] sm:$0xf] %vm1206_vm12, %v5275_v36 }
 0x4b8   : > { %v5281_v46 = vpop.permute.xlu1 %1995  ;;  %v5283_v21 = vpop.permute.xlu0 %1953  ;;  %v2232_v26 = vld [vmem:[#allocation3 + $0x148] sm:$0xf] }
 0x4b9   : > { %v2253_v44 = vpack.c.bf16 %v2232_v26, %v2229_v52  ;;  %v2214_v28 = vld [vmem:[#allocation3 + $0xb8] sm:$0xff] }
 0x4ba   : > { %v2244_v34 = vpack.c.bf16 %v2214_v28, %v2211_v58 }
 0x4bb   : > { %v2282_v14 = vsel %vm1675_vm11, %v2253_v44, 0 }
 0x4bc   : > { %v5286_v24 = vpop.permute.xlu1 %2142  ;;  %4005 = vmatpush3.bf16.msra.mxu0 %v2282_v14  ;;  %v5288_v53 = vpop.permute.xlu0 %2086  ;;  %v2223_v25 = vld [vmem:[#allocation3 + $0x100] sm:$0xff] }
 0x4bd   : > { %2159 = vst.msk [vmem:[#allocation3 + $0x118] sm:$0xff] %vm1202_vm7, %v5286_v24  ;;  %2103 = vst.msk [vmem:[#allocation3 + $0xd0] sm:$0xff] %vm1202_vm7, %v5288_v53  ;;  %4006 = vmatprep.subr.bf16.mxu0 %v5054_v12 }
 0x4c0   : > { %v5295_v54 = vpop.permute.xlu1 %2041  ;;  %v5297_v51 = vpop.permute.xlu0 %2160 }
 0x4c4   : > { %v2133_v22 = vpop.permute.xlu1 %2132  ;;  %v5299_v30 = vpop.permute.xlu0 %2104  ;;  %v2226_v55 = vld [vmem:[#allocation3 + $0x118] sm:$0xff]  ;;  %v2217_v10 = vld [vmem:[#allocation3 + $0xd0] sm:$0xff] }
 0x4c5   : > { %v2250_v49 = vpack.c.bf16 %v2226_v55, %v2223_v25  ;;  %v2247_v57 = vpack.c.bf16 %v2220_v59, %v2217_v10 }
 0x4c7   : > { %4007 = vmatpush3.bf16.msra.mxu0 %v2250_v49 }
 0x4c8   : > { %v5301_v56 = vpop.permute.xlu1 %2162  ;;  %v5303_v35 = vpop.permute.xlu0 %1983  ;;  %4008 = vmatprep.subr.bf16.mxu0 %v5054_v12 }
 0x4cb   : > { %4009 = vmatpush3.bf16.msra.mxu0 %v2247_v57 }
 0x4cc   : > { %v5306_v39 = vpop.permute.xlu1 %2106  ;;  %v5308_v16 = vpop.permute.xlu0 %1887  ;;  %4010 = vmatprep.subr.bf16.mxu0 %v5054_v12 }
 0x4cf   : > { %4011 = vmatpush3.bf16.msra.mxu0 %v2244_v34 }
 0x4d0   : > { %v2077_v45 = vpop.permute.xlu1 %2076  ;;  %v2135_v61 = vpop.permute.xlu0 %2134  ;;  %4012 = vmatprep.subr.bf16.mxu0 %v5054_v12 }
 0x4d1   : > { %v2144_v9 = vsel %vm611_vm2, %v2133_v22, %v2135_v61  ;;  %v2145_v7 = vsel %vm611_vm2, %v2135_v61, %v2137_v1 }
 0x4d2   : > { %2154 = vst [vmem:[#allocation3 + $0xf0] sm:$0xf0] %v2144_v9  ;;  %2155 = vst [vmem:[#allocation3 + $0xf8] sm:$0xf0] %v2145_v7 }
 0x4d4   : > { %v5314_v17 = vpop.permute.xlu1 %1985  ;;  %v2030_v6 = vpop.permute.xlu0 %2029 }
 0x4d5   : > { %v1999_v11 = vsel %vm529_vm10, %v5314_v17, %v1988_v27  ;;  %v2043_v8 = vsel %vm6285_vm1, %v5248_v40, %v2030_v6 }
 0x4d6   : > { %2011 = vst.msk [vmem:[#allocation3 + $0x58] sm:$0xff] %vm1202_vm7, %v1999_v11  ;;  %2055 = vst [vmem:[#allocation3 + $0x60] sm:$0xf0] %v2043_v8 }
 0x4d8   : > { %v5321_v37 = vpop.permute.xlu1 %1889  ;;  %v2111_v15 = vpop.permute.xlu0 %2110 }
 0x4dc   : > { %v2167_v5 = vpop.permute.xlu1 %2166  ;;  %v1992_v63 = vpop.permute.xlu0 %1991 }
 0x4dd   : > { %v2000_v18 = vsel %vm529_vm10, %v5240_v20, %v1992_v63 }
 0x4de   : > { %2012 = vst [vmem:[#allocation3 + $0x60] sm:$0xf] %v2000_v18 }
 0x4e0   : > { %v2079_v1 = vpop.permute.xlu1 %2078  ;;  %v2139_v52 = vpop.permute.xlu0 %2138 }
 0x4e1   : > { %v2088_v26 = vsel %vm6286_vm15, %v2077_v45, %v2079_v1  ;;  %v2089_v27 = vsel %vm6287_vm5, %v2079_v1, %v5269_v43  ;;  %vm6289_vm15 = vcmask 908288  }
 0x4e2   : > { %2098 = vst [vmem:[#allocation3 + $0xa8] sm:$0xf0] %v2088_v26  ;;  %2099 = vst [vmem:[#allocation3 + $0xb0] sm:$0xf0] %v2089_v27 }
 0x4e3   : > { %vm6290_vm5 = vmmov %vm6289_vm15 }
 0x4e4   : > { %v2032_v40 = vpop.permute.xlu1 %2031  ;;  %v5328_v44 = vpop.permute.xlu0 %1949  ;;  %v2173_v34 = vsel %vm6290_vm5, %v5301_v56, %v5258_v41 }
 0x4e5   : > { %v2044_v14 = vsel %vm6288_vm9, %v2030_v6, %v2032_v40  ;;  %v2045_v22 = vsel %vm6285_vm1, %v2032_v40, %v5277_v32  ;;  %vm6291_vm9 = vcmask 924672  }
 0x4e6   : > { %2056 = vst [vmem:[#allocation3 + $0x68] sm:$0xf0] %v2044_v14  ;;  %2057 = vst.msk [vmem:[#allocation3 + $0x70] sm:$0xf0] %vm6225_vm8, %v2045_v22  ;;  %vm6294_vm8 = vcmask 130048   ;;  %v4157_v14 = vunpack.i.h.bf16 %v5255_v23 }
 0x4e7   : > { %vm6292_vm1 = vmmov %vm6291_vm9 }
 0x4e8   : > { %v1994_v20 = vpop.permute.xlu1 %1993  ;;  %v2169_v25 = vpop.permute.xlu0 %2168 }
 0x4e9   : > { %v2001_v55 = vsel %vm529_vm10, %v1992_v63, %v1994_v20  ;;  %v2002_v43 = vsel %vm529_vm10, %v1994_v20, %v5281_v46  ;;  %v2174_v49 = vsel %vm6289_vm15, %v2167_v5, %v2169_v25  ;;  %v2175_v10 = vsel %vm6290_vm5, %v2169_v25, %v5267_v29  ;;  %vm6293_vm15 = vmmov %vm6290_vm5  ;;  %v2213_v40 = vld [vmem:[#allocation3 + $0xb0] sm:$0xff]  ;;  %v2212_v25 = vld [vmem:[#allocation3 + $0xa8] sm:$0xff] }
 0x4ea   : > { %2013 = vst [vmem:[#allocation3 + $0x68] sm:$0xf] %v2001_v55  ;;  %2014 = vst.msk [vmem:[#allocation3 + $0x70] sm:$0xf] %vm1206_vm12, %v2002_v43  ;;  %v2172_v29 = vsel %vm6293_vm15, %v5297_v51, %v5301_v56  ;;  %vm6298_vm15 = vcmask 138240  }
 0x4eb   : > { %2185 = vst [vmem:[#allocation3 + $0x138] sm:$0xf] %v2174_v49  ;;  %2186 = vst [vmem:[#allocation3 + $0x140] sm:$0xf] %v2175_v10 }
 0x4ec   : > { %v2083_v32 = vpop.permute.xlu1 %2082  ;;  %v2113_v59 = vpop.permute.xlu0 %2112 }
 0x4ed   : > { %v2118_v57 = vsel %vm6291_vm9, %v2111_v15, %v2113_v59  ;;  %v2119_v28 = vsel %vm6292_vm1, %v2113_v59, %v5275_v36  ;;  %vm6295_vm9 = vcmask 1039360  }
 0x4ee   : > { %2129 = vst [vmem:[#allocation3 + $0xf0] sm:$0xf] %v2118_v57  ;;  %2130 = vst [vmem:[#allocation3 + $0xf8] sm:$0xf] %v2119_v28 }
 0x4f0   : > { %v1952_v46 = vpop.permute.xlu1 %1951  ;;  %v2141_v58 = vpop.permute.xlu0 %2140 }
 0x4f1   : > { %v1960_v45 = vsel %vm6294_vm8, %v1952_v46, %v5283_v21  ;;  %v2146_v51 = vsel %vm611_vm2, %v2139_v52, %v2141_v58  ;;  %v2147_v41 = vsel %vm611_vm2, %v2141_v58, %v5286_v24  ;;  %vm6296_vm8 = vmmov %vm6292_vm1  ;;  %v4196_v58 = vpack.c.bf16 %v2212_v25, %v5159_v4 }
 0x4f2   : > { %v2231_v61 = vld [vmem:[#allocation3 + $0x140] sm:$0xf]  ;;  %v2230_v9 = vld [vmem:[#allocation3 + $0x138] sm:$0xf]  ;;  %1972 = vst.msk [vmem:[#allocation3 + $0x40] sm:$0xff] %vm1202_vm7, %v1960_v45  ;;  %v2117_v18 = vsel %vm6296_vm8, %v5306_v39, %v5263_v48  ;;  %vm6297_vm1 = vmmov %vm6295_vm9 }
 0x4f3   : > { %v2252_v36 = vpack.c.bf16 %v2231_v61, %v2173_v34  ;;  %v2251_v7 = vpack.c.bf16 %v2230_v9, %v2172_v29  ;;  %vm6299_vm5 = vmmov %vm6296_vm8  ;;  %v2203_v29 = vld [vmem:[#allocation3 + $0x60] sm:$0xff] }
 0x4f4   : > { %v2085_v6 = vpop.permute.xlu1 %2084  ;;  %v1896_v11 = vpop.permute.xlu0 %1895 }
 0x4f5   : > { %3888 = vmatprep.subr.msk.bf16.mxu1 %vm1675_vm11, %v2252_v36  ;;  %v2276_v8 = vsel %vm1675_vm11, %v2251_v7, 0  ;;  %v2091_v21 = vsel %vm6295_vm9, %v2085_v6, %v5288_v53  ;;  %v2222_v56 = vld [vmem:[#allocation3 + $0xf8] sm:$0xff]  ;;  %v2221_v15 = vld [vmem:[#allocation3 + $0xf0] sm:$0xff]  ;;  %v2090_v1 = vsel %vm6297_vm1, %v2083_v32, %v2085_v6  ;;  %v2116_v53 = vsel %vm6299_vm5, %v5299_v30, %v5306_v39  ;;  %v2204_v39 = vld [vmem:[#allocation3 + $0x68] sm:$0xff] }
 0x4f6   : > { %2287 = vmatpush1.bf16.msra.mxu1 %v2276_v8  ;;  %v2249_v5 = vpack.c.bf16 %v2147_v41, %v2222_v56  ;;  %v2248_v63 = vpack.c.bf16 %v2146_v51, %v2221_v15  ;;  %v2246_v52 = vpack.c.bf16 %v2117_v18, %v2091_v21  ;;  %v2245_v22 = vpack.c.bf16 %v2116_v53, %v2090_v1  ;;  %v4177_v1 = vld [vmem:[%s6187_s8 + $0x8] sm:$0x3f]   ;;  %v2412_v53 = vld [vmem:[#allocation2 + $0x20] sm:$0xf] }
 0x4f7   : > { %vm6300_vm9 = vcmask 7168   ;;  %vm6302_vm1 = vcmask 130048   ;;  %v4193_v30 = vpack.c.bf16 %v2213_v40, %v5176_v50  ;;  %v4156_v50 = vunpack.i.l.bf16 %v5255_v23  ;;  %v2205_v23 = vld [vmem:[#allocation3 + $0x70] sm:$0xff] }
 0x4f8   : > { %v1898_v26 = vpop.permute.xlu1 %1897  ;;  %v2038_v27 = vpop.permute.xlu0 %2037  ;;  %2288 = vmatprep.subr.bf16.mxu1 %v2249_v5  ;;  %vm6301_vm8 = vmmov %vm6300_vm9  ;;  %v1997_v6 = vsel %vm529_vm10, %v5253_v62, %v5303_v35  ;;  %v2202_v62 = vld [vmem:[#allocation3 + $0x58] sm:$0xff]  ;;  %v2530_v25 = vrot.slane %v2412_v53, 4 }
 0x4f9   : > { %v1905_v24 = vsel %vm6298_vm15, %v1896_v11, %v1898_v26  ;;  %vm6303_vm15 = vmmov %vm6301_vm8 }
 0x4fa   : > { %2289 = vmatpush1.bf16.msra.mxu1 %v2248_v63  ;;  %1917 = vst [vmem:[#allocation3 + $0x20] sm:$0xf] %v1905_v24  ;;  %v2046_v10 = vsel %vm6303_vm15, %v5250_v31, %v2038_v27  ;;  %vm6304_vm5 = vmmov %vm6302_vm1  ;;  %v1998_v31 = vsel %vm529_vm10, %v5303_v35, %v5314_v17  ;;  %v5426_v24 = vld [vmem:[%s6182_s3] ss:$2 sm:$0xf] }
 0x4fb   : > { %2290 = vmatprep.subr.bf16.mxu1 %v2246_v52  ;;  %v2239_v34 = vpack.c.bf16 %v2046_v10, %v2203_v29 }
 0x4fc   : > { %v2040_v48 = vpop.permute.xlu1 %2039  ;;  %v1942_v20 = vpop.permute.xlu0 %1941 }
 0x4fd   : > { %v2047_v55 = vsel %vm6300_vm9, %v2038_v27, %v2040_v48  ;;  %v2048_v43 = vsel %vm6301_vm8, %v2040_v48, %v5295_v54  ;;  %v1955_v49 = vsel %vm6302_vm1, %v4157_v14, %v1942_v20  ;;  %v1959_v54 = vsel %vm6304_vm5, %v5328_v44, %v1952_v46  ;;  %vm6305_vm9 = vmmov %vm6302_vm1 }
 0x4fe   : > { %2291 = vmatpush1.bf16.msra.mxu1 %v2245_v22  ;;  %2060 = vst.msk [vmem:[#allocation3 + $0x88] sm:$0xff] %vm1202_vm7, %v2048_v43  ;;  %1967 = vst [vmem:[#allocation3 + $0x18] sm:$0xf0] %v1955_v49  ;;  %v2240_v57 = vpack.c.bf16 %v2047_v55, %v2204_v39  ;;  %v2237_v9 = vpack.c.bf16 %v1998_v31, %v1959_v54  ;;  %v2421_v14 = vrot.slane %v5426_v24, %v4694_v3 }
 0x4ff   : > { %4194 = vmatprep.subr.msk.bf16.mxu1 %vm5015_vm13, %v4193_v30  ;;  %vm6306_vm8 = vmmov %vm6302_vm1  ;;  %vm6307_vm1 = vcmask 138240   ;;  %v5441_v49 = vrot.slane %v5054_v12, 4 }
 0x500   : > { %v1944_v32 = vpop.permute.xlu1 %1943  ;;  %v1886_v59 = vpop.permute.xlu0 %1885  ;;  %v1958_v46 = vsel %vm6306_vm8, %v4156_v50, %v5328_v44  ;;  %vm6308_vm15 = vmmov %vm6307_vm1  ;;  %v2199_v44 = vld [vmem:[#allocation3 + $0x40] sm:$0xff]  ;;  %v5433_v48 = vmul.f32 %v5054_v12, %v2421_v14 }
 0x501   : > { %v1956_v28 = vsel %vm6305_vm9, %v1942_v20, %v1944_v32  ;;  %v2236_v8 = vpack.c.bf16 %v1997_v6, %v1958_v46  ;;  %vm6309_vm5 = vmmov %vm6307_vm1  ;;  %v2238_v15 = vpack.c.bf16 %v2202_v62, %v2199_v44  ;;  %v5435_v20 = vmul.f32 %v2421_v14, %v2412_v53 }
 0x502   : > { %4197 = vmatpush1.bf16.msk.msra.mxu1 %vm5029_vm14, %v4196_v58  ;;  %1968 = vst [vmem:[#allocation3 + $0x20] sm:$0xf0] %v1956_v28  ;;  %v1902_v41 = vsel %vm6309_vm5, %v5308_v16, %v5321_v37  ;;  %vm6310_vm9 = vmmov %vm6307_vm1  ;;  %v2614_v55 = vrot.slane %v5433_v48, 4 }
 0x503   : > { %2294 = vmatprep.subr.bf16.mxu1 %v2240_v57  ;;  %v2618_v43 = vrot.slane %v5435_v20, 4 }
 0x504   : > { %v1894_v45 = vpop.permute.xlu1 %1893  ;;  %v1892_v61 = vpop.permute.xlu0 %1891  ;;  %2626 = vrot.lane.b32.xlu1 %v2614_v55, %s6239_s30 }
 0x505   : > { %v1904_v4 = vsel %vm6307_vm1, %v1894_v45, %v1896_v11  ;;  %v1903_v36 = vsel %vm6308_vm15, %v5321_v37, %v1892_v61  ;;  %v2208_v7 = vld [vmem:[#allocation3 + $0x88] sm:$0xff]  ;;  %vm6311_vm1 = vcmask 523268   ;;  %vm6312_vm15 = vmmov %vm6309_vm5  ;;  %vm6313_vm5 = vcmask 883712  }
 0x506   : > { %2295 = vmatpush1.bf16.msra.mxu1 %v2239_v34  ;;  %1916 = vst [vmem:[#allocation3 + $0x18] sm:$0xf] %v1904_v4  ;;  %1915 = vst.msk [vmem:[#allocation3 + $0x10] sm:$0xff] %vm1202_vm7, %v1903_v36  ;;  %v2241_v17 = vpack.c.bf16 %v2208_v7, %v2205_v23  ;;  %v1901_v37 = vsel %vm6312_vm15, %v1886_v59, %v5308_v16  ;;  %v5421_v16 = vld [vmem:[%s6182_s3 + $0x1] ss:$2 sm:$0xf] }
 0x507   : > { %2296 = vmatprep.subr.bf16.mxu1 %v2237_v9  ;;  %v2451_v40 = vrot.slane %v5421_v16, %v4694_v3  ;;  %v2463_v62 = vrot.slane %v5421_v16, %v4745_v42 }
 0x508   : > { %4013 = vmatpush3.bf16.msra.mxu0 %v2241_v17  ;;  %v1900_v51 = vpop.permute.xlu1 %1899  ;;  %v1946_v11 = vpop.permute.xlu0 %1945 }
 0x509   : > { %v1906_v21 = vsel %vm6310_vm9, %v1898_v26, %v1900_v51  ;;  %v1957_v56 = vsel %vm6306_vm8, %v1944_v32, %v1946_v11  ;;  %4014 = vmatprep.subr.bf16.mxu0 %v5054_v12  ;;  %v2195_v35 = vld [vmem:[#allocation3 + $0x20] sm:$0xff]  ;;  %vm6314_vm9 = vmmov %vm6313_vm5  ;;  %v2472_v22 = vmul.f32 %v2451_v40, %v2412_v53  ;;  %v2468_v39 = vmul.f32 %v5054_v12, %v2451_v40 }
 0x50a   : > { %2297 = vmatpush1.bf16.msra.mxu1 %v2236_v8  ;;  %1918 = vst.msk [vmem:[#allocation3 + $0x28] sm:$0xf] %vm1206_vm12, %v1906_v21  ;;  %v2234_v5 = vpack.c.bf16 %v2195_v35, %v1902_v41 }
 0x50b   : > { %1969 = vst.msk [vmem:[#allocation3 + $0x28] sm:$0xf0] %vm6311_vm1, %v1957_v56  ;;  %2588 = vrot.lane.b32.xlu0 %v2472_v22, %s6274_s1  ;;  %2580 = vrot.lane.b32.xlu1 %v2468_v39, %s6274_s1 }
 0x50c   : > { %4015 = vmatpush3.bf16.msra.mxu0 %v2238_v15  ;;  %2298 = vmatprep.subr.bf16.mxu1 %v2234_v5 }
 0x50d   : > { %v2194_v63 = vld [vmem:[#allocation3 + $0x18] sm:$0xff]  ;;  %4016 = vmatprep.subr.bf16.mxu0 %v5054_v12  ;;  %v2193_v26 = vld [vmem:[#allocation3 + $0x10] sm:$0xff] }
 0x50e   : > { %v2233_v18 = vpack.c.bf16 %v2194_v63, %v1901_v37  ;;  %v2433_v63 = vrot.slane %v5426_v24, %v4745_v42 }
 0x510   : > { %2299 = vmatpush1.bf16.msra.mxu1 %v2233_v18 }
 0x512   : > { %v2196_v27 = vld [vmem:[#allocation3 + $0x28] sm:$0xff] }
 0x513   : > { %v2235_v52 = vpack.c.bf16 %v2196_v27, %v2193_v26  ;;  %3889 = vmatmul.mubr.msk.bf16.vlgmr.msra.gmra.mxu1 %vm6313_vm5, %v4177_v1 }
 0x514   : > { %2915 = vmatprep.mubr.bf16.mxu1 %v4290_v13 }
 0x515   : > { %4017 = vmatpush3.bf16.msra.mxu0 %v2235_v52  ;;  %v5452_v59 = vpop.permute.xlu1 %2259  ;;  %v2265_v28 = vpop.permute.xlu0 %2264 }
 0x516   : > { %4022 = vmatprep.subr.bf16.mxu0 %v5054_v12 }
 0x518   : > { %4019 = vmatmul.mubr.msk.bf16.vlgmr.msra.gmra.mxu0 %vm6314_vm9, %v4177_v1 }
 0x519   : > { %4036 = vmatprep.mubr.msk.bf16.mxu0 %vm6273_vm4, %v5054_v12  ;;  %vm6315_vm4 = vcmask 1043456  }
 0x51a   : > { %v2619_v30 = vsel %vm6315_vm4, %v2614_v55, %v2618_v43  ;;  %vm6316_vm8 = vmmov %vm6315_vm4  ;;  %v5457_v31 = vpop.permute.xlu1 %2381 }
 0x51b   : > { %2634 = vrot.lane.b32.xlu0 %v2619_v30, %s6239_s30  ;;  %v2531_v10 = vsel %vm6316_vm8, %v5441_v49, %v2530_v25 }
 0x51c   : > { %v4160_v32 = vpack.i.bf16 %v5441_v49, %v2531_v10  ;;  %v2455_v10 = vrot.slane %v5421_v16, %v4791_v19 }
 0x51f   : > { %4161 = vrot.lane.b32.xlu0 %v4160_v32, %s6240_s29 }
 0x5d3   : > { %v2318_v57 = vpop.f32.mrf.mxu1 }
 0x5d4   : > { %v2319_v40 = vadd.f32 %v2318_v57, %v5452_v59 }
 0x5d5   : > { %v5454_v54 = vpop.f32.mrf.mxu1 }
 0x5d6   : > { %v2384_v25 = vmul.f32 %v5457_v31, %v2319_v40  ;;  %vm2369_vm4 = vcmp.ge.f32.partialorder %v2319_v40, 0.0  ;;  %v2321_v30 = vadd.f32 %v5454_v54, %v5452_v59  ;;  %v2425_v54 = vrot.slane %v5426_v24, %v4791_v19 }
 0x5d7   : > { %v2322_v50 = vpop.f32.mrf.mxu1 }
 0x5d8   : > { %v2361_v58 = vpop.f32.mrf.mxu0  ;;  %v2323_v29 = vadd.f32 %v2322_v50, %v2265_v28  ;;  %v5509_v39 = vsel %vm2369_vm4, %v2319_v40, %v2384_v25 }
 0x5d9   : > { %v2362_v12 = vadd.f32 %v2361_v58, %v5452_v59  ;;  %v2324_v46 = vpop.f32.mrf.mxu1  ;;  %v2396_v32 = vsel %vm4767_vm0, %v5509_v39, 0.0  ;;  %v2385_v58 = vmul.f32 %v5457_v31, %v2321_v30 }
 0x5da   : > { %v4020_v34 = vpop.f32.mrf.mxu0  ;;  %vm2372_vm15 = vcmp.ge.f32.partialorder %v2323_v29, 0.0  ;;  %v2387_v61 = vmul.f32 %v5457_v31, %v2323_v29  ;;  %v2325_v9 = vadd.f32 %v2324_v46, %v2265_v28  ;;  %v2469_v59 = vmul.f32 %v2455_v10, %v2396_v32 }
 0x5db   : > { %vm2371_vm1 = vcmp.ge.f32.partialorder %v2362_v12, 0.0  ;;  %v2386_v45 = vmul.f32 %v5457_v31, %v2362_v12  ;;  %v2527_v34 = vrot.slane %v2396_v32, 4 }
 0x5dc   : > { %v2364_v4 = vpop.f32.mrf.mxu0  ;;  %v2393_v23 = vsel %vm2372_vm15, %v2323_v29, %v2387_v61  ;;  %vm2373_vm5 = vcmp.ge.f32.partialorder %v2325_v9, 0.0  ;;  %v2388_v44 = vmul.f32 %v5457_v31, %v2325_v9  ;;  %vm2370_vm15 = vcmp.ge.f32.partialorder %v2321_v30, 0.0 }
 0x5dd   : > { %v2392_v36 = vsel %vm2371_vm1, %v2362_v12, %v2386_v45  ;;  %v2365_v7 = vadd.f32 %v2364_v4, %v2265_v28  ;;  %v2399_v17 = vsel %vm4767_vm0, %v2393_v23, 0.0  ;;  %vm6317_vm1 = vmmov %vm6316_vm8  ;;  %v5526_v12 = vsel %vm2370_vm15, %v2321_v30, %v2385_v58 }
 0x5de   : > { %v2398_v6 = vsel %vm4735_vm6, %v2392_v36, 0.0  ;;  %v4021_v8 = vpop.f32.mrf.mxu0  ;;  %2405 = vst [vmem:[#allocation2 + $0x28] sm:$0xf] %v2399_v17  ;;  %v2394_v11 = vsel %vm2373_vm5, %v2325_v9, %v2388_v44  ;;  %vm6318_vm5 = vmmov %vm6317_vm1  ;;  %v2439_v29 = vmul.f32 %v2425_v54, %v2396_v32  ;;  %v2397_v46 = vsel %vm4777_vm3, %v5526_v12, 0.0 }
 0x5df   : > { %2404 = vst.msk [vmem:[#allocation2 + $0x18] sm:$0xff] %vm1202_vm7, %v2398_v6  ;;  %vm2374_vm9 = vcmp.ge.f32.partialorder %v2365_v7, 0.0  ;;  %v2389_v51 = vmul.f32 %v5457_v31, %v2365_v7  ;;  %v2400_v41 = vsel %vm4777_vm3, %v2394_v11, 0.0  ;;  %v2459_v31 = vrot.slane %v5421_v16, %v4813_v38  ;;  %vm6320_vm4 = vmmov %vm6317_vm1 }
 0x5e0   : > { %2406 = vst [vmem:[#allocation2 + $0x30] sm:$0xf] %v2400_v41  ;;  %v2429_v61 = vrot.slane %v5426_v24, %v4813_v38  ;;  %v2528_v16 = vrot.slane %v2397_v46, 4  ;;  %v2666_v4 = vrot.slane %v2469_v59, 4  ;;  %v2615_v36 = vrot.slane %v2439_v29, 4  ;;  %vm6322_vm15 = vmmov %vm6317_vm1 }
 0x5e1   : > { %v2395_v21 = vsel %vm2374_vm9, %v2365_v7, %v2389_v51  ;;  %v2470_v45 = vmul.f32 %v2459_v31, %v2397_v46  ;;  %vm6319_vm9 = vmmov %vm6317_vm1 }
 0x5e2   : > { %v2401_v56 = vsel %vm4735_vm6, %v2395_v21, 0.0  ;;  %v2440_v9 = vmul.f32 %v2429_v61, %v2397_v46 }
 0x5e3   : > { %2407 = vst.msk [vmem:[#allocation2 + $0x38] sm:$0xf] %vm1206_vm12, %v2401_v56  ;;  %v2667_v6 = vrot.slane %v2470_v45, 4 }
 0x5e4   : > { %v2616_v44 = vrot.slane %v2440_v9, 4 }
 0x5e5   : > { %v5475_v15 = vld [vmem:[#allocation2 + $0x28] sm:$0xf] }
 0x5e6   : > { %v2411_v35 = vld [vmem:[#allocation2 + $0x18] sm:$0xff]  ;;  %2663 = vst [vmem:[#allocation3 + $0xa8] sm:$0xf] %v5475_v15  ;;  %v2443_v24 = vmul.f32 %v2425_v54, %v5475_v15  ;;  %v2473_v23 = vmul.f32 %v2455_v10, %v5475_v15  ;;  %v2532_v7 = vrot.slane %v5475_v15, 4 }
 0x5e7   : > { %v5477_v5 = vrot.slane %v2411_v35, 4  ;;  %2662 = vst.msk [vmem:[#allocation3 + $0xa0] sm:$0xff] %vm1202_vm7, %v2411_v35  ;;  %v2471_v37 = vmul.f32 %v2463_v62, %v2411_v35  ;;  %v5486_v18 = vld [vmem:[#allocation2 + $0x30] sm:$0xf]  ;;  %v5489_v26 = vmul.f32 %v2433_v63, %v2411_v35 }
 0x5e8   : > { %2664 = vst [vmem:[#allocation3 + $0xb0] sm:$0xf] %v5486_v18  ;;  %v2533_v17 = vsel %vm6319_vm9, %v2527_v34, %v2532_v7  ;;  %v2474_v8 = vmul.f32 %v2459_v31, %v5486_v18  ;;  %v2669_v51 = vrot.slane %v2473_v23, 4  ;;  %v2444_v11 = vmul.f32 %v2429_v61, %v5486_v18  ;;  %v5649_v31 = vld [vmem:[#allocation2] sm:$0xff] }
 0x5e9   : > { %2735 = vrot.lane.b32.xlu1 %v5477_v5, %s6243_s25  ;;  %2763 = vrot.lane.b32.xlu0 %v2471_v37, %s6244_s16  ;;  %v2668_v27 = vrot.slane %v2471_v37, 4  ;;  %v2617_v53 = vrot.slane %v5489_v26, 4  ;;  %v2534_v21 = vrot.slane %v5486_v18, 4  ;;  %v2620_v15 = vrot.slane %v2443_v24, 4 }
 0x5ea   : > { %v2415_v1 = vld [vmem:[#allocation2 + $0x38] sm:$0xf]  ;;  %v2670_v41 = vsel %vm6320_vm4, %v2666_v4, %v2669_v51  ;;  %vm6324_vm9 = vcmask 523268  }
 0x5eb   : > { %2665 = vst.msk [vmem:[#allocation3 + $0xb8] sm:$0xf] %vm1206_vm12, %v2415_v1  ;;  %v2475_v52 = vmul.f32 %v2463_v62, %v2415_v1  ;;  %v5499_v14 = vmul.f32 %v2433_v63, %v2415_v1  ;;  %v2536_v22 = vrot.slane %v2415_v1, 4  ;;  %v2671_v62 = vrot.slane %v2474_v8, 4  ;;  %v5590_v1 = vpop.permute.xlu0 %2588  ;;  %vm6325_vm4 = vmmov %vm6324_vm9 }
 0x5ec   : > { %v2622_v63 = vrot.slane %v2444_v11, 4 }
 0x5ed   : > { %2586 = vrot.lane.b32.xlu1 %v2471_v37, %s6274_s1  ;;  %2707 = vrot.lane.b32.xlu0 %v5489_v26, %s6245_s27  ;;  %v2537_v55 = vsel %vm6316_vm8, %v5477_v5, %v2536_v22  ;;  %v2673_v43 = vrot.slane %v2475_v52, 4  ;;  %v2624_v28 = vrot.slane %v5499_v14, 4  ;;  %vm6321_vm8 = vmmov %vm6317_vm1  ;;  %v2672_v35 = vsel %vm6317_vm1, %v2667_v6, %v2671_v62 }
 0x5ee   : > { %v2535_v56 = vsel %vm6321_vm8, %v2528_v16, %v2534_v21  ;;  %v2621_v37 = vsel %vm6322_vm15, %v2615_v36, %v2620_v15  ;;  %vm6326_vm8 = vcmask 7168  }
 0x5ef   : > { %v2674_v57 = vsel %vm6317_vm1, %v2668_v27, %v2673_v43  ;;  %v2625_v50 = vsel %vm6318_vm5, %v2617_v53, %v2624_v28  ;;  %vm6323_vm5 = vmmov %vm6317_vm1  ;;  %vm6327_vm1 = vcmask 1039360  }
 0x5f0   : > { %v2623_v18 = vsel %vm6323_vm5, %v2616_v44, %v2622_v63  ;;  %vm6328_vm15 = vmmov %vm6327_vm1 }
 0x5f1   : > { %2679 = vrot.lane.b32.xlu0 %v2668_v27, %s6248_s15  ;;  %2769 = vrot.lane.b32.xlu1 %v2475_v52, %s6244_s16  ;;  %v3896_v27 = vld [vmem:[%s6188_s9 + $0x28] sm:$0xf]  ;;  %vm6329_vm5 = vmmov %vm6326_vm8 }
 0x5f5   : > { %2632 = vrot.lane.b32.xlu0 %v2617_v53, %s6239_s30  ;;  %2713 = vrot.lane.b32.xlu1 %v5499_v14, %s6245_s27 }
 0x5f9   : > { %2552 = vrot.lane.b32.xlu0 %v2537_v55, %s6240_s29  ;;  %2594 = vrot.lane.b32.xlu1 %v2475_v52, %s6274_s1  ;;  %v4298_v52 = vmov 4  }
 0x5fd   : > { %2685 = vrot.lane.b32.xlu0 %v2674_v57, %s6248_s15  ;;  %2741 = vrot.lane.b32.xlu1 %v2537_v55, %s6243_s25 }
 0x601   : > { %2759 = vrot.lane.b32.xlu0 %v2469_v59, %s6244_s16  ;;  %2640 = vrot.lane.b32.xlu1 %v2625_v50, %s6239_s30 }
 0x605   : > { %2703 = vrot.lane.b32.xlu0 %v2439_v29, %s6245_s27  ;;  %2731 = vrot.lane.b32.xlu1 %v2527_v34, %s6243_s25 }
 0x609   : > { %2582 = vrot.lane.b32.xlu0 %v2469_v59, %s6274_s1  ;;  %2761 = vrot.lane.b32.xlu1 %v2470_v45, %s6244_s16 }
 0x60d   : > { %2486 = vrot.lane.b32.xlu0 %v2439_v29, %s6251_s13  ;;  %2705 = vrot.lane.b32.xlu1 %v2440_v9, %s6245_s27 }
 0x611   : > { %2733 = vrot.lane.b32.xlu0 %v2528_v16, %s6243_s25  ;;  %2675 = vrot.lane.b32.xlu1 %v2666_v4, %s6248_s15 }
 0x615   : > { %2628 = vrot.lane.b32.xlu0 %v2615_v36, %s6239_s30  ;;  %2584 = vrot.lane.b32.xlu1 %v2470_v45, %s6274_s1 }
 0x619   : > { %2488 = vrot.lane.b32.xlu1 %v2440_v9, %s6251_s13  ;;  %2709 = vrot.lane.b32.xlu0 %v2443_v24, %s6245_s27 }
 0x61d   : > { %2765 = vrot.lane.b32.xlu1 %v2473_v23, %s6244_s16  ;;  %2590 = vrot.lane.b32.xlu0 %v2473_v23, %s6274_s1 }
 0x621   : > { %2677 = vrot.lane.b32.xlu1 %v2667_v6, %s6248_s15  ;;  %2737 = vrot.lane.b32.xlu0 %v2533_v17, %s6243_s25 }
 0x625   : > { %2630 = vrot.lane.b32.xlu1 %v2616_v44, %s6239_s30  ;;  %2548 = vrot.lane.b32.xlu0 %v2533_v17, %s6240_s29 }
 0x629   : > { %2592 = vrot.lane.b32.xlu1 %v2474_v8, %s6274_s1  ;;  %2767 = vrot.lane.b32.xlu0 %v2474_v8, %s6244_s16 }
 0x62d   : > { %2681 = vrot.lane.b32.xlu1 %v2670_v41, %s6248_s15  ;;  %2711 = vrot.lane.b32.xlu0 %v2444_v11, %s6245_s27 }
 0x631   : > { %2550 = vrot.lane.b32.xlu1 %v2535_v56, %s6240_s29  ;;  %2739 = vrot.lane.b32.xlu0 %v2535_v56, %s6243_s25 }
 0x635   : > { %2683 = vrot.lane.b32.xlu1 %v2672_v35, %s6248_s15  ;;  %2494 = vrot.lane.b32.xlu0 %v2443_v24, %s6251_s13 }
 0x639   : > { %2496 = vrot.lane.b32.xlu1 %v2444_v11, %s6251_s13  ;;  %2636 = vrot.lane.b32.xlu0 %v2621_v37, %s6239_s30  ;;  %v2810_v11 = vld [vmem:[#allocation3 + $0xa0] sm:$0xff] }
 0x63d   : > { %2638 = vrot.lane.b32.xlu1 %v2623_v18, %s6239_s30  ;;  %2540 = vrot.lane.b32.xlu0 %v2527_v34, %s6240_s29 }
 0x641   : > { %2542 = vrot.lane.b32.xlu1 %v2528_v16, %s6240_s29  ;;  %2484 = vrot.lane.b32.xlu0 %v5433_v48, %s6251_s13  ;;  %v3895_v48 = vld [vmem:[%s6188_s9 + $0x20] sm:$0xff] }
 0x645   : > { %2492 = vrot.lane.b32.xlu1 %v5435_v20, %s6251_s13  ;;  %2490 = vrot.lane.b32.xlu0 %v5489_v26, %s6251_s13  ;;  %v5598_v20 = vpop.permute.xlu1 %2626  ;;  %v5600_v26 = vpop.permute.xlu0 %2634 }
 0x649   : > { %2498 = vrot.lane.b32.xlu1 %v5499_v14, %s6251_s13  ;;  %2544 = vrot.lane.b32.xlu0 %v5477_v5, %s6240_s29  ;;  %v5605_v5 = vld [vmem:[%s6179_s0] ss:$0 sm:$0xff]  ;;  %v5608_v40 = vpop.permute.xlu1 %2580  ;;  %v5610_v53 = vpop.permute.xlu0 %4161 }
 0x64d   : > { %2863 = vperm.xlu0 %4143, %v3896_v27   ;;  %2858 = vperm.xlu1 %4165, %v3895_v48  }
 0x651   : > { %4166 = vset.pattern.permute.xlu1 %v4298_v52 }
 0x652   : > { %2980 = vperm.xlu1 %4166, %v5605_v5  }
 0x656   : > { %4167 = vset.pattern.permute.xlu1 %v4290_v13 }
 0x65b   : > { %v2736_v14 = vpop.permute.xlu1 %2735  ;;  %v5613_v22 = vpop.permute.xlu0 %2763 }
 0x65c   : > { %2755 = vst.msk [vmem:[#allocation3 + $0x100] sm:$0xf0] %vm6324_vm9, %v2736_v14  ;;  %vm6330_vm9 = vmmov %vm6329_vm5 }
 0x65d   : > { %2783 = vst.msk [vmem:[#allocation3 + $0x130] sm:$0xff] %vm1202_vm7, %v5613_v22 }
 0x65f   : > { %v2587_v25 = vpop.permute.xlu1 %2586  ;;  %v5618_v55 = vpop.permute.xlu0 %2707 }
 0x660   : > { %2727 = vst.msk [vmem:[#allocation3 + $0xe8] sm:$0xff] %vm1202_vm7, %v5618_v55 }
 0x663   : > { %v5622_v43 = vpop.permute.xlu1 %2769  ;;  %v5624_v30 = vpop.permute.xlu0 %2679 }
 0x664   : > { %2786 = vst.msk [vmem:[#allocation3 + $0x148] sm:$0xf] %vm1206_vm12, %v5622_v43  ;;  %v2828_v58 = vld [vmem:[#allocation3 + $0x130] sm:$0xff] }
 0x665   : > { %2699 = vst.msk [vmem:[#allocation3 + $0xb8] sm:$0xf0] %vm6325_vm4, %v5624_v30 }
 0x667   : > { %v5630_v10 = vpop.permute.xlu1 %2713  ;;  %v5632_v32 = vpop.permute.xlu0 %2632  ;;  %v2819_v6 = vld [vmem:[#allocation3 + $0xe8] sm:$0xff] }
 0x668   : > { %2730 = vst.msk [vmem:[#allocation3 + $0x100] sm:$0xf] %vm1206_vm12, %v5630_v10 }
 0x66b   : > { %v5636_v57 = vpop.permute.xlu1 %2594  ;;  %v5638_v28 = vpop.permute.xlu0 %2552  ;;  %v2831_v59 = vld [vmem:[#allocation3 + $0x148] sm:$0xf] }
 0x66c   : > { %v2852_v54 = vpack.c.bf16 %v2831_v59, %v2828_v58  ;;  %v2813_v44 = vld [vmem:[#allocation3 + $0xb8] sm:$0xff] }
 0x66d   : > { %v2843_v41 = vpack.c.bf16 %v2813_v44, %v2810_v11 }
 0x66e   : > { %v2881_v50 = vsel %vm1675_vm11, %v2852_v54, 0 }
 0x66f   : > { %v5641_v29 = vpop.permute.xlu1 %2741  ;;  %4023 = vmatpush3.bf16.msra.mxu0 %v2881_v50  ;;  %v5643_v34 = vpop.permute.xlu0 %2685  ;;  %v2822_v16 = vld [vmem:[#allocation3 + $0x100] sm:$0xff] }
 0x670   : > { %2758 = vst.msk [vmem:[#allocation3 + $0x118] sm:$0xff] %vm1202_vm7, %v5641_v29  ;;  %2702 = vst.msk [vmem:[#allocation3 + $0xd0] sm:$0xff] %vm1202_vm7, %v5643_v34  ;;  %4024 = vmatprep.subr.bf16.mxu0 %v5649_v31 }
 0x673   : > { %v5652_v46 = vpop.permute.xlu1 %2640  ;;  %v5654_v45 = vpop.permute.xlu0 %2759 }
 0x677   : > { %v2732_v61 = vpop.permute.xlu1 %2731  ;;  %v5656_v9 = vpop.permute.xlu0 %2703  ;;  %v2825_v4 = vld [vmem:[#allocation3 + $0x118] sm:$0xff]  ;;  %v2816_v24 = vld [vmem:[#allocation3 + $0xd0] sm:$0xff] }
 0x678   : > { %v2849_v36 = vpack.c.bf16 %v2825_v4, %v2822_v16  ;;  %v2846_v17 = vpack.c.bf16 %v2819_v6, %v2816_v24 }
 0x67a   : > { %4025 = vmatpush3.bf16.msra.mxu0 %v2849_v36 }
 0x67b   : > { %v5658_v23 = vpop.permute.xlu1 %2761  ;;  %v5660_v7 = vpop.permute.xlu0 %2582  ;;  %4026 = vmatprep.subr.bf16.mxu0 %v5649_v31 }
 0x67e   : > { %4027 = vmatpush3.bf16.msra.mxu0 %v2846_v17 }
 0x67f   : > { %v5663_v8 = vpop.permute.xlu1 %2705  ;;  %v5665_v51 = vpop.permute.xlu0 %2486  ;;  %4028 = vmatprep.subr.bf16.mxu0 %v5649_v31 }
 0x682   : > { %4029 = vmatpush3.bf16.msra.mxu0 %v2843_v41 }
 0x683   : > { %v2676_v21 = vpop.permute.xlu1 %2675  ;;  %v2734_v56 = vpop.permute.xlu0 %2733  ;;  %4030 = vmatprep.subr.bf16.mxu0 %v5649_v31 }
 0x684   : > { %v2743_v62 = vsel %vm611_vm2, %v2732_v61, %v2734_v56  ;;  %v2744_v35 = vsel %vm611_vm2, %v2734_v56, %v2736_v14 }
 0x685   : > { %2753 = vst [vmem:[#allocation3 + $0xf0] sm:$0xf0] %v2743_v62  ;;  %2754 = vst [vmem:[#allocation3 + $0xf8] sm:$0xf0] %v2744_v35 }
 0x687   : > { %v5671_v15 = vpop.permute.xlu1 %2584  ;;  %v2629_v37 = vpop.permute.xlu0 %2628 }
 0x688   : > { %v2598_v63 = vsel %vm529_vm10, %v5671_v15, %v2587_v25  ;;  %v2642_v18 = vsel %vm6326_vm8, %v5598_v20, %v2629_v37  ;;  %vm6331_vm8 = vcmask 908288  }
 0x689   : > { %2610 = vst.msk [vmem:[#allocation3 + $0x58] sm:$0xff] %vm1202_vm7, %v2598_v63  ;;  %2654 = vst [vmem:[#allocation3 + $0x60] sm:$0xf0] %v2642_v18 }
 0x68b   : > { %v5678_v27 = vpop.permute.xlu1 %2488  ;;  %v2710_v48 = vpop.permute.xlu0 %2709 }
 0x68f   : > { %v2766_v52 = vpop.permute.xlu1 %2765  ;;  %v2591_v58 = vpop.permute.xlu0 %2590 }
 0x690   : > { %v2599_v14 = vsel %vm529_vm10, %v5590_v1, %v2591_v58 }
 0x691   : > { %2611 = vst [vmem:[#allocation3 + $0x60] sm:$0xf] %v2599_v14 }
 0x693   : > { %v2678_v59 = vpop.permute.xlu1 %2677  ;;  %v2738_v54 = vpop.permute.xlu0 %2737 }
 0x694   : > { %v2687_v50 = vsel %vm6327_vm1, %v2676_v21, %v2678_v59  ;;  %v2688_v25 = vsel %vm6328_vm15, %v2678_v59, %v5624_v30  ;;  %vm6332_vm1 = vmmov %vm6331_vm8  ;;  %vm6333_vm15 = vcmask 924672  }
 0x695   : > { %2697 = vst [vmem:[#allocation3 + $0xa8] sm:$0xf0] %v2687_v50  ;;  %2698 = vst [vmem:[#allocation3 + $0xb0] sm:$0xf0] %v2688_v25 }
 0x697   : > { %v2631_v20 = vpop.permute.xlu1 %2630  ;;  %v5685_v61 = vpop.permute.xlu0 %2548 }
 0x698   : > { %v2643_v16 = vsel %vm6329_vm5, %v2629_v37, %v2631_v20  ;;  %v2644_v4 = vsel %vm6330_vm9, %v2631_v20, %v5632_v32  ;;  %vm6334_vm5 = vmmov %vm6333_vm15 }
 0x699   : > { %2655 = vst [vmem:[#allocation3 + $0x68] sm:$0xf0] %v2643_v16  ;;  %2656 = vst.msk [vmem:[#allocation3 + $0x70] sm:$0xf0] %vm6325_vm4, %v2644_v4 }
 0x69a   : > { %vm6335_vm9 = vmmov %vm6332_vm1 }
 0x69b   : > { %v2593_v1 = vpop.permute.xlu1 %2592  ;;  %v2768_v36 = vpop.permute.xlu0 %2767  ;;  %vm6336_vm4 = vmmov %vm6332_vm1 }
 0x69c   : > { %v2600_v24 = vsel %vm529_vm10, %v2591_v58, %v2593_v1  ;;  %v2601_v30 = vsel %vm529_vm10, %v2593_v1, %v5636_v57  ;;  %v2773_v6 = vsel %vm6331_vm8, %v2766_v52, %v2768_v36  ;;  %v2774_v17 = vsel %vm6332_vm1, %v2768_v36, %v5622_v43  ;;  %v2812_v4 = vld [vmem:[#allocation3 + $0xb0] sm:$0xff] }
 0x69d   : > { %2612 = vst [vmem:[#allocation3 + $0x68] sm:$0xf] %v2600_v24  ;;  %2613 = vst.msk [vmem:[#allocation3 + $0x70] sm:$0xf] %vm1206_vm12, %v2601_v30  ;;  %v2771_v43 = vsel %vm6335_vm9, %v5654_v45, %v5658_v23  ;;  %v2772_v56 = vsel %vm6336_vm4, %v5658_v23, %v5613_v22  ;;  %vm6337_vm8 = vcmask 130048   ;;  %vm6338_vm1 = vcmask 1039360  }
 0x69e   : > { %2784 = vst [vmem:[#allocation3 + $0x138] sm:$0xf] %v2773_v6  ;;  %2785 = vst [vmem:[#allocation3 + $0x140] sm:$0xf] %v2774_v17  ;;  %vm6341_vm9 = vcmask 138240   ;;  %v4164_v1 = vunpack.i.h.bf16 %v5610_v53  ;;  %v2811_v30 = vld [vmem:[#allocation3 + $0xa8] sm:$0xff] }
 0x69f   : > { %v2682_v32 = vpop.permute.xlu1 %2681  ;;  %v2712_v44 = vpop.permute.xlu0 %2711 }
 0x6a0   : > { %v2717_v11 = vsel %vm6333_vm15, %v2710_v48, %v2712_v44  ;;  %v2718_v41 = vsel %vm6334_vm5, %v2712_v44, %v5630_v10  ;;  %vm6339_vm15 = vmmov %vm6334_vm5 }
 0x6a1   : > { %2728 = vst [vmem:[#allocation3 + $0xf0] sm:$0xf] %v2717_v11  ;;  %2729 = vst [vmem:[#allocation3 + $0xf8] sm:$0xf] %v2718_v41  ;;  %v2716_v50 = vsel %vm6339_vm15, %v5663_v8, %v5618_v55 }
 0x6a2   : > { %vm6340_vm5 = vmmov %vm6338_vm1 }
 0x6a3   : > { %v2551_v57 = vpop.permute.xlu1 %2550  ;;  %v2740_v21 = vpop.permute.xlu0 %2739  ;;  %vm6342_vm4 = vmmov %vm6339_vm15  ;;  %vm6345_vm15 = vcmask 130048  }
 0x6a4   : > { %v2559_v62 = vsel %vm6337_vm8, %v2551_v57, %v5638_v28  ;;  %v2745_v45 = vsel %vm611_vm2, %v2738_v54, %v2740_v21  ;;  %v2746_v22 = vsel %vm611_vm2, %v2740_v21, %v5641_v29  ;;  %vm6343_vm8 = vcmask 7168  }
 0x6a5   : > { %v2830_v35 = vld [vmem:[#allocation3 + $0x140] sm:$0xf]  ;;  %v2829_v37 = vld [vmem:[#allocation3 + $0x138] sm:$0xf]  ;;  %2571 = vst.msk [vmem:[#allocation3 + $0x40] sm:$0xff] %vm1202_vm7, %v2559_v62 }
 0x6a6   : > { %v2851_v10 = vpack.c.bf16 %v2830_v35, %v2772_v56  ;;  %v2850_v63 = vpack.c.bf16 %v2829_v37, %v2771_v43  ;;  %v4202_v56 = vpack.c.bf16 %v2811_v30, %v5509_v39  ;;  %v2802_v62 = vld [vmem:[#allocation3 + $0x60] sm:$0xff] }
 0x6a7   : > { %v2684_v18 = vpop.permute.xlu1 %2683  ;;  %v2495_v48 = vpop.permute.xlu0 %2494 }
 0x6a8   : > { %3898 = vmatprep.subr.msk.bf16.mxu1 %vm1675_vm11, %v2851_v10  ;;  %v2875_v52 = vsel %vm1675_vm11, %v2850_v63, 0  ;;  %v2690_v28 = vsel %vm6338_vm1, %v2684_v18, %v5643_v34  ;;  %v2821_v23 = vld [vmem:[#allocation3 + $0xf8] sm:$0xff]  ;;  %v2820_v58 = vld [vmem:[#allocation3 + $0xf0] sm:$0xff]  ;;  %v2689_v25 = vsel %vm6340_vm5, %v2682_v32, %v2684_v18  ;;  %v2715_v34 = vsel %vm6342_vm4, %v5656_v9, %v5663_v8  ;;  %vm6344_vm1 = vmmov %vm6343_vm8 }
 0x6a9   : > { %2886 = vmatpush1.bf16.msra.mxu1 %v2875_v52  ;;  %v2848_v14 = vpack.c.bf16 %v2746_v22, %v2821_v23  ;;  %v2847_v59 = vpack.c.bf16 %v2745_v45, %v2820_v58  ;;  %v2845_v54 = vpack.c.bf16 %v2716_v50, %v2690_v28  ;;  %v2844_v36 = vpack.c.bf16 %v2715_v34, %v2689_v25  ;;  %v2803_v8 = vld [vmem:[#allocation3 + $0x68] sm:$0xff]  ;;  %vm6346_vm5 = vmmov %vm6344_vm1  ;;  %v5780_v34 = vld [vmem:[%s6182_s3] ss:$2 sm:$0xf] }
 0x6aa   : > { %v4199_v9 = vpack.c.bf16 %v2812_v4, %v5526_v12  ;;  %v4163_v12 = vunpack.i.l.bf16 %v5610_v53  ;;  %v2804_v53 = vld [vmem:[#allocation3 + $0x70] sm:$0xff]  ;;  %v2596_v45 = vsel %vm529_vm10, %v5608_v40, %v5660_v7  ;;  %v2801_v40 = vld [vmem:[#allocation3 + $0x58] sm:$0xff]  ;;  %v3032_v0 = vrot.slane %v5780_v34, %v4745_v42 }
 0x6ab   : > { %v2497_v20 = vpop.permute.xlu1 %2496  ;;  %v2637_v16 = vpop.permute.xlu0 %2636  ;;  %2887 = vmatprep.subr.bf16.mxu1 %v2848_v14 }
 0x6ac   : > { %v2504_v29 = vsel %vm6341_vm9, %v2495_v48, %v2497_v20  ;;  %v2645_v44 = vsel %vm6346_vm5, %v5600_v26, %v2637_v16  ;;  %vm6347_vm9 = vmmov %vm6345_vm15  ;;  %v2597_v26 = vsel %vm529_vm10, %v5660_v7, %v5671_v15 }
 0x6ad   : > { %2888 = vmatpush1.bf16.msra.mxu1 %v2847_v59  ;;  %2516 = vst [vmem:[#allocation3 + $0x20] sm:$0xf] %v2504_v29  ;;  %vm6348_vm4 = vmmov %vm6347_vm9  ;;  %v2838_v35 = vpack.c.bf16 %v2645_v44, %v2802_v62 }
 0x6ae   : > { %2889 = vmatprep.subr.bf16.mxu1 %v2845_v54 }
 0x6af   : > { %v2639_v55 = vpop.permute.xlu1 %2638  ;;  %v2541_v24 = vpop.permute.xlu0 %2540 }
 0x6b0   : > { %v2646_v6 = vsel %vm6343_vm8, %v2637_v16, %v2639_v55  ;;  %v2647_v17 = vsel %vm6344_vm1, %v2639_v55, %v5652_v46  ;;  %v2554_v32 = vsel %vm6345_vm15, %v4164_v1, %v2541_v24  ;;  %v2558_v46 = vsel %vm6347_vm9, %v5685_v61, %v2551_v57  ;;  %vm6349_vm8 = vmmov %vm6348_vm4  ;;  %v4178_v16 = vld [vmem:[%s6187_s8 + $0x10] sm:$0x3f]  }
 0x6b1   : > { %2890 = vmatpush1.bf16.msra.mxu1 %v2844_v36  ;;  %2659 = vst.msk [vmem:[#allocation3 + $0x88] sm:$0xff] %vm1202_vm7, %v2647_v17  ;;  %2566 = vst [vmem:[#allocation3 + $0x18] sm:$0xf0] %v2554_v32  ;;  %v2839_v21 = vpack.c.bf16 %v2646_v6, %v2803_v8  ;;  %v2557_v57 = vsel %vm6349_vm8, %v4163_v12, %v5685_v61  ;;  %v2836_v63 = vpack.c.bf16 %v2597_v26, %v2558_v46  ;;  %vm6350_vm1 = vcmask 138240   ;;  %v2798_v61 = vld [vmem:[#allocation3 + $0x40] sm:$0xff] }
 0x6b2   : > { %4200 = vmatprep.subr.msk.bf16.mxu1 %vm5015_vm13, %v4199_v9  ;;  %vm6351_vm15 = vmmov %vm6350_vm1  ;;  %v2835_v22 = vpack.c.bf16 %v2596_v45, %v2557_v57  ;;  %vm6354_vm8 = vcmask 523268   ;;  %v2837_v59 = vpack.c.bf16 %v2801_v40, %v2798_v61  ;;  %v3011_v36 = vld [vmem:[#allocation2 + $0x20] sm:$0xf]  ;;  %v3020_v55 = vrot.slane %v5780_v34, %v4694_v3 }
 0x6b3   : > { %v2543_v11 = vpop.permute.xlu1 %2542  ;;  %v2485_v41 = vpop.permute.xlu0 %2484  ;;  %vm6352_vm5 = vmmov %vm6350_vm1  ;;  %v3129_v9 = vrot.slane %v3011_v36, 4 }
 0x6b4   : > { %v2555_v43 = vsel %vm6348_vm4, %v2541_v24, %v2543_v11  ;;  %v2501_v23 = vsel %vm6352_vm5, %v5665_v51, %v5678_v27  ;;  %vm6353_vm9 = vmmov %vm6350_vm1  ;;  %v5787_v30 = vmul.f32 %v5649_v31, %v3020_v55  ;;  %v5789_v6 = vmul.f32 %v3020_v55, %v3011_v36 }
 0x6b5   : > { %4203 = vmatpush1.bf16.msk.msra.mxu1 %vm5029_vm14, %v4202_v56  ;;  %2567 = vst [vmem:[#allocation3 + $0x20] sm:$0xf0] %v2555_v43 }
 0x6b6   : > { %2893 = vmatprep.subr.bf16.mxu1 %v2839_v21  ;;  %v3213_v17 = vrot.slane %v5787_v30, 4  ;;  %v3217_v32 = vrot.slane %v5789_v6, 4 }
 0x6b7   : > { %v2493_v37 = vpop.permute.xlu1 %2492  ;;  %v2491_v10 = vpop.permute.xlu0 %2490 }
 0x6b8   : > { %v2503_v39 = vsel %vm6350_vm1, %v2493_v37, %v2495_v48  ;;  %v2502_v18 = vsel %vm6351_vm15, %v5678_v27, %v2491_v10  ;;  %v2807_v52 = vld [vmem:[#allocation3 + $0x88] sm:$0xff]  ;;  %v2500_v27 = vsel %vm6350_vm1, %v2485_v41, %v5665_v51  ;;  %vm6355_vm15 = vcmask 883712   ;;  %v5775_v51 = vld [vmem:[%s6182_s3 + $0x1] ss:$2 sm:$0xf]  ;;  %3225 = vrot.lane.b32.xlu1 %v3213_v17, %s6239_s30 }
 0x6b9   : > { %2894 = vmatpush1.bf16.msra.mxu1 %v2838_v35  ;;  %2515 = vst [vmem:[#allocation3 + $0x18] sm:$0xf] %v2503_v39  ;;  %2514 = vst.msk [vmem:[#allocation3 + $0x10] sm:$0xff] %vm1202_vm7, %v2502_v18  ;;  %v2840_v15 = vpack.c.bf16 %v2807_v52, %v2804_v53  ;;  %v3050_v1 = vrot.slane %v5775_v51, %v4694_v3  ;;  %v3062_v60 = vrot.slane %v5775_v51, %v4745_v42 }
 0x6ba   : > { %2895 = vmatprep.subr.bf16.mxu1 %v2836_v63  ;;  %vm6356_vm5 = vmmov %vm6355_vm15 }
 0x6bb   : > { %v2499_v28 = vpop.permute.xlu1 %2498  ;;  %4031 = vmatpush3.bf16.msra.mxu0 %v2840_v15  ;;  %v2545_v48 = vpop.permute.xlu0 %2544  ;;  %v3071_v24 = vmul.f32 %v3050_v1, %v3011_v36  ;;  %v3067_v44 = vmul.f32 %v5649_v31, %v3050_v1 }
 0x6bc   : > { %v2505_v58 = vsel %vm6353_vm9, %v2497_v20, %v2499_v28  ;;  %v2556_v14 = vsel %vm6348_vm4, %v2543_v11, %v2545_v48  ;;  %4032 = vmatprep.subr.bf16.mxu0 %v5649_v31  ;;  %v2794_v7 = vld [vmem:[#allocation3 + $0x20] sm:$0xff]  ;;  %vm6357_vm9 = vcmask 1043456  }
 0x6bd   : > { %2896 = vmatpush1.bf16.msra.mxu1 %v2835_v22  ;;  %2517 = vst.msk [vmem:[#allocation3 + $0x28] sm:$0xf] %vm1206_vm12, %v2505_v58  ;;  %v2833_v50 = vpack.c.bf16 %v2794_v7, %v2501_v23  ;;  %3187 = vrot.lane.b32.xlu0 %v3071_v24, %s6274_s1  ;;  %v3218_v8 = vsel %vm6357_vm9, %v3213_v17, %v3217_v32  ;;  %vm6358_vm4 = vmmov %vm6357_vm9 }
 0x6be   : > { %2568 = vst.msk [vmem:[#allocation3 + $0x28] sm:$0xf0] %vm6354_vm8, %v2556_v14  ;;  %v3130_v3 = vsel %vm6358_vm4, %v5441_v49, %v3129_v9  ;;  %v3054_v9 = vrot.slane %v5775_v51, %v4791_v19 }
 0x6bf   : > { %4033 = vmatpush3.bf16.msra.mxu0 %v2837_v59  ;;  %2897 = vmatprep.subr.bf16.mxu1 %v2833_v50 }
 0x6c0   : > { %v2793_v25 = vld [vmem:[#allocation3 + $0x18] sm:$0xff]  ;;  %4034 = vmatprep.subr.bf16.mxu0 %v5649_v31  ;;  %v2792_v54 = vld [vmem:[#allocation3 + $0x10] sm:$0xff]  ;;  %3145 = vrot.lane.b32.xlu1 %v3130_v3, %s6240_s29 }
 0x6c1   : > { %v2832_v20 = vpack.c.bf16 %v2793_v25, %v2500_v27  ;;  %3233 = vrot.lane.b32.xlu0 %v3218_v8, %s6239_s30 }
 0x6c3   : > { %2898 = vmatpush1.bf16.msra.mxu1 %v2832_v20 }
 0x6c5   : > { %v2795_v29 = vld [vmem:[#allocation3 + $0x28] sm:$0xff]  ;;  %3179 = vrot.lane.b32.xlu0 %v3067_v44, %s6274_s1 }
 0x6c6   : > { %v2834_v4 = vpack.c.bf16 %v2795_v29, %v2792_v54  ;;  %3899 = vmatmul.mubr.msk.bf16.vlgmr.msra.gmra.mxu1 %vm6355_vm15, %v4178_v16 }
 0x6c7   : > { %3490 = vmatprep.mubr.bf16.mxu1 %v4290_v13 }
 0x6c8   : > { %4035 = vmatpush3.bf16.msra.mxu0 %v2834_v4  ;;  %v2859_v11 = vpop.permute.xlu1 %2858  ;;  %v2864_v56 = vpop.permute.xlu0 %2863 }
 0x6cb   : > { %4037 = vmatmul.mubr.msk.bf16.vlgmr.msra.gmra.mxu0 %vm6356_vm5, %v4178_v16 }
 0x6cd   : > { %v2981_v21 = vpop.permute.xlu1 %2980 }
 0x786   : > { %v2917_v41 = vpop.f32.mrf.mxu1 }
 0x787   : > { %v2918_v46 = vadd.f32 %v2917_v41, %v2859_v11  ;;  %v3024_v41 = vrot.slane %v5780_v34, %v4791_v19 }
 0x788   : > { %v2919_v43 = vpop.f32.mrf.mxu1 }
 0x789   : > { %vm2968_vm8 = vcmp.ge.f32.partialorder %v2918_v46, 0.0  ;;  %v2920_v12 = vadd.f32 %v2919_v43, %v2859_v11  ;;  %v2983_v62 = vmul.f32 %v2981_v21, %v2918_v46  ;;  %v3058_v43 = vrot.slane %v5775_v51, %v4813_v38 }
 0x78a   : > { %v2921_v35 = vpop.f32.mrf.mxu1 }
 0x78b   : > { %v2960_v26 = vpop.f32.mrf.mxu0  ;;  %vm2969_vm1 = vcmp.ge.f32.partialorder %v2920_v12, 0.0  ;;  %v2922_v37 = vadd.f32 %v2921_v35, %v2864_v56  ;;  %v2984_v10 = vmul.f32 %v2981_v21, %v2920_v12  ;;  %v5802_v31 = vsel %vm2968_vm8, %v2918_v46, %v2983_v62 }
 0x78c   : > { %v2961_v57 = vadd.f32 %v2960_v26, %v2859_v11  ;;  %v2923_v39 = vpop.f32.mrf.mxu1  ;;  %v2995_v45 = vsel %vm4767_vm0, %v5802_v31, 0.0 }
 0x78d   : > { %v4038_v63 = vpop.f32.mrf.mxu0  ;;  %vm2971_vm5 = vcmp.ge.f32.partialorder %v2922_v37, 0.0  ;;  %v2986_v53 = vmul.f32 %v2981_v21, %v2922_v37  ;;  %v5804_v52 = vsel %vm2969_vm1, %v2920_v12, %v2984_v10  ;;  %v2924_v15 = vadd.f32 %v2923_v39, %v2864_v56 }
 0x78e   : > { %vm2970_vm15 = vcmp.ge.f32.partialorder %v2961_v57, 0.0  ;;  %v2985_v18 = vmul.f32 %v2981_v21, %v2961_v57  ;;  %v5812_v48 = vsel %vm4777_vm3, %v5804_v52, 0.0  ;;  %v3126_v44 = vrot.slane %v2995_v45, 4 }
 0x78f   : > { %v2963_v61 = vpop.f32.mrf.mxu0  ;;  %v2992_v28 = vsel %vm2971_vm5, %v2922_v37, %v2986_v53  ;;  %vm2972_vm9 = vcmp.ge.f32.partialorder %v2924_v15, 0.0  ;;  %v2987_v40 = vmul.f32 %v2981_v21, %v2924_v15  ;;  %v3068_v11 = vmul.f32 %v3054_v9, %v2995_v45 }
 0x790   : > { %v2991_v22 = vsel %vm2970_vm15, %v2961_v57, %v2985_v18  ;;  %v2964_v23 = vadd.f32 %v2963_v61, %v2864_v56  ;;  %v2998_v14 = vsel %vm4767_vm0, %v2992_v28, 0.0  ;;  %v3127_v46 = vrot.slane %v5812_v48, 4 }
 0x791   : > { %v2997_v58 = vsel %vm4735_vm6, %v2991_v22, 0.0  ;;  %v4039_v7 = vpop.f32.mrf.mxu0  ;;  %3004 = vst [vmem:[#allocation2 + $0x28] sm:$0xf] %v2998_v14  ;;  %v2993_v50 = vsel %vm2972_vm9, %v2924_v15, %v2987_v40  ;;  %v3069_v19 = vmul.f32 %v3058_v43, %v5812_v48  ;;  %v3028_v12 = vrot.slane %v5780_v34, %v4813_v38  ;;  %v3532_v40 = vld [vmem:[%s6190_s11] sm:$0xff] }
 0x792   : > { %3003 = vst.msk [vmem:[#allocation2 + $0x18] sm:$0xff] %vm1202_vm7, %v2997_v58  ;;  %vm2973_vm4 = vcmp.ge.f32.partialorder %v2964_v23, 0.0  ;;  %v2988_v59 = vmul.f32 %v2981_v21, %v2964_v23  ;;  %v2999_v27 = vsel %vm4777_vm3, %v2993_v50, 0.0  ;;  %vm6359_vm3 = vcmask 1043456   ;;  %v3905_v58 = vld [vmem:[%s6188_s9 + $0x30] sm:$0xff]  ;;  %v3226_v7 = vpop.permute.xlu1 %3225 }
 0x793   : > { %3005 = vst [vmem:[#allocation2 + $0x30] sm:$0xf] %v2999_v27  ;;  %vm6360_vm0 = vmmov %vm6359_vm3  ;;  %v3038_v21 = vmul.f32 %v3024_v41, %v2995_v45  ;;  %v3039_v62 = vmul.f32 %v3028_v12, %v5812_v48  ;;  %v3265_v51 = vrot.slane %v3068_v11, 4  ;;  %v3266_v38 = vrot.slane %v3069_v19, 4 }
 0x794   : > { %v2994_v25 = vsel %vm2973_vm4, %v2964_v23, %v2988_v59  ;;  %vm6362_vm8 = vmmov %vm6360_vm0  ;;  %v4299_v14 = vmov 5   ;;  %v4300_v50 = vmov 6   ;;  %vm6367_vm4 = vcmask 523268  }
 0x795   : > { %v3000_v20 = vsel %vm4735_vm6, %v2994_v25, 0.0  ;;  %v3214_v56 = vrot.slane %v3038_v21, 4  ;;  %vm6361_vm6 = vmmov %vm6360_vm0  ;;  %v3215_v37 = vrot.slane %v3039_v62, 4 }
 0x796   : > { %3006 = vst.msk [vmem:[#allocation2 + $0x38] sm:$0xf] %vm1206_vm12, %v3000_v20  ;;  %vm6363_vm1 = vmmov %vm6360_vm0 }
 0x797   : > { %vm6364_vm15 = vmmov %vm6360_vm0 }
 0x798   : > { %v3012_v54 = vld [vmem:[#allocation2 + $0x28] sm:$0xf]  ;;  %vm6365_vm5 = vmmov %vm6360_vm0 }
 0x799   : > { %v3010_v16 = vld [vmem:[#allocation2 + $0x18] sm:$0xff]  ;;  %3262 = vst [vmem:[#allocation3 + $0xa8] sm:$0xf] %v3012_v54  ;;  %v3042_v26 = vmul.f32 %v3024_v41, %v3012_v54  ;;  %v3072_v35 = vmul.f32 %v3054_v9, %v3012_v54  ;;  %v3131_v57 = vrot.slane %v3012_v54, 4  ;;  %vm6366_vm9 = vmmov %vm6360_vm0 }
 0x79a   : > { %v5826_v29 = vrot.slane %v3010_v16, 4  ;;  %3261 = vst.msk [vmem:[#allocation3 + $0xa0] sm:$0xff] %vm1202_vm7, %v3010_v16  ;;  %v5829_v4 = vmul.f32 %v3062_v60, %v3010_v16  ;;  %v3013_v33 = vld [vmem:[#allocation2 + $0x30] sm:$0xf]  ;;  %v5837_v36 = vmul.f32 %v3032_v0, %v3010_v16 }
 0x79b   : > { %3263 = vst [vmem:[#allocation3 + $0xb0] sm:$0xf] %v3013_v33  ;;  %v3132_v34 = vsel %vm6361_vm6, %v3126_v44, %v3131_v57  ;;  %v3073_v10 = vmul.f32 %v3058_v43, %v3013_v33  ;;  %v3043_v63 = vmul.f32 %v3028_v12, %v3013_v33  ;;  %v3133_v39 = vrot.slane %v3013_v33, 4 }
 0x79c   : > { %3334 = vrot.lane.b32.xlu1 %v5826_v29, %s6243_s25  ;;  %3362 = vrot.lane.b32.xlu0 %v5829_v4, %s6244_s16  ;;  %v3267_v42 = vrot.slane %v5829_v4, 4  ;;  %v3268_v53 = vrot.slane %v3072_v35, 4  ;;  %v3219_v61 = vrot.slane %v3042_v26, 4 }
 0x79d   : > { %v3014_v1 = vld [vmem:[#allocation2 + $0x38] sm:$0xf]  ;;  %v3134_v18 = vsel %vm6362_vm8, %v3127_v46, %v3133_v39  ;;  %v3270_v15 = vrot.slane %v3073_v10, 4  ;;  %v3221_v48 = vrot.slane %v3043_v63, 4  ;;  %vm6371_vm8 = vcmask 7168  }
 0x79e   : > { %v5839_v55 = vmul.f32 %v3062_v60, %v3014_v1  ;;  %3264 = vst.msk [vmem:[#allocation3 + $0xb8] sm:$0xf] %vm1206_vm12, %v3014_v1  ;;  %v5847_v24 = vmul.f32 %v3032_v0, %v3014_v1  ;;  %v3135_v32 = vrot.slane %v3014_v1, 4  ;;  %v3269_v45 = vsel %vm6363_vm1, %v3265_v51, %v3268_v53  ;;  %v3906_v60 = vld [vmem:[%s6188_s9 + $0x38] sm:$0xf] }
 0x79f   : > { %v3271_v22 = vsel %vm6364_vm15, %v3266_v38, %v3270_v15  ;;  %v3220_v28 = vsel %vm6365_vm5, %v3214_v56, %v3219_v61  ;;  %v3222_v23 = vsel %vm6366_vm9, %v3215_v37, %v3221_v48  ;;  %vm6372_vm1 = vcmask 924672  }
 0x7a0   : > { %3306 = vrot.lane.b32.xlu0 %v5837_v36, %s6245_s27  ;;  %3368 = vrot.lane.b32.xlu1 %v5839_v55, %s6244_s16  ;;  %v3272_v17 = vrot.slane %v5839_v55, 4  ;;  %v5858_v3 = vsel %vm6360_vm0, %v5826_v29, %v3135_v32  ;;  %vm6369_vm0 = vcmask 908288   ;;  %vm6373_vm15 = vmmov %vm6372_vm1  ;;  %vm6374_vm5 = vcmask 1039360  }
 0x7a1   : > { %vm6370_vm6 = vmmov %vm6369_vm0 }
 0x7a2   : > { %v3273_v8 = vsel %vm6359_vm3, %v3267_v42, %v3272_v17  ;;  %vm6368_vm3 = vmmov %vm6367_vm4 }
 0x7a3   : > { %vm6375_vm9 = vmmov %vm6374_vm5 }
 0x7a4   : > { %3278 = vrot.lane.b32.xlu0 %v3267_v42, %s6248_s15  ;;  %3312 = vrot.lane.b32.xlu1 %v5847_v24, %s6245_s27 }
 0x7a8   : > { %3284 = vrot.lane.b32.xlu0 %v3273_v8, %s6248_s15  ;;  %3340 = vrot.lane.b32.xlu1 %v5858_v3, %s6243_s25 }
 0x7ac   : > { %3330 = vrot.lane.b32.xlu1 %v3126_v44, %s6243_s25  ;;  %3358 = vrot.lane.b32.xlu0 %v3068_v11, %s6244_s16 }
 0x7b0   : > { %3181 = vrot.lane.b32.xlu1 %v3068_v11, %s6274_s1  ;;  %3302 = vrot.lane.b32.xlu0 %v3038_v21, %s6245_s27 }
 0x7b4   : > { %3085 = vrot.lane.b32.xlu1 %v3038_v21, %s6251_s13  ;;  %3332 = vrot.lane.b32.xlu0 %v3127_v46, %s6243_s25 }
 0x7b8   : > { %3360 = vrot.lane.b32.xlu1 %v3069_v19, %s6244_s16  ;;  %3227 = vrot.lane.b32.xlu0 %v3214_v56, %s6239_s30 }
 0x7bc   : > { %3304 = vrot.lane.b32.xlu1 %v3039_v62, %s6245_s27  ;;  %3183 = vrot.lane.b32.xlu0 %v3069_v19, %s6274_s1 }
 0x7c0   : > { %3274 = vrot.lane.b32.xlu1 %v3265_v51, %s6248_s15  ;;  %3308 = vrot.lane.b32.xlu0 %v3042_v26, %s6245_s27 }
 0x7c4   : > { %3364 = vrot.lane.b32.xlu1 %v3072_v35, %s6244_s16  ;;  %3189 = vrot.lane.b32.xlu0 %v3072_v35, %s6274_s1 }
 0x7c8   : > { %3276 = vrot.lane.b32.xlu1 %v3266_v38, %s6248_s15  ;;  %3336 = vrot.lane.b32.xlu0 %v3132_v34, %s6243_s25 }
 0x7cc   : > { %3229 = vrot.lane.b32.xlu1 %v3215_v37, %s6239_s30  ;;  %3366 = vrot.lane.b32.xlu0 %v3073_v10, %s6244_s16  ;;  %s3722_s16 = scalar_lea.vmem (%p4412_p5), %s6191_s12, %s3919_s14 }
 0x7d0   : > { %3147 = vrot.lane.b32.xlu1 %v3132_v34, %s6240_s29  ;;  %3310 = vrot.lane.b32.xlu0 %v3043_v63, %s6245_s27 }
 0x7d4   : > { %3191 = vrot.lane.b32.xlu1 %v3073_v10, %s6274_s1  ;;  %3338 = vrot.lane.b32.xlu0 %v3134_v18, %s6243_s25 }
 0x7d8   : > { %3280 = vrot.lane.b32.xlu1 %v3269_v45, %s6248_s15  ;;  %3087 = vrot.lane.b32.xlu0 %v3039_v62, %s6251_s13 }
 0x7dc   : > { %3282 = vrot.lane.b32.xlu1 %v3271_v22, %s6248_s15  ;;  %3235 = vrot.lane.b32.xlu0 %v3220_v28, %s6239_s30 }
 0x7e0   : > { %3093 = vrot.lane.b32.xlu1 %v3042_v26, %s6251_s13  ;;  %3149 = vrot.lane.b32.xlu0 %v3134_v18, %s6240_s29 }
 0x7e4   : > { %3237 = vrot.lane.b32.xlu1 %v3222_v23, %s6239_s30  ;;  %3095 = vrot.lane.b32.xlu0 %v3043_v63, %s6251_s13 }
 0x7e8   : > { %3139 = vrot.lane.b32.xlu1 %v3126_v44, %s6240_s29  ;;  %3141 = vrot.lane.b32.xlu0 %v3127_v46, %s6240_s29 }
 0x7ec   : > { %3083 = vrot.lane.b32.xlu1 %v5787_v30, %s6251_s13  ;;  %3091 = vrot.lane.b32.xlu0 %v5789_v6, %s6251_s13  ;;  %v3535_v30 = vld [vmem:[%s6190_s11 + $0x18] sm:$0xff]  ;;  %v3188_v6 = vpop.permute.xlu0 %3187 }
 0x7f0   : > { %3137 = vrot.lane.b32.xlu1 %v5441_v49, %s6240_s29  ;;  %3436 = vperm.xlu0 %4143, %v3905_v58   ;;  %v3537_v49 = vld [vmem:[%s6190_s11 + $0x28] sm:$0xff]  ;;  %v5930_v59 = vpop.permute.xlu0 %3233 }
 0x7f4   : > { %4168 = vset.pattern.permute.xlu0 %v4299_v14  ;;  %v3180_v27 = vpop.permute.xlu0 %3179  ;;  %3441 = vperm.xlu1 %4167, %v3906_v60  }
 0x7f5   : > { %3512 = vperm.xlu0 %4168, %v5605_v5  }
 0x7f9   : > { %4169 = vset.pattern.permute.xlu0 %v4290_v13  ;;  %v5933_v13 = vpop.permute.xlu1 %3145 }
 0x7fa   : > { %3541 = vperm.xlu0 %4169, %v3532_v40  }
 0x7fe   : > { %3556 = vperm.xlu0 %4169, %v3535_v30  }
 0x802   : > { %3566 = vperm.xlu0 %4169, %v3537_v49  }
 0x806   : > { %4170 = vset.pattern.permute.xlu0 %v4300_v50 }
 0x807   : > { %3688 = vperm.xlu0 %4170, %v5605_v5   ;;  %v3216_v5 = vrot.slane %v5837_v36, 4 }
 0x80b   : > { %3143 = vrot.lane.b32.xlu0 %v5826_v29, %s6240_s29 }
 0x80e   : > { %v3335_v25 = vpop.permute.xlu1 %3334  ;;  %v3363_v20 = vpop.permute.xlu0 %3362 }
 0x80f   : > { %3354 = vst.msk [vmem:[#allocation3 + $0x100] sm:$0xf0] %vm6367_vm4, %v3335_v25  ;;  %3185 = vrot.lane.b32.xlu0 %v5829_v4, %s6274_s1  ;;  %vm6376_vm4 = vmmov %vm6371_vm8 }
 0x810   : > { %3382 = vst.msk [vmem:[#allocation3 + $0x130] sm:$0xff] %vm1202_vm7, %v3363_v20 }
 0x812   : > { %v3369_v16 = vpop.permute.xlu1 %3368  ;;  %v3307_v54 = vpop.permute.xlu0 %3306 }
 0x813   : > { %3385 = vst.msk [vmem:[#allocation3 + $0x148] sm:$0xf] %vm1206_vm12, %v3369_v16  ;;  %3231 = vrot.lane.b32.xlu0 %v3216_v5, %s6239_s30 }
 0x814   : > { %3326 = vst.msk [vmem:[#allocation3 + $0xe8] sm:$0xff] %vm1202_vm7, %v3307_v54 }
 0x816   : > { %v3313_v29 = vpop.permute.xlu1 %3312  ;;  %v3279_v0 = vpop.permute.xlu0 %3278 }
 0x817   : > { %3329 = vst.msk [vmem:[#allocation3 + $0x100] sm:$0xf] %vm1206_vm12, %v3313_v29 }
 0x818   : > { %3298 = vst.msk [vmem:[#allocation3 + $0xb8] sm:$0xf0] %vm6368_vm3, %v3279_v0  ;;  %vm6377_vm3 = vmmov %vm6369_vm0 }
 0x81a   : > { %v3341_v4 = vpop.permute.xlu1 %3340  ;;  %v5952_v33 = vpop.permute.xlu0 %3284 }
 0x81b   : > { %3357 = vst.msk [vmem:[#allocation3 + $0x118] sm:$0xff] %vm1202_vm7, %v3341_v4  ;;  %3301 = vst.msk [vmem:[#allocation3 + $0xd0] sm:$0xff] %vm1202_vm7, %v5952_v33 }
 0x81e   : > { %v3331_v1 = vpop.permute.xlu1 %3330  ;;  %v3359_v42 = vpop.permute.xlu0 %3358 }
 0x822   : > { %v3182_v17 = vpop.permute.xlu1 %3181  ;;  %v3303_v32 = vpop.permute.xlu0 %3302 }
 0x823   : > { %v5958_v9 = vsel %vm529_vm10, %v3180_v27, %v3182_v17 }
 0x824   : > { %3207 = vst [vmem:[#allocation3 + $0x48] sm:$0xff] %v5958_v9 }
 0x826   : > { %v5961_v8 = vpop.permute.xlu1 %3085  ;;  %v3333_v44 = vpop.permute.xlu0 %3332 }
 0x827   : > { %v3342_v11 = vsel %vm611_vm2, %v3331_v1, %v3333_v44  ;;  %v3343_v41 = vsel %vm611_vm2, %v3333_v44, %v3335_v25 }
 0x828   : > { %3352 = vst [vmem:[#allocation3 + $0xf0] sm:$0xf0] %v3342_v11  ;;  %3353 = vst [vmem:[#allocation3 + $0xf8] sm:$0xf0] %v3343_v41 }
 0x82a   : > { %v3361_v21 = vpop.permute.xlu1 %3360  ;;  %v3228_v46 = vpop.permute.xlu0 %3227 }
 0x82b   : > { %v3370_v43 = vsel %vm6369_vm0, %v3359_v42, %v3361_v21  ;;  %v3371_v19 = vsel %vm6370_vm6, %v3361_v21, %v3363_v20  ;;  %v3241_v56 = vsel %vm6371_vm8, %v3226_v7, %v3228_v46  ;;  %vm6378_vm6 = vcmask 130048   ;;  %vm6379_vm8 = vmmov %vm6372_vm1 }
 0x82c   : > { %3253 = vst [vmem:[#allocation3 + $0x60] sm:$0xf0] %v3241_v56 }
 0x82e   : > { %v3305_v12 = vpop.permute.xlu1 %3304  ;;  %v5968_v62 = vpop.permute.xlu0 %3183 }
 0x82f   : > { %v5971_v51 = vsel %vm6372_vm1, %v3303_v32, %v3305_v12  ;;  %v5974_v26 = vsel %vm6373_vm15, %v3305_v12, %v3307_v54  ;;  %v5978_v35 = vsel %vm529_vm10, %v3182_v17, %v5968_v62  ;;  %vm6380_vm15 = vcmask 138240  }
 0x830   : > { %3208 = vst [vmem:[#allocation3 + $0x50] sm:$0xff] %v5978_v35 }
 0x832   : > { %v3275_v57 = vpop.permute.xlu1 %3274  ;;  %v3309_v38 = vpop.permute.xlu0 %3308 }
 0x836   : > { %v3365_v34 = vpop.permute.xlu1 %3364  ;;  %v3190_v37 = vpop.permute.xlu0 %3189 }
 0x837   : > { %v3198_v10 = vsel %vm529_vm10, %v3188_v6, %v3190_v37 }
 0x838   : > { %3210 = vst [vmem:[#allocation3 + $0x60] sm:$0xf] %v3198_v10 }
 0x83a   : > { %v3277_v63 = vpop.permute.xlu1 %3276  ;;  %v3337_v39 = vpop.permute.xlu0 %3336 }
 0x83b   : > { %v3286_v18 = vsel %vm6374_vm5, %v3275_v57, %v3277_v63  ;;  %v3287_v53 = vsel %vm6375_vm9, %v3277_v63, %v3279_v0  ;;  %vm6383_vm9 = vmmov %vm6376_vm4 }
 0x83c   : > { %3296 = vst [vmem:[#allocation3 + $0xa8] sm:$0xf0] %v3286_v18  ;;  %3297 = vst [vmem:[#allocation3 + $0xb0] sm:$0xf0] %v3287_v53 }
 0x83e   : > { %v5984_v45 = vpop.permute.xlu1 %3229  ;;  %v3367_v15 = vpop.permute.xlu0 %3366 }
 0x83f   : > { %v3242_v61 = vsel %vm6376_vm4, %v3228_v46, %v5984_v45  ;;  %v3372_v22 = vsel %vm6377_vm3, %v3365_v34, %v3367_v15  ;;  %v3373_v28 = vsel %vm6369_vm0, %v3367_v15, %v3369_v16  ;;  %vm6384_vm4 = vmmov %vm6378_vm6  ;;  %v3397_v2 = vld [vmem:[#allocation3 + $0x60] sm:$0xff] }
 0x840   : > { %3254 = vst [vmem:[#allocation3 + $0x68] sm:$0xf0] %v3242_v61  ;;  %3383 = vst [vmem:[#allocation3 + $0x138] sm:$0xf] %v3372_v22 }
 0x841   : > { %3384 = vst [vmem:[#allocation3 + $0x140] sm:$0xf] %v3373_v28  ;;  %vm6385_vm3 = vmmov %vm6383_vm9 }
 0x842   : > { %v3148_v48 = vpop.permute.xlu1 %3147  ;;  %v3311_v23 = vpop.permute.xlu0 %3310  ;;  %vm6386_vm0 = vmmov %vm6380_vm15 }
 0x843   : > { %v5992_v58 = vsel %vm6378_vm6, %v5933_v13, %v3148_v48  ;;  %v3316_v14 = vsel %vm6379_vm8, %v3309_v38, %v3311_v23  ;;  %v3317_v40 = vsel %vm6372_vm1, %v3311_v23, %v3313_v29  ;;  %v3404_v21 = vld [vmem:[#allocation3 + $0xb0] sm:$0xff]  ;;  %v3403_v12 = vld [vmem:[#allocation3 + $0xa8] sm:$0xff]  ;;  %vm6389_vm6 = vmmov %vm6386_vm0  ;;  %vm6391_vm1 = vcmask 883712  }
 0x844   : > { %3168 = vst [vmem:[#allocation3 + $0x30] sm:$0xff] %v5992_v58  ;;  %3327 = vst [vmem:[#allocation3 + $0xf0] sm:$0xf] %v3316_v14  ;;  %v4208_v34 = vpack.c.bf16 %v3403_v12, %v5802_v31  ;;  %v3419_v31 = vpack.c.bf16 %v5958_v9, %v5992_v58  ;;  %v4179_v58 = vld [vmem:[%s6187_s8 + $0x18] sm:$0x3f]  }
 0x845   : > { %3328 = vst [vmem:[#allocation3 + $0xf8] sm:$0xf] %v3317_v40  ;;  %vm6390_vm8 = vmmov %vm6384_vm4 }
 0x846   : > { %v5997_v30 = vpop.permute.xlu1 %3191  ;;  %v3339_v6 = vpop.permute.xlu0 %3338 }
 0x847   : > { %v3199_v49 = vsel %vm529_vm10, %v3190_v37, %v5997_v30  ;;  %v3344_v7 = vsel %vm611_vm2, %v3337_v39, %v3339_v6  ;;  %v3345_v50 = vsel %vm611_vm2, %v3339_v6, %v3341_v4  ;;  %v3415_v27 = vld [vmem:[#allocation3 + $0x138] sm:$0xf]  ;;  %vm6381_vm2 = vmmov %vm6374_vm5 }
 0x848   : > { %v3416_v13 = vld [vmem:[#allocation3 + $0x140] sm:$0xf]  ;;  %3211 = vst [vmem:[#allocation3 + $0x68] sm:$0xf] %v3199_v49  ;;  %v3429_v20 = vpack.c.bf16 %v3415_v27, %v3370_v43  ;;  %vm6382_vm5 = vmmov %vm6381_vm2 }
 0x849   : > { %v3430_v25 = vpack.c.bf16 %v3416_v13, %v3371_v19 }
 0x84a   : > { %v3281_v60 = vpop.permute.xlu1 %3280  ;;  %v6004_v16 = vpop.permute.xlu0 %3087  ;;  %v3453_v54 = vsel %vm1675_vm11, %v3429_v20, 0 }
 0x84b   : > { %3908 = vmatprep.subr.msk.bf16.mxu1 %vm1675_vm11, %v3430_v25  ;;  %v3100_v29 = vsel %vm6380_vm15, %v5961_v8, %v6004_v16  ;;  %v3409_v1 = vld [vmem:[#allocation3 + $0xf0] sm:$0xff]  ;;  %vm6392_vm15 = vmmov %vm6384_vm4 }
 0x84c   : > { %3461 = vmatpush1.bf16.msra.mxu1 %v3453_v54  ;;  %v3410_v0 = vld [vmem:[#allocation3 + $0xf8] sm:$0xff]  ;;  %3112 = vst [vmem:[#allocation3 + $0x8] sm:$0xff] %v3100_v29  ;;  %v3427_v42 = vpack.c.bf16 %v3344_v7, %v3409_v1 }
 0x84d   : > { %v3428_v4 = vpack.c.bf16 %v3345_v50, %v3410_v0 }
 0x84e   : > { %v3283_v17 = vpop.permute.xlu1 %3282  ;;  %v3236_v32 = vpop.permute.xlu0 %3235 }
 0x84f   : > { %3462 = vmatprep.subr.bf16.mxu1 %v3428_v4  ;;  %v3288_v44 = vsel %vm6381_vm2, %v3281_v60, %v3283_v17  ;;  %v3289_v11 = vsel %vm6382_vm5, %v3283_v17, %v5952_v33  ;;  %v3244_v41 = vsel %vm6383_vm9, %v5930_v59, %v3236_v32  ;;  %v4205_v33 = vpack.c.bf16 %v3404_v21, %v5804_v52  ;;  %v3398_v37 = vld [vmem:[#allocation3 + $0x68] sm:$0xff]  ;;  %vm6394_vm5 = vmmov %vm6385_vm3 }
 0x850   : > { %3463 = vmatpush1.bf16.msra.mxu1 %v3427_v42  ;;  %v3426_v46 = vpack.c.bf16 %v5974_v26, %v3289_v11  ;;  %v3425_v43 = vpack.c.bf16 %v5971_v51, %v3288_v44  ;;  %v3421_v10 = vpack.c.bf16 %v3244_v41, %v3397_v2  ;;  %vm6393_vm2 = vcmask 523268  }
 0x851   : > { %vm6395_vm9 = vmmov %vm6393_vm2  ;;  %v3223_v2 = vrot.slane %v5847_v24, 4 }
 0x852   : > { %v3094_v19 = vpop.permute.xlu1 %3093  ;;  %v6017_v56 = vpop.permute.xlu0 %3149  ;;  %3464 = vmatprep.subr.bf16.mxu1 %v3426_v46 }
 0x853   : > { %v3157_v57 = vsel %vm6384_vm4, %v3148_v48, %v6017_v56 }
 0x854   : > { %3465 = vmatpush1.bf16.msra.mxu1 %v3425_v43  ;;  %3169 = vst [vmem:[#allocation3 + $0x38] sm:$0xff] %v3157_v57  ;;  %v3420_v18 = vpack.c.bf16 %v5978_v35, %v3157_v57 }
 0x855   : > { %4206 = vmatprep.subr.msk.bf16.mxu1 %vm5015_vm13, %v4205_v33  ;;  %vm6387_vm13 = vmmov %vm6384_vm4 }
 0x856   : > { %v6024_v59 = vpop.permute.xlu1 %3237  ;;  %v6026_v26 = vpop.permute.xlu0 %3095 }
 0x857   : > { %v3245_v51 = vsel %vm6385_vm3, %v3236_v32, %v6024_v59  ;;  %v3103_v38 = vsel %vm6386_vm0, %v3094_v19, %v6026_v26  ;;  %vm3600_vm3 = vcmask 97280  }
 0x858   : > { %4209 = vmatpush1.bf16.msk.msra.mxu1 %vm5029_vm14, %v4208_v34  ;;  %3115 = vst [vmem:[#allocation3 + $0x20] sm:$0xf] %v3103_v38  ;;  %v3422_v52 = vpack.c.bf16 %v3245_v51, %v3398_v37  ;;  %vm6388_vm14 = vmmov %vm6386_vm0  ;;  %v3533_v38 = vld [vmem:[%s6190_s11 + $0x8] sm:$0xff]  ;;  %v3534_v34 = vld [vmem:[%s6190_s11 + $0x10] sm:$0xff] }
 0x859   : > { %v3536_v37 = vld [vmem:[%s6190_s11 + $0x20] sm:$0xff] }
 0x85a   : > { %v3140_v63 = vpop.permute.xlu1 %3139  ;;  %v3142_v39 = vpop.permute.xlu0 %3141  ;;  %3468 = vmatprep.subr.bf16.mxu1 %v3422_v52  ;;  %v3538_v52 = vld [vmem:[%s6190_s11 + $0x30] sm:$0xff] }
 0x85b   : > { %v3154_v53 = vsel %vm6387_vm13, %v3140_v63, %v3142_v39 }
 0x85c   : > { %3469 = vmatpush1.bf16.msra.mxu1 %v3421_v10  ;;  %3166 = vst [vmem:[#allocation3 + $0x20] sm:$0xf0] %v3154_v53 }
 0x85d   : > { %3470 = vmatprep.subr.bf16.mxu1 %v3420_v18 }
 0x85e   : > { %v3084_v47 = vpop.permute.xlu1 %3083  ;;  %v3092_v15 = vpop.permute.xlu0 %3091 }
 0x85f   : > { %v3099_v61 = vsel %vm6388_vm14, %v3084_v47, %v5961_v8  ;;  %v3102_v22 = vsel %vm6389_vm6, %v3092_v15, %v3094_v19  ;;  %vm6397_vm6 = vcmask 1043456  }
 0x860   : > { %3471 = vmatpush1.bf16.msra.mxu1 %v3419_v31  ;;  %3111 = vst [vmem:[#allocation3] sm:$0xff] %v3099_v61  ;;  %3114 = vst [vmem:[#allocation3 + $0x18] sm:$0xf] %v3102_v22  ;;  %v3224_v10 = vsel %vm6397_vm6, %v3216_v5, %v3223_v2 }
 0x862   : > { %v3138_v28 = vpop.permute.xlu1 %3137 }
 0x863   : > { %v3153_v35 = vsel %vm6390_vm8, %v3138_v28, %v3140_v63  ;;  %v3392_v48 = vld [vmem:[#allocation3 + $0x20] sm:$0xff]  ;;  %vm6398_vm8 = vcmask 261120  }
 0x864   : > { %3165 = vst [vmem:[#allocation3 + $0x18] sm:$0xf0] %v3153_v35  ;;  %v3418_v23 = vpack.c.bf16 %v3392_v48, %v3100_v29 }
 0x866   : > { %3472 = vmatprep.subr.bf16.mxu1 %v3418_v23 }
 0x86b   : > { %v3391_v14 = vld [vmem:[#allocation3 + $0x18] sm:$0xff]  ;;  %v3437_v40 = vpop.permute.xlu0 %3436 }
 0x86c   : > { %v3417_v9 = vpack.c.bf16 %v3391_v14, %v3099_v61 }
 0x86e   : > { %3473 = vmatpush1.bf16.msra.mxu1 %v3417_v9 }
 0x86f   : > { %v3442_v4 = vpop.permute.xlu1 %3441 }
 0x870   : > { %v3513_v8 = vpop.permute.xlu0 %3512 }
 0x871   : > { %3909 = vmatmul.mubr.msk.bf16.vlgmr.msra.gmra.mxu1 %vm6391_vm1, %v4179_v58 }
 0x875   : > { %v6047_v6 = vpop.permute.xlu0 %3541 }
 0x879   : > { %v6049_v49 = vpop.permute.xlu0 %3556 }
 0x87d   : > { %v6051_v7 = vpop.permute.xlu0 %3566 }
 0x882   : > { %v6053_v50 = vpop.permute.xlu0 %3688 }
 0x886   : > { %v3144_v13 = vpop.permute.xlu0 %3143 }
 0x887   : > { %v3155_v27 = vsel %vm6392_vm15, %v3142_v39, %v3144_v13 }
 0x888   : > { %3167 = vst.msk [vmem:[#allocation3 + $0x28] sm:$0xf0] %vm6393_vm2, %v3155_v27  ;;  %vm6401_vm2 = vmmov %vm6394_vm5 }
 0x88a   : > { %v3186_v25 = vpop.permute.xlu0 %3185 }
 0x88b   : > { %v3197_v20 = vsel %vm529_vm10, %v5968_v62, %v3186_v25  ;;  %v4180_v62 = vld [vmem:[%s6189_s10] sm:$0xff]  }
 0x88c   : > { %3209 = vst.msk [vmem:[#allocation3 + $0x58] sm:$0xff] %vm1202_vm7, %v3197_v20  ;;  %4042 = vmatprep.mubr.msk.bf16.mxu0 %vm3600_vm3, %v4180_v62 }
 0x88e   : > { %v3232_v60 = vpop.permute.xlu0 %3231 }
 0x88f   : > { %v3243_v54 = vsel %vm6394_vm5, %v5984_v45, %v3232_v60 }
 0x890   : > { %3255 = vst.msk [vmem:[#allocation3 + $0x70] sm:$0xf0] %vm6395_vm9, %v3243_v54 }
 0x931   : > { %v3492_v29 = vpop.f32.mrf.mxu1 }
 0x932   : > { %v3493_v0 = vadd.f32 %v3492_v29, %v3437_v40 }
 0x933   : > { %v3494_v1 = vpop.f32.mrf.mxu1 }
 0x934   : > { %v3515_v42 = vmul.f32 %v3513_v8, %v3493_v0  ;;  %vm3502_vm4 = vcmp.ge.f32.partialorder %v3493_v0, 0.0  ;;  %v3495_v32 = vadd.f32 %v3494_v1, %v3437_v40 }
 0x935   : > { %v3496_v17 = vpop.f32.mrf.mxu1 }
 0x936   : > { %v3497_v44 = vadd.f32 %v3496_v17, %v3442_v4  ;;  %v3519_v21 = vsel %vm3502_vm4, %v3493_v0, %v3515_v42  ;;  %v3516_v46 = vmul.f32 %v3513_v8, %v3495_v32  ;;  %vm3503_vm14 = vcmp.ge.f32.partialorder %v3495_v32, 0.0 }
 0x937   : > { %v3498_v11 = vpop.f32.mrf.mxu1 }
 0x938   : > { %vm3504_vm0 = vcmp.ge.f32.partialorder %v3497_v44, 0.0  ;;  %v3517_v41 = vmul.f32 %v3513_v8, %v3497_v44  ;;  %v3499_v45 = vadd.f32 %v3498_v11, %v3442_v4  ;;  %v3520_v33 = vsel %vm3503_vm14, %v3495_v32, %v3516_v46 }
 0x93a   : > { %v3521_v43 = vsel %vm3504_vm0, %v3497_v44, %v3517_v41  ;;  %vm3505_vm13 = vcmp.ge.f32.partialorder %v3499_v45, 0.0  ;;  %v3518_v19 = vmul.f32 %v3513_v8, %v3499_v45 }
 0x93b   : > { %v3530_v12 = vpack.c.bf16 %v3521_v43, %v3519_v21 }
 0x93c   : > { %v3522_v57 = vsel %vm3505_vm13, %v3499_v45, %v3518_v19 }
 0x93d   : > { %3594 = vrot.lane.b32.xlu1 %v3530_v12, %s6396_s4  ;;  %v3531_v51 = vpack.c.bf16 %v3522_v57, %v3520_v33 }
 0x941   : > { %3596 = vrot.lane.b32.xlu1 %v3531_v51, %s6396_s4 }
 0x945   : > { %3546 = vperm.xlu1 %4167, %v3533_v38  }
 0x949   : > { %3551 = vperm.xlu1 %4167, %v3534_v34  }
 0x94d   : > { %3561 = vperm.xlu1 %4167, %v3536_v37  }
 0x951   : > { %3571 = vperm.xlu1 %4167, %v3538_v52  }
 0x955   : > { %3089 = vrot.lane.b32.xlu1 %v5837_v36, %s6251_s13  ;;  %v4182_v36 = vld [vmem:[%s6189_s10 + $0x10] sm:$0xff]  }
 0x959   : > { %3097 = vrot.lane.b32.xlu1 %v5847_v24, %s6251_s13  ;;  %v4181_v24 = vld [vmem:[%s6189_s10 + $0x8] sm:$0xff]  }
 0x95d   : > { %3151 = vrot.lane.b32.xlu1 %v5858_v3, %s6240_s29 }
 0x961   : > { %3193 = vrot.lane.b32.xlu1 %v5839_v55, %s6274_s1  ;;  %v4183_v55 = vld [vmem:[%s6189_s10 + $0x18] ss:$0 sps:$4 sm:$0xff]  }
 0x965   : > { %3239 = vrot.lane.b32.xlu1 %v3224_v10, %s6239_s30 }
 0x9af   : > { %v3595_v63 = vpop.permute.xlu1 %3594 }
 0x9b3   : > { %v3597_v39 = vpop.permute.xlu1 %3596 }
 0x9b4   : > { %v3599_v18 = vsel %vm6398_vm8, %v3595_v63, %v3597_v39 }
 0x9b5   : > { %v3614_v53 = vsel %vm1675_vm11, %v3599_v18, 0  ;;  %4050 = vmatprep.subr.msk.bf16.mxu0 %vm1675_vm11, %v3599_v18  ;;  %vm6399_vm11 = vcmask 138240  }
 0x9b6   : > { %4041 = vmatpush3.bf16.msra.mxu0 %v3614_v53  ;;  %vm6400_vm1 = vmmov %vm6399_vm11 }
 0x9b9   : > { %4043 = vmatmul.mubr.msk.bf16.vlgmr.msra.gmra.mxu0 %vm3600_vm3, %v4181_v24 }
 0x9ba   : > { %4046 = vmatprep.mubr.msk.bf16.mxu0 %vm3600_vm3, %v4182_v36 }
 0x9c0   : > { %v3547_v3 = vpop.permute.xlu1 %3546 }
 0x9c1   : > { %4047 = vmatmul.mubr.msk.bf16.gmra.mxu0 %vm3600_vm3, %v4183_v55 }
 0x9c4   : > { %v3552_v5 = vpop.permute.xlu1 %3551 }
 0x9c8   : > { %v3562_v31 = vpop.permute.xlu1 %3561 }
 0x9cc   : > { %v3572_v47 = vpop.permute.xlu1 %3571 }
 0x9d0   : > { %v3090_v15 = vpop.permute.xlu1 %3089 }
 0x9d1   : > { %v3101_v61 = vsel %vm6399_vm11, %v6004_v16, %v3090_v15 }
 0x9d2   : > { %3113 = vst.msk [vmem:[#allocation3 + $0x10] sm:$0xff] %vm1202_vm7, %v3101_v61 }
 0x9d4   : > { %v3098_v22 = vpop.permute.xlu1 %3097 }
 0x9d5   : > { %v3104_v28 = vsel %vm6400_vm1, %v6026_v26, %v3098_v22 }
 0x9d6   : > { %3116 = vst.msk [vmem:[#allocation3 + $0x28] sm:$0xf] %vm1206_vm12, %v3104_v28 }
 0x9d8   : > { %v3152_v35 = vpop.permute.xlu1 %3151 }
 0x9d9   : > { %v3158_v48 = vsel %vm6392_vm15, %v6017_v56, %v3152_v35 }
 0x9da   : > { %3170 = vst.msk [vmem:[#allocation3 + $0x40] sm:$0xff] %vm1202_vm7, %v3158_v48 }
 0x9dc   : > { %v3194_v23 = vpop.permute.xlu1 %3193 }
 0x9dd   : > { %v3200_v14 = vsel %vm529_vm10, %v5997_v30, %v3194_v23 }
 0x9de   : > { %3212 = vst.msk [vmem:[#allocation3 + $0x70] sm:$0xf] %vm1206_vm12, %v3200_v14 }
 0x9e0   : > { %v3240_v16 = vpop.permute.xlu1 %3239 }
 0x9e1   : > { %v3246_v40 = vsel %vm6401_vm2, %v6024_v59, %v3240_v16 }
 0x9e2   : > { %3258 = vst.msk [vmem:[#allocation3 + $0x88] sm:$0xff] %vm1202_vm7, %v3246_v40 }
 0xa79   : > { %v4044_v26 = vpop.f32.mrf.mxu0 }
 0xa7a   : > { %v3659_v9 = vadd.f32 %v4044_v26, %v3552_v5 }
 0xa7b   : > { %v3650_v58 = vpop.f32.mrf.mxu0 }
 0xa7c   : > { %vm3682_vm5 = vcmp.ge.f32.partialorder %v3659_v9, 0.0  ;;  %v3693_v56 = vmul.f32 %v6053_v50, %v3659_v9  ;;  %v3651_v8 = vadd.f32 %v3650_v58, %v6047_v6 }
 0xa7d   : > { %v4045_v13 = vpop.f32.mrf.mxu0 }
 0xa7e   : > { %v3700_v30 = vsel %vm3682_vm5, %v3659_v9, %v3693_v56  ;;  %vm3680_vm10 = vcmp.ge.f32.partialorder %v3651_v8, 0.0  ;;  %v3691_v27 = vmul.f32 %v6053_v50, %v3651_v8  ;;  %v3662_v25 = vadd.f32 %v4045_v13, %v6049_v49 }
 0xa7f   : > { %3707 = vst [vmem:[%s6129_s28 + $0x10] sm:$0xff] %v3700_v30  ;;  %v3653_v59 = vpop.f32.mrf.mxu0 }
 0xa80   : > { %v3698_v20 = vsel %vm3680_vm10, %v3651_v8, %v3691_v27  ;;  %vm3683_vm7 = vcmp.ge.f32.partialorder %v3662_v25, 0.0  ;;  %v3694_v60 = vmul.f32 %v6053_v50, %v3662_v25  ;;  %v3654_v6 = vadd.f32 %v3653_v59, %v3547_v3 }
 0xa81   : > { %3705 = vst [vmem:[%s6129_s28] sm:$0xff] %v3698_v20  ;;  %v4048_v54 = vpop.f32.mrf.mxu0 }
 0xa82   : > { %v3701_v29 = vsel %vm3683_vm7, %v3662_v25, %v3694_v60  ;;  %vm3681_vm12 = vcmp.ge.f32.partialorder %v3654_v6, 0.0  ;;  %v3692_v49 = vmul.f32 %v6053_v50, %v3654_v6  ;;  %v3675_v0 = vadd.f32 %v4048_v54, %v3572_v47 }
 0xa83   : > { %3708 = vst [vmem:[%s6129_s28 + $0x18] sm:$0xff] %v3701_v29  ;;  %v3666_v1 = vpop.f32.mrf.mxu0 }
 0xa84   : > { %v3699_v4 = vsel %vm3681_vm12, %v3654_v6, %v3692_v49  ;;  %vm3686_vm9 = vcmp.ge.f32.partialorder %v3675_v0, 0.0  ;;  %v3697_v42 = vmul.f32 %v6053_v50, %v3675_v0  ;;  %v3667_v17 = vadd.f32 %v3666_v1, %v3562_v31 }
 0xa85   : > { %3706 = vst [vmem:[%s6129_s28 + $0x8] sm:$0xff] %v3699_v4  ;;  %v4049_v32 = vpop.f32.mrf.mxu0 }
 0xa86   : > { %v3704_v44 = vsel %vm3686_vm9, %v3675_v0, %v3697_v42  ;;  %vm3684_vm4 = vcmp.ge.f32.partialorder %v3667_v17, 0.0  ;;  %v3695_v62 = vmul.f32 %v6053_v50, %v3667_v17  ;;  %v3767_v19 = vld [vmem:[%s6129_s28 + $0x10] sm:$0xff] (%p4412_p5) }
 0xa87   : > { %3711 = vst [vmem:[%s6129_s28 + $0x30] sm:$0xff] %v3704_v44  ;;  %v3669_v11 = vpop.f32.mrf.mxu0  ;;  %3768 = vst [vmem:[%s3722_s16 + $0x20] sm:$0xff] (%p4412_p5), %v3767_v19 }
 0xa88   : > { %v3702_v41 = vsel %vm3684_vm4, %v3667_v17, %v3695_v62  ;;  %v3670_v45 = vadd.f32 %v3669_v11, %v6051_v7  ;;  %v3763_v7 = vld [vmem:[%s6129_s28] sm:$0xff] (%p4412_p5) }
 0xa89   : > { %3709 = vst [vmem:[%s6129_s28 + $0x20] sm:$0xff] %v3702_v41  ;;  %3718 = sbr.rel (!%p4412_p5) target bundleno = 2710 (0xa96), region = 72  ;;  %3764 = vst [vmem:[%s3722_s16] sm:$0xff] (%p4412_p5), %v3763_v7 }
 0xa8a   : > { %vm3685_vm3 = vcmp.ge.f32.partialorder %v3670_v45, 0.0  ;;  %v3696_v21 = vmul.f32 %v6053_v50, %v3670_v45  ;;  %v3769_v12 = vld [vmem:[%s6129_s28 + $0x18] sm:$0xff] (%p4412_p5) }
 0xa8b   : > { %3770 = vst [vmem:[%s3722_s16 + $0x30] sm:$0xff] (%p4412_p5), %v3769_v12 }
 0xa8c   : > { %v3703_v46 = vsel %vm3685_vm3, %v3670_v45, %v3696_v21  ;;  %v3765_v43 = vld [vmem:[%s6129_s28 + $0x8] sm:$0xff] (%p4412_p5) }
 0xa8d   : > { %3710 = vst [vmem:[%s6129_s28 + $0x28] sm:$0xff] %v3703_v46  ;;  %3766 = vst [vmem:[%s3722_s16 + $0x10] sm:$0xff] (%p4412_p5), %v3765_v43 }
 0xa8e   : > { %v3775_v33 = vld [vmem:[%s6129_s28 + $0x30] sm:$0xff] }
 0xa8f   : > { %3776 = vst [vmem:[%s3722_s16 + $0x60] sm:$0xff] %v3775_v33 }
 0xa90   : > { %v3771_v50 = vld [vmem:[%s6129_s28 + $0x20] sm:$0xff] }
 0xa91   : > { %3772 = vst [vmem:[%s3722_s16 + $0x40] sm:$0xff] %v3771_v50 }
 0xa94   : > { %v3773_v57 = vld [vmem:[%s6129_s28 + $0x28] sm:$0xff] }
 0xa95   : > { %3774 = vst [vmem:[%s3722_s16 + $0x50] sm:$0xff] %v3773_v57 }
 0xa96 PF: > { %s6402_s24 = sld [smem:[#allocation6_spill]]  ;;  %s6406_s21 = smov %s4244_s22 }
 0xa97   : > { %s6403_s23 = sld [smem:[#allocation5_spill]]  ;;  %s6407_s22 = smov %s4423_s18 }
 0xa98   : > { %s6404_s25 = sld [smem:[#allocation7_spill]] }
 0xa99   : > { %s6405_s29 = sld [smem:[#allocation8_spill]] }
 0xa9c   : > { %s22_s27 = sadd.s32 1, %s6402_s24   ;;  %s6408_s24 = smov %s4260_s26 }
 0xa9d   : > { %p19_p12 = scmp.ge.s32.totalorder %s22_s27, 6  }
 0xa9f   : > { %s6409_s26 = smov %s6405_s29  ;;  %21 = sbr.rel (!%p19_p12) target bundleno = 8 (0x8), region = 170 }

</bundles_post_ra>
